<compile_context>
chip_gen: v6e
topology: v6e:2x2x1
jax: 0.10.0
libtpu: 0.0.40
codegen_flags: <defaults>
</compile_context>

<pallas_src>
import math

import jax
import jax.numpy as jnp
from jax import lax
from jax.experimental import pallas as pl
from jax.experimental.pallas import tpu as pltpu


# ----------------------------------------------------------------------------
# helpers
# ----------------------------------------------------------------------------
def _layernorm(x, g, b, eps=1e-5):
    mu = jnp.mean(x, axis=-1, keepdims=True)
    var = jnp.mean((x - mu) ** 2, axis=-1, keepdims=True)
    return (x - mu) * lax.rsqrt(var + eps) * g + b


# batched matmul dimension numbers (batch dim 0 on both operands)
_BATCHED_NN = (((2,), (1,)), ((0,), (0,)))   # (n,a,k) x (n,k,b) -> (n,a,b)
_BATCHED_NT = (((2,), (2,)), ((0,), (0,)))   # (n,a,k) x (n,b,k) -> (n,a,b)


# ----------------------------------------------------------------------------
# fused encoder kernel: all layers + mean-pool + classifier in one invocation
# ----------------------------------------------------------------------------
def _make_encoder_kernel(n_layers, n_timescales, n_heads, head_dim, seq_len,
                         d_model, block_b):
    L, T, H, hd, S, D, Bb = (n_layers, n_timescales, n_heads, head_dim,
                             seq_len, d_model, block_b)
    TH = T * H
    bf16 = jnp.bfloat16
    f32 = jnp.float32

    def kernel(x_ref, disc_ref, wqkv_ref, bqkv_ref,
               dw1_ref, db1_ref, lng_ref, lnb_ref, dw2_ref, db2_ref,
               n1g_ref, n1b_ref, wf1_ref, bf1_ref, wf2_ref, bf2_ref,
               n2g_ref, n2b_ref, wc_ref, bc_ref,
               logits_ref, attn_ref):
        x_flat = x_ref[...].reshape(Bb * S, D)                      # (Bb*S, D) f32

        for l in range(L):                                          # static unroll
            x3 = x_flat.reshape(Bb, S, D)
            wqkv = wqkv_ref[l]                                      # (3TH, D, hd) bf16
            bqkv = bqkv_ref[l]                                      # (3TH, 1, hd) f32
            dw1 = dw1_ref[l]                                        # (TH, hd, 2D) bf16
            disc = disc_ref[l]                                      # (TH, S, S) f32

            h1_parts = []
            for bi in range(Bb):                                    # attention is per-b
                xb = x3[bi].astype(bf16)                            # (S, D)
                # all (timescale, head, q/k/v) projections in ONE batched matmul
                xq = jnp.broadcast_to(xb, (3 * TH, S, D))
                qkv = lax.dot_general(xq, wqkv, _BATCHED_NN,
                                      preferred_element_type=f32) + bqkv
                q = qkv[:TH].astype(bf16)                           # (TH, S, hd)
                k = qkv[TH:2 * TH].astype(bf16)
                v = qkv[2 * TH:].astype(bf16)

                # energy[n,q,k] for all T*H heads at once (1/sqrt(hd) folded in disc)
                energy = lax.dot_general(q, k, _BATCHED_NT,
                                         preferred_element_type=f32) * disc
                m = jnp.max(energy, axis=-1, keepdims=True)
                e = jnp.exp(energy - m)
                attn = e * pl.reciprocal(jnp.sum(e, axis=-1, keepdims=True),
                                         approx=True)               # (TH, S, S) f32
                attn_ref[bi, l] = attn.reshape(T, H, S, S)

                ctx = lax.dot_general(attn.astype(bf16), v, _BATCHED_NN,
                                      preferred_element_type=f32)   # (TH, S, hd)
                # decoder Linear(T*D, 2D) as a batched matmul + accumulate over
                # (timescale, head) -> avoids lane-axis re-concat of contexts
                part = lax.dot_general(ctx.astype(bf16), dw1, _BATCHED_NN,
                                       preferred_element_type=f32)  # (TH, S, 2D)
                acc = part[0]
                for n in range(1, TH):
                    acc = acc + part[n]
                h1_parts.append(acc)                                # (S, 2D)

            h1 = h1_parts[0] if Bb == 1 else jnp.concatenate(h1_parts, axis=0)
            h1 = h1 + db1_ref[l]                                    # (Bb*S, 2D)
            h1 = jnp.maximum(_layernorm(h1, lng_ref[l], lnb_ref[l]), 0.0)
            attn_out = jnp.dot(h1.astype(bf16), dw2_ref[l],
                               preferred_element_type=f32) + db2_ref[l]

            # residual + norm1
            y = _layernorm(x_flat + attn_out, n1g_ref[l], n1b_ref[l])

            # feed-forward + residual + norm2
            f = jnp.maximum(jnp.dot(y.astype(bf16), wf1_ref[l],
                                    preferred_element_type=f32) + bf1_ref[l], 0.0)
            f = jnp.dot(f.astype(bf16), wf2_ref[l],
                        preferred_element_type=f32) + bf2_ref[l]
            x_flat = _layernorm(y + f, n2g_ref[l], n2b_ref[l])

        # mean-pool over sequence + classifier (folded into the same kernel)
        x3 = x_flat.reshape(Bb, S, D)
        pooled = [jnp.mean(x3[bi], axis=0, keepdims=True) for bi in range(Bb)]
        pooled = pooled[0] if Bb == 1 else jnp.concatenate(pooled, axis=0)
        logits = jnp.dot(pooled.astype(bf16), wc_ref[...],
                         preferred_element_type=f32) + bc_ref[...]  # (Bb, C)
        logits_ref[...] = logits.reshape(Bb, 1, logits.shape[-1])

    return kernel


# ----------------------------------------------------------------------------
# encoder forward wrapper (embedding + PE in XLA, everything else in the kernel)
# ----------------------------------------------------------------------------
def encoder_forward(tokens, packed, *, n_heads, block_b=None):
    B, S = tokens.shape
    D = packed["emb"].shape[1]
    H = n_heads
    hd = D // H
    L, T = packed["gammas"].shape
    TH = T * H
    C = packed["wc"].shape[-1]
    Dff = packed["ff_w1"].shape[-1]
    D2 = packed["dw1"].shape[-1]

    if block_b is None:
        # keep >= 2 grid steps when possible so both v7x TensorCores get work
        block_b = B
        if B >= 2:
            block_b = B // 2
            while B % block_b:
                block_b -= 1
    assert B % block_b == 0

    # token embedding + positional encoding (gather stays in XLA)
    x = jnp.take(packed["emb"], tokens, axis=0) * math.sqrt(D)
    x = x + packed["pe"][:S][None]

    # gamma**|i-j| * 1/sqrt(hd), all layers at once, pre-broadcast over heads
    pos = jnp.arange(S, dtype=jnp.float32)
    pos_diff = jnp.abs(pos[:, None] - pos[None, :])                 # (S, S)
    disc = packed["gammas"][:, :, None, None] ** pos_diff[None, None]
    disc = disc * (1.0 / math.sqrt(hd))
    disc = jnp.broadcast_to(disc[:, :, None], (L, T, H, S, S)).reshape(L, TH, S, S)

    kernel = _make_encoder_kernel(L, T, H, hd, S, D, block_b)

    def full(shape):
        n = len(shape)
        return pl.BlockSpec(shape, lambda i: (0,) * n)

    in_specs = [
        pl.BlockSpec((block_b, S, D), lambda i: (i, 0, 0)),          # x
        full((L, TH, S, S)),                                         # discount
        full((L, 3 * TH, D, hd)), full((L, 3 * TH, 1, hd)),          # wqkv, bqkv
        full((L, TH, hd, D2)), full((L, 1, D2)),                     # dec w1, b1
        full((L, 1, D2)), full((L, 1, D2)),                          # dec LN g, b
        full((L, D2, D)), full((L, 1, D)),                           # dec w2, b2
        full((L, 1, D)), full((L, 1, D)),                            # norm1 g, b
        full((L, D, Dff)), full((L, 1, Dff)),                        # ff w1, b1
        full((L, Dff, D)), full((L, 1, D)),                          # ff w2, b2
        full((L, 1, D)), full((L, 1, D)),                            # norm2 g, b
        full((D, C)), full((1, C)),                                  # classifier
    ]
    args = [x, disc, packed["wqkv"], packed["bqkv"],
            packed["dw1"], packed["db1"], packed["dec_lng"], packed["dec_lnb"],
            packed["dw2"], packed["db2"], packed["n1_g"], packed["n1_b"],
            packed["ff_w1"], packed["ff_b1"], packed["ff_w2"], packed["ff_b2"],
            packed["n2_g"], packed["n2_b"], packed["wc"], packed["bc"]]

    out_shapes = (jax.ShapeDtypeStruct((B, 1, C), jnp.float32),
                  jax.ShapeDtypeStruct((B, L, T, H, S, S), jnp.float32))
    out_specs = (pl.BlockSpec((block_b, 1, C), lambda i: (i, 0, 0)),
                 pl.BlockSpec((block_b, L, T, H, S, S),
                              lambda i: (i, 0, 0, 0, 0, 0)))

    logits3, attn6 = pl.pallas_call(
        kernel,
        out_shape=out_shapes,
        grid=(B // block_b,),
        in_specs=in_specs,
        out_specs=out_specs,
        compiler_params=pltpu.CompilerParams(
            dimension_semantics=("parallel",)),
    )(*args)

    logits = logits3.reshape(B, C)
    attn_weights = [attn6[:, l] for l in range(L)]
    return logits, attn_weights


# ----------------------------------------------------------------------------
# parameter construction (torch-like layout) and packing into kernel layout
# ----------------------------------------------------------------------------
def _xavier(key, shape):
    fan_in, fan_out = shape[-2], shape[-1]
    a = math.sqrt(6.0 / (fan_in + fan_out))
    return jax.random.uniform(key, shape, jnp.float32, -a, a)


def _sinusoidal_pe(max_len, d_model):
    pos = jnp.arange(max_len, dtype=jnp.float32)[:, None]
    div = jnp.exp(jnp.arange(0, d_model, 2, dtype=jnp.float32)
                  * (-math.log(10000.0) / d_model))
    pe = jnp.zeros((max_len, d_model), jnp.float32)
    pe = pe.at[:, 0::2].set(jnp.sin(pos * div))
    pe = pe.at[:, 1::2].set(jnp.cos(pos * div))
    return pe


def init_params(key, vocab, D, H, L, Dff, C, T, max_seq, pad_idx=0):
    """Parameters in torch-like layout: Linear weight (in, out), y = x @ W + b."""
    keys = iter(jax.random.split(key, 2 + L * (3 * T + 4)))
    params = {
        "emb": _xavier(next(keys), (vocab, D)).at[pad_idx].set(0.0),
        "pe": _sinusoidal_pe(max_seq, D),
    }
    layers = []
    for _ in range(L):
        lp = {
            "wq": jnp.stack([_xavier(next(keys), (D, D)) for _ in range(T)]),
            "wk": jnp.stack([_xavier(next(keys), (D, D)) for _ in range(T)]),
            "wv": jnp.stack([_xavier(next(keys), (D, D)) for _ in range(T)]),
            "bq": jnp.zeros((T, D), jnp.float32),
            "bk": jnp.zeros((T, D), jnp.float32),
            "bv": jnp.zeros((T, D), jnp.float32),
            "gammas": jnp.array([0.6, 0.9, 0.99], jnp.float32)[:T],
            "dec_w1": _xavier(next(keys), (T * D, 2 * D)),
            "dec_b1": jnp.zeros((1, 2 * D), jnp.float32),
            "dec_lng": jnp.ones((1, 2 * D), jnp.float32),
            "dec_lnb": jnp.zeros((1, 2 * D), jnp.float32),
            "dec_w2": _xavier(next(keys), (2 * D, D)),
            "dec_b2": jnp.zeros((1, D), jnp.float32),
            "n1_g": jnp.ones((1, D), jnp.float32),
            "n1_b": jnp.zeros((1, D), jnp.float32),
            "ff_w1": _xavier(next(keys), (D, Dff)),
            "ff_b1": jnp.zeros((1, Dff), jnp.float32),
            "ff_w2": _xavier(next(keys), (Dff, D)),
            "ff_b2": jnp.zeros((1, D), jnp.float32),
            "n2_g": jnp.ones((1, D), jnp.float32),
            "n2_b": jnp.zeros((1, D), jnp.float32),
        }
        layers.append(lp)
    params["layers"] = layers
    params["cls_w"] = _xavier(next(keys), (D, C))
    params["cls_b"] = jnp.zeros((1, C), jnp.float32)
    return params


def pack_params(params, n_heads):
    """One-time (XLA) reshape of torch-layout params into the kernel layout.

    MXU weights are cast to bf16; biases / LayerNorm params stay f32.
    """
    D = params["emb"].shape[1]
    H = n_heads
    hd = D // H
    layers = params["layers"]
    T = layers[0]["gammas"].shape[0]
    bf16 = jnp.bfloat16

    def heads(w):            # (T, D, D) -> (T*H, D, hd); head h = cols [h*hd:(h+1)*hd]
        return w.reshape(T, D, H, hd).transpose(0, 2, 1, 3).reshape(T * H, D, hd)

    def head_bias(b):        # (T, D) -> (T*H, 1, hd)
        return b.reshape(T * H, 1, hd)

    def stack(name, dtype=jnp.float32):
        return jnp.stack([lp[name] for lp in layers], 0).astype(dtype)

    packed = {
        "emb": params["emb"],
        "pe": params["pe"],
        "gammas": jnp.stack([lp["gammas"] for lp in layers], 0),     # (L, T)
        "wqkv": jnp.stack(
            [jnp.concatenate([heads(lp["wq"]), heads(lp["wk"]), heads(lp["wv"])], 0)
             for lp in layers], 0).astype(bf16),                     # (L, 3TH, D, hd)
        "bqkv": jnp.stack(
            [jnp.concatenate([head_bias(lp["bq"]), head_bias(lp["bk"]),
                              head_bias(lp["bv"])], 0)
             for lp in layers], 0),                                  # (L, 3TH, 1, hd)
        "dw1": jnp.stack([lp["dec_w1"].reshape(T * H, hd, 2 * D)
                          for lp in layers], 0).astype(bf16),        # (L, TH, hd, 2D)
        "db1": stack("dec_b1"),
        "dec_lng": stack("dec_lng"), "dec_lnb": stack("dec_lnb"),
        "dw2": stack("dec_w2", bf16), "db2": stack("dec_b2"),
        "n1_g": stack("n1_g"), "n1_b": stack("n1_b"),
        "ff_w1": stack("ff_w1", bf16), "ff_b1": stack("ff_b1"),
        "ff_w2": stack("ff_w2", bf16), "ff_b2": stack("ff_b2"),
        "n2_g": stack("n2_g"), "n2_b": stack("n2_b"),
        "wc": params["cls_w"].astype(bf16), "bc": params["cls_b"],
    }
    return packed


# ----------------------------------------------------------------------------
if __name__ == "__main__":
    vocab_size = 50
    d_model = 32
    n_heads = 4
    n_layers = 2
    d_ff = 64
    num_classes = 4
    n_timescales = 3
    max_seq_length = 64
    B, S = 2, 8

    key = jax.random.PRNGKey(0)
    pkey, tkey = jax.random.split(key)
    params = init_params(pkey, vocab_size, d_model, n_heads, n_layers, d_ff,
                         num_classes, n_timescales, max_seq_length)
    packed = pack_params(params, n_heads)
    tokens = jax.random.randint(tkey, (B, S), 0, vocab_size, dtype=jnp.int32)

    logits, attn_weights = encoder_forward(tokens, packed, n_heads=n_heads)
    logits = jax.block_until_ready(logits)
    for a in attn_weights:
        jax.block_until_ready(a)

    assert logits.shape == (B, num_classes)
    assert len(attn_weights) == n_layers
    assert attn_weights[0].shape == (B, n_timescales, n_heads, S, S)
    assert bool(jnp.all(jnp.isfinite(logits)))
    assert bool(jnp.all(jnp.isfinite(attn_weights[0])))
    print("KERNEL_OK")
</pallas_src>

<mosaic_0001>
module attributes {stable_mosaic.version = 11 : i64} {
  func.func @kernel(%arg0: i32, %arg1: memref<1x8x32xf32, #tpu.memory_space<vmem>>, %arg2: memref<2x12x8x8xf32, #tpu.memory_space<vmem>>, %arg3: memref<2x36x32x8xbf16, #tpu.memory_space<vmem>>, %arg4: memref<2x36x1x8xf32, #tpu.memory_space<vmem>>, %arg5: memref<2x12x8x64xbf16, #tpu.memory_space<vmem>>, %arg6: memref<2x1x64xf32, #tpu.memory_space<vmem>>, %arg7: memref<2x1x64xf32, #tpu.memory_space<vmem>>, %arg8: memref<2x1x64xf32, #tpu.memory_space<vmem>>, %arg9: memref<2x64x32xbf16, #tpu.memory_space<vmem>>, %arg10: memref<2x1x32xf32, #tpu.memory_space<vmem>>, %arg11: memref<2x1x32xf32, #tpu.memory_space<vmem>>, %arg12: memref<2x1x32xf32, #tpu.memory_space<vmem>>, %arg13: memref<2x32x64xbf16, #tpu.memory_space<vmem>>, %arg14: memref<2x1x64xf32, #tpu.memory_space<vmem>>, %arg15: memref<2x64x32xbf16, #tpu.memory_space<vmem>>, %arg16: memref<2x1x32xf32, #tpu.memory_space<vmem>>, %arg17: memref<2x1x32xf32, #tpu.memory_space<vmem>>, %arg18: memref<2x1x32xf32, #tpu.memory_space<vmem>>, %arg19: memref<32x4xbf16, #tpu.memory_space<vmem>>, %arg20: memref<1x4xf32, #tpu.memory_space<vmem>>, %arg21: memref<1x1x4xf32, #tpu.memory_space<vmem>>, %arg22: memref<1x2x3x4x8x8xf32, #tpu.memory_space<vmem>>) attributes {dimension_semantics = [#tpu.dimension_semantics<parallel>], iteration_bounds = array<i64: 2>, scalar_prefetch = 0 : i64, scratch_operands = 0 : i64, tpu.core_type = #tpu.core_type<tc>, window_params = [{transform_indices = @transform_0, window_bounds = array<i64: 1, 8, 32>}, {pipeline_mode = #tpu.pipeline_mode<synchronous>, transform_indices = @transform_1, window_bounds = array<i64: 2, 12, 8, 8>}, {pipeline_mode = #tpu.pipeline_mode<synchronous>, transform_indices = @transform_2, window_bounds = array<i64: 2, 36, 32, 8>}, {pipeline_mode = #tpu.pipeline_mode<synchronous>, transform_indices = @transform_3, window_bounds = array<i64: 2, 36, 1, 8>}, {pipeline_mode = #tpu.pipeline_mode<synchronous>, transform_indices = @transform_4, window_bounds = array<i64: 2, 12, 8, 64>}, {pipeline_mode = #tpu.pipeline_mode<synchronous>, transform_indices = @transform_5, window_bounds = array<i64: 2, 1, 64>}, {pipeline_mode = #tpu.pipeline_mode<synchronous>, transform_indices = @transform_6, window_bounds = array<i64: 2, 1, 64>}, {pipeline_mode = #tpu.pipeline_mode<synchronous>, transform_indices = @transform_7, window_bounds = array<i64: 2, 1, 64>}, {pipeline_mode = #tpu.pipeline_mode<synchronous>, transform_indices = @transform_8, window_bounds = array<i64: 2, 64, 32>}, {pipeline_mode = #tpu.pipeline_mode<synchronous>, transform_indices = @transform_9, window_bounds = array<i64: 2, 1, 32>}, {pipeline_mode = #tpu.pipeline_mode<synchronous>, transform_indices = @transform_10, window_bounds = array<i64: 2, 1, 32>}, {pipeline_mode = #tpu.pipeline_mode<synchronous>, transform_indices = @transform_11, window_bounds = array<i64: 2, 1, 32>}, {pipeline_mode = #tpu.pipeline_mode<synchronous>, transform_indices = @transform_12, window_bounds = array<i64: 2, 32, 64>}, {pipeline_mode = #tpu.pipeline_mode<synchronous>, transform_indices = @transform_13, window_bounds = array<i64: 2, 1, 64>}, {pipeline_mode = #tpu.pipeline_mode<synchronous>, transform_indices = @transform_14, window_bounds = array<i64: 2, 64, 32>}, {pipeline_mode = #tpu.pipeline_mode<synchronous>, transform_indices = @transform_15, window_bounds = array<i64: 2, 1, 32>}, {pipeline_mode = #tpu.pipeline_mode<synchronous>, transform_indices = @transform_16, window_bounds = array<i64: 2, 1, 32>}, {pipeline_mode = #tpu.pipeline_mode<synchronous>, transform_indices = @transform_17, window_bounds = array<i64: 2, 1, 32>}, {pipeline_mode = #tpu.pipeline_mode<synchronous>, transform_indices = @transform_18, window_bounds = array<i64: 32, 4>}, {pipeline_mode = #tpu.pipeline_mode<synchronous>, transform_indices = @transform_19, window_bounds = array<i64: 1, 4>}, {transform_indices = @transform_20, window_bounds = array<i64: 1, 1, 4>}, {transform_indices = @transform_21, window_bounds = array<i64: 1, 2, 3, 4, 8, 8>}]} {
    %c0 = arith.constant 0 : index
    %c0_0 = arith.constant 0 : index
    %c0_1 = arith.constant 0 : index
    %0 = vector.load %arg1[%c0, %c0_0, %c0_1] : memref<1x8x32xf32, #tpu.memory_space<vmem>>, vector<1x8x32xf32>
    %1 = vector.shape_cast %0 : vector<1x8x32xf32> to vector<8x32xf32>
    %2 = vector.shape_cast %1 : vector<8x32xf32> to vector<1x8x32xf32>
    %c0_2 = arith.constant 0 : index
    %c0_3 = arith.constant 0 : index
    %c0_4 = arith.constant 0 : index
    %c0_5 = arith.constant 0 : index
    %3 = vector.load %arg3[%c0_2, %c0_3, %c0_4, %c0_5] : memref<2x36x32x8xbf16, #tpu.memory_space<vmem>>, vector<1x36x32x8xbf16>
    %4 = vector.shape_cast %3 : vector<1x36x32x8xbf16> to vector<36x32x8xbf16>
    %c0_6 = arith.constant 0 : index
    %c0_7 = arith.constant 0 : index
    %c0_8 = arith.constant 0 : index
    %c0_9 = arith.constant 0 : index
    %5 = vector.load %arg4[%c0_6, %c0_7, %c0_8, %c0_9] : memref<2x36x1x8xf32, #tpu.memory_space<vmem>>, vector<1x36x1x8xf32>
    %6 = vector.shape_cast %5 : vector<1x36x1x8xf32> to vector<36x1x8xf32>
    %c0_10 = arith.constant 0 : index
    %c0_11 = arith.constant 0 : index
    %c0_12 = arith.constant 0 : index
    %c0_13 = arith.constant 0 : index
    %7 = vector.load %arg5[%c0_10, %c0_11, %c0_12, %c0_13] : memref<2x12x8x64xbf16, #tpu.memory_space<vmem>>, vector<1x12x8x64xbf16>
    %8 = vector.shape_cast %7 : vector<1x12x8x64xbf16> to vector<12x8x64xbf16>
    %c0_14 = arith.constant 0 : index
    %c0_15 = arith.constant 0 : index
    %c0_16 = arith.constant 0 : index
    %c0_17 = arith.constant 0 : index
    %9 = vector.load %arg2[%c0_14, %c0_15, %c0_16, %c0_17] : memref<2x12x8x8xf32, #tpu.memory_space<vmem>>, vector<1x12x8x8xf32>
    %10 = vector.shape_cast %9 : vector<1x12x8x8xf32> to vector<12x8x8xf32>
    %11 = vector.shape_cast %2 : vector<1x8x32xf32> to vector<8x32xf32>
    %12 = arith.truncf %11 : vector<8x32xf32> to vector<8x32xbf16>
    %13 = vector.shape_cast %12 : vector<8x32xbf16> to vector<1x8x32xbf16>
    %14 = vector.broadcast %13 : vector<1x8x32xbf16> to vector<36x8x32xbf16>
    %cst = arith.constant dense<0.000000e+00> : vector<36x8x8xf32>
    %15 = tpu.matmul %14, %4, %cst {dimension_numbers = #tpu.dot_dimension_numbers<[2], [1], [1], [2], [0, 0, 0, 1, 1, 2], [0], [0]>} : vector<36x8x32xbf16>, vector<36x32x8xbf16>, vector<36x8x8xf32> -> vector<36x8x8xf32>
    %16 = vector.broadcast %6 : vector<36x1x8xf32> to vector<36x8x8xf32>
    %17 = arith.addf %15, %16 : vector<36x8x8xf32>
    %18 = vector.extract_strided_slice %17 {offsets = [0, 0, 0], sizes = [12, 8, 8], strides = [1, 1, 1]} : vector<36x8x8xf32> to vector<12x8x8xf32>
    %19 = arith.truncf %18 : vector<12x8x8xf32> to vector<12x8x8xbf16>
    %20 = vector.extract_strided_slice %17 {offsets = [12, 0, 0], sizes = [12, 8, 8], strides = [1, 1, 1]} : vector<36x8x8xf32> to vector<12x8x8xf32>
    %21 = arith.truncf %20 : vector<12x8x8xf32> to vector<12x8x8xbf16>
    %22 = vector.extract_strided_slice %17 {offsets = [24, 0, 0], sizes = [12, 8, 8], strides = [1, 1, 1]} : vector<36x8x8xf32> to vector<12x8x8xf32>
    %23 = arith.truncf %22 : vector<12x8x8xf32> to vector<12x8x8xbf16>
    %cst_18 = arith.constant dense<0.000000e+00> : vector<12x8x8xf32>
    %24 = tpu.matmul %19, %21, %cst_18 {dimension_numbers = #tpu.dot_dimension_numbers<[2], [2], [1], [1], [0, 0, 0, 1, 1, 1], [0], [0]>} : vector<12x8x8xbf16>, vector<12x8x8xbf16>, vector<12x8x8xf32> -> vector<12x8x8xf32>
    %25 = arith.mulf %24, %10 : vector<12x8x8xf32>
    %cst_19 = arith.constant dense<0xFF800000> : vector<12x8xf32>
    %26 = vector.multi_reduction <maximumf>, %25, %cst_19 [2] : vector<12x8x8xf32> to vector<12x8xf32>
    %27 = vector.shape_cast %26 : vector<12x8xf32> to vector<12x8x1xf32>
    %28 = vector.broadcast %27 : vector<12x8x1xf32> to vector<12x8x8xf32>
    %29 = arith.subf %25, %28 : vector<12x8x8xf32>
    %30 = math.exp %29 : vector<12x8x8xf32>
    %cst_20 = arith.constant dense<0.000000e+00> : vector<12x8xf32>
    %31 = vector.multi_reduction <add>, %30, %cst_20 [2] : vector<12x8x8xf32> to vector<12x8xf32>
    %32 = vector.shape_cast %31 : vector<12x8xf32> to vector<12x8x1xf32>
    %33 = tpu.reciprocal %32 {approx = true} : vector<12x8x1xf32> -> vector<12x8x1xf32>
    %34 = vector.broadcast %33 : vector<12x8x1xf32> to vector<12x8x8xf32>
    %35 = arith.mulf %30, %34 : vector<12x8x8xf32>
    %36 = vector.shape_cast %35 : vector<12x8x8xf32> to vector<3x4x8x8xf32>
    %c0_21 = arith.constant 0 : index
    %c0_22 = arith.constant 0 : index
    %c0_23 = arith.constant 0 : index
    %c0_24 = arith.constant 0 : index
    %c0_25 = arith.constant 0 : index
    %c0_26 = arith.constant 0 : index
    %37 = vector.load %arg22[%c0_21, %c0_22, %c0_23, %c0_24, %c0_25, %c0_26] : memref<1x2x3x4x8x8xf32, #tpu.memory_space<vmem>>, vector<1x1x3x4x8x8xf32>
    %38 = vector.shape_cast %37 : vector<1x1x3x4x8x8xf32> to vector<3x4x8x8xf32>
    %39 = vector.shape_cast %36 : vector<3x4x8x8xf32> to vector<1x1x3x4x8x8xf32>
    tpu.vector_store %arg22[%c0_21, %c0_22, %c0_23, %c0_24, %c0_25, %c0_26], %39 {strides = array<i32>} : memref<1x2x3x4x8x8xf32, #tpu.memory_space<vmem>>, vector<1x1x3x4x8x8xf32>,
    %40 = arith.truncf %35 : vector<12x8x8xf32> to vector<12x8x8xbf16>
    %cst_27 = arith.constant dense<0.000000e+00> : vector<12x8x8xf32>
    %41 = tpu.matmul %40, %23, %cst_27 {dimension_numbers = #tpu.dot_dimension_numbers<[2], [1], [1], [2], [0, 0, 0, 1, 1, 2], [0], [0]>} : vector<12x8x8xbf16>, vector<12x8x8xbf16>, vector<12x8x8xf32> -> vector<12x8x8xf32>
    %42 = arith.truncf %41 : vector<12x8x8xf32> to vector<12x8x8xbf16>
    %cst_28 = arith.constant dense<0.000000e+00> : vector<12x8x64xf32>
    %43 = tpu.matmul %42, %8, %cst_28 {dimension_numbers = #tpu.dot_dimension_numbers<[2], [1], [1], [2], [0, 0, 0, 1, 1, 2], [0], [0]>} : vector<12x8x8xbf16>, vector<12x8x64xbf16>, vector<12x8x64xf32> -> vector<12x8x64xf32>
    %44 = vector.extract_strided_slice %43 {offsets = [0, 0, 0], sizes = [1, 8, 64], strides = [1, 1, 1]} : vector<12x8x64xf32> to vector<1x8x64xf32>
    %45 = vector.shape_cast %44 : vector<1x8x64xf32> to vector<8x64xf32>
    %46 = vector.extract_strided_slice %43 {offsets = [1, 0, 0], sizes = [1, 8, 64], strides = [1, 1, 1]} : vector<12x8x64xf32> to vector<1x8x64xf32>
    %47 = vector.shape_cast %46 : vector<1x8x64xf32> to vector<8x64xf32>
    %48 = arith.addf %45, %47 : vector<8x64xf32>
    %49 = vector.extract_strided_slice %43 {offsets = [2, 0, 0], sizes = [1, 8, 64], strides = [1, 1, 1]} : vector<12x8x64xf32> to vector<1x8x64xf32>
    %50 = vector.shape_cast %49 : vector<1x8x64xf32> to vector<8x64xf32>
    %51 = arith.addf %48, %50 : vector<8x64xf32>
    %52 = vector.extract_strided_slice %43 {offsets = [3, 0, 0], sizes = [1, 8, 64], strides = [1, 1, 1]} : vector<12x8x64xf32> to vector<1x8x64xf32>
    %53 = vector.shape_cast %52 : vector<1x8x64xf32> to vector<8x64xf32>
    %54 = arith.addf %51, %53 : vector<8x64xf32>
    %55 = vector.extract_strided_slice %43 {offsets = [4, 0, 0], sizes = [1, 8, 64], strides = [1, 1, 1]} : vector<12x8x64xf32> to vector<1x8x64xf32>
    %56 = vector.shape_cast %55 : vector<1x8x64xf32> to vector<8x64xf32>
    %57 = arith.addf %54, %56 : vector<8x64xf32>
    %58 = vector.extract_strided_slice %43 {offsets = [5, 0, 0], sizes = [1, 8, 64], strides = [1, 1, 1]} : vector<12x8x64xf32> to vector<1x8x64xf32>
    %59 = vector.shape_cast %58 : vector<1x8x64xf32> to vector<8x64xf32>
    %60 = arith.addf %57, %59 : vector<8x64xf32>
    %61 = vector.extract_strided_slice %43 {offsets = [6, 0, 0], sizes = [1, 8, 64], strides = [1, 1, 1]} : vector<12x8x64xf32> to vector<1x8x64xf32>
    %62 = vector.shape_cast %61 : vector<1x8x64xf32> to vector<8x64xf32>
    %63 = arith.addf %60, %62 : vector<8x64xf32>
    %64 = vector.extract_strided_slice %43 {offsets = [7, 0, 0], sizes = [1, 8, 64], strides = [1, 1, 1]} : vector<12x8x64xf32> to vector<1x8x64xf32>
    %65 = vector.shape_cast %64 : vector<1x8x64xf32> to vector<8x64xf32>
    %66 = arith.addf %63, %65 : vector<8x64xf32>
    %67 = vector.extract_strided_slice %43 {offsets = [8, 0, 0], sizes = [1, 8, 64], strides = [1, 1, 1]} : vector<12x8x64xf32> to vector<1x8x64xf32>
    %68 = vector.shape_cast %67 : vector<1x8x64xf32> to vector<8x64xf32>
    %69 = arith.addf %66, %68 : vector<8x64xf32>
    %70 = vector.extract_strided_slice %43 {offsets = [9, 0, 0], sizes = [1, 8, 64], strides = [1, 1, 1]} : vector<12x8x64xf32> to vector<1x8x64xf32>
    %71 = vector.shape_cast %70 : vector<1x8x64xf32> to vector<8x64xf32>
    %72 = arith.addf %69, %71 : vector<8x64xf32>
    %73 = vector.extract_strided_slice %43 {offsets = [10, 0, 0], sizes = [1, 8, 64], strides = [1, 1, 1]} : vector<12x8x64xf32> to vector<1x8x64xf32>
    %74 = vector.shape_cast %73 : vector<1x8x64xf32> to vector<8x64xf32>
    %75 = arith.addf %72, %74 : vector<8x64xf32>
    %76 = vector.extract_strided_slice %43 {offsets = [11, 0, 0], sizes = [1, 8, 64], strides = [1, 1, 1]} : vector<12x8x64xf32> to vector<1x8x64xf32>
    %77 = vector.shape_cast %76 : vector<1x8x64xf32> to vector<8x64xf32>
    %78 = arith.addf %75, %77 : vector<8x64xf32>
    %c0_29 = arith.constant 0 : index
    %c0_30 = arith.constant 0 : index
    %c0_31 = arith.constant 0 : index
    %79 = vector.load %arg6[%c0_29, %c0_30, %c0_31] : memref<2x1x64xf32, #tpu.memory_space<vmem>>, vector<1x1x64xf32>
    %80 = vector.shape_cast %79 : vector<1x1x64xf32> to vector<1x64xf32>
    %81 = vector.broadcast %80 : vector<1x64xf32> to vector<8x64xf32>
    %82 = arith.addf %78, %81 : vector<8x64xf32>
    %c0_32 = arith.constant 0 : index
    %c0_33 = arith.constant 0 : index
    %c0_34 = arith.constant 0 : index
    %83 = vector.load %arg7[%c0_32, %c0_33, %c0_34] : memref<2x1x64xf32, #tpu.memory_space<vmem>>, vector<1x1x64xf32>
    %84 = vector.shape_cast %83 : vector<1x1x64xf32> to vector<1x64xf32>
    %c0_35 = arith.constant 0 : index
    %c0_36 = arith.constant 0 : index
    %c0_37 = arith.constant 0 : index
    %85 = vector.load %arg8[%c0_35, %c0_36, %c0_37] : memref<2x1x64xf32, #tpu.memory_space<vmem>>, vector<1x1x64xf32>
    %86 = vector.shape_cast %85 : vector<1x1x64xf32> to vector<1x64xf32>
    %cst_38 = arith.constant dense<0.000000e+00> : vector<8xf32>
    %87 = vector.multi_reduction <add>, %82, %cst_38 [1] : vector<8x64xf32> to vector<8xf32>
    %88 = vector.shape_cast %87 : vector<8xf32> to vector<8x1xf32>
    %cst_39 = arith.constant 6.400000e+01 : f32
    %89 = vector.broadcast %cst_39 : f32 to vector<8x1xf32>
    %90 = arith.divf %88, %89 : vector<8x1xf32>
    %91 = vector.broadcast %90 : vector<8x1xf32> to vector<8x64xf32>
    %92 = arith.subf %82, %91 : vector<8x64xf32>
    %93 = arith.mulf %92, %92 : vector<8x64xf32>
    %cst_40 = arith.constant dense<0.000000e+00> : vector<8xf32>
    %94 = vector.multi_reduction <add>, %93, %cst_40 [1] : vector<8x64xf32> to vector<8xf32>
    %95 = vector.shape_cast %94 : vector<8xf32> to vector<8x1xf32>
    %cst_41 = arith.constant 6.400000e+01 : f32
    %96 = vector.broadcast %cst_41 : f32 to vector<8x1xf32>
    %97 = arith.divf %95, %96 : vector<8x1xf32>
    %98 = vector.broadcast %90 : vector<8x1xf32> to vector<8x64xf32>
    %99 = arith.subf %82, %98 : vector<8x64xf32>
    %cst_42 = arith.constant 9.99999974E-6 : f32
    %100 = vector.broadcast %cst_42 : f32 to vector<8x1xf32>
    %101 = arith.addf %97, %100 : vector<8x1xf32>
    %102 = math.rsqrt %101 : vector<8x1xf32>
    %103 = vector.broadcast %102 : vector<8x1xf32> to vector<8x64xf32>
    %104 = arith.mulf %99, %103 : vector<8x64xf32>
    %105 = vector.broadcast %84 : vector<1x64xf32> to vector<8x64xf32>
    %106 = arith.mulf %104, %105 : vector<8x64xf32>
    %107 = vector.broadcast %86 : vector<1x64xf32> to vector<8x64xf32>
    %108 = arith.addf %106, %107 : vector<8x64xf32>
    %cst_43 = arith.constant 0.000000e+00 : f32
    %109 = vector.broadcast %cst_43 : f32 to vector<8x64xf32>
    %110 = arith.maximumf %108, %109 : vector<8x64xf32>
    %111 = arith.truncf %110 : vector<8x64xf32> to vector<8x64xbf16>
    %c0_44 = arith.constant 0 : index
    %c0_45 = arith.constant 0 : index
    %c0_46 = arith.constant 0 : index
    %112 = vector.load %arg9[%c0_44, %c0_45, %c0_46] : memref<2x64x32xbf16, #tpu.memory_space<vmem>>, vector<1x64x32xbf16>
    %113 = vector.shape_cast %112 : vector<1x64x32xbf16> to vector<64x32xbf16>
    %cst_47 = arith.constant dense<0.000000e+00> : vector<8x32xf32>
    %114 = tpu.matmul %111, %113, %cst_47 {dimension_numbers = #tpu.dot_dimension_numbers<[1], [0], [0], [1], [0, 0, 1, 1], [], []>} : vector<8x64xbf16>, vector<64x32xbf16>, vector<8x32xf32> -> vector<8x32xf32>
    %c0_48 = arith.constant 0 : index
    %c0_49 = arith.constant 0 : index
    %c0_50 = arith.constant 0 : index
    %115 = vector.load %arg10[%c0_48, %c0_49, %c0_50] : memref<2x1x32xf32, #tpu.memory_space<vmem>>, vector<1x1x32xf32>
    %116 = vector.shape_cast %115 : vector<1x1x32xf32> to vector<1x32xf32>
    %117 = vector.broadcast %116 : vector<1x32xf32> to vector<8x32xf32>
    %118 = arith.addf %114, %117 : vector<8x32xf32>
    %119 = arith.addf %1, %118 : vector<8x32xf32>
    %c0_51 = arith.constant 0 : index
    %c0_52 = arith.constant 0 : index
    %c0_53 = arith.constant 0 : index
    %120 = vector.load %arg11[%c0_51, %c0_52, %c0_53] : memref<2x1x32xf32, #tpu.memory_space<vmem>>, vector<1x1x32xf32>
    %121 = vector.shape_cast %120 : vector<1x1x32xf32> to vector<1x32xf32>
    %c0_54 = arith.constant 0 : index
    %c0_55 = arith.constant 0 : index
    %c0_56 = arith.constant 0 : index
    %122 = vector.load %arg12[%c0_54, %c0_55, %c0_56] : memref<2x1x32xf32, #tpu.memory_space<vmem>>, vector<1x1x32xf32>
    %123 = vector.shape_cast %122 : vector<1x1x32xf32> to vector<1x32xf32>
    %cst_57 = arith.constant dense<0.000000e+00> : vector<8xf32>
    %124 = vector.multi_reduction <add>, %119, %cst_57 [1] : vector<8x32xf32> to vector<8xf32>
    %125 = vector.shape_cast %124 : vector<8xf32> to vector<8x1xf32>
    %cst_58 = arith.constant 3.200000e+01 : f32
    %126 = vector.broadcast %cst_58 : f32 to vector<8x1xf32>
    %127 = arith.divf %125, %126 : vector<8x1xf32>
    %128 = vector.broadcast %127 : vector<8x1xf32> to vector<8x32xf32>
    %129 = arith.subf %119, %128 : vector<8x32xf32>
    %130 = arith.mulf %129, %129 : vector<8x32xf32>
    %cst_59 = arith.constant dense<0.000000e+00> : vector<8xf32>
    %131 = vector.multi_reduction <add>, %130, %cst_59 [1] : vector<8x32xf32> to vector<8xf32>
    %132 = vector.shape_cast %131 : vector<8xf32> to vector<8x1xf32>
    %cst_60 = arith.constant 3.200000e+01 : f32
    %133 = vector.broadcast %cst_60 : f32 to vector<8x1xf32>
    %134 = arith.divf %132, %133 : vector<8x1xf32>
    %135 = vector.broadcast %127 : vector<8x1xf32> to vector<8x32xf32>
    %136 = arith.subf %119, %135 : vector<8x32xf32>
    %cst_61 = arith.constant 9.99999974E-6 : f32
    %137 = vector.broadcast %cst_61 : f32 to vector<8x1xf32>
    %138 = arith.addf %134, %137 : vector<8x1xf32>
    %139 = math.rsqrt %138 : vector<8x1xf32>
    %140 = vector.broadcast %139 : vector<8x1xf32> to vector<8x32xf32>
    %141 = arith.mulf %136, %140 : vector<8x32xf32>
    %142 = vector.broadcast %121 : vector<1x32xf32> to vector<8x32xf32>
    %143 = arith.mulf %141, %142 : vector<8x32xf32>
    %144 = vector.broadcast %123 : vector<1x32xf32> to vector<8x32xf32>
    %145 = arith.addf %143, %144 : vector<8x32xf32>
    %146 = arith.truncf %145 : vector<8x32xf32> to vector<8x32xbf16>
    %c0_62 = arith.constant 0 : index
    %c0_63 = arith.constant 0 : index
    %c0_64 = arith.constant 0 : index
    %147 = vector.load %arg13[%c0_62, %c0_63, %c0_64] : memref<2x32x64xbf16, #tpu.memory_space<vmem>>, vector<1x32x64xbf16>
    %148 = vector.shape_cast %147 : vector<1x32x64xbf16> to vector<32x64xbf16>
    %cst_65 = arith.constant dense<0.000000e+00> : vector<8x64xf32>
    %149 = tpu.matmul %146, %148, %cst_65 {dimension_numbers = #tpu.dot_dimension_numbers<[1], [0], [0], [1], [0, 0, 1, 1], [], []>} : vector<8x32xbf16>, vector<32x64xbf16>, vector<8x64xf32> -> vector<8x64xf32>
    %c0_66 = arith.constant 0 : index
    %c0_67 = arith.constant 0 : index
    %c0_68 = arith.constant 0 : index
    %150 = vector.load %arg14[%c0_66, %c0_67, %c0_68] : memref<2x1x64xf32, #tpu.memory_space<vmem>>, vector<1x1x64xf32>
    %151 = vector.shape_cast %150 : vector<1x1x64xf32> to vector<1x64xf32>
    %152 = vector.broadcast %151 : vector<1x64xf32> to vector<8x64xf32>
    %153 = arith.addf %149, %152 : vector<8x64xf32>
    %cst_69 = arith.constant 0.000000e+00 : f32
    %154 = vector.broadcast %cst_69 : f32 to vector<8x64xf32>
    %155 = arith.maximumf %153, %154 : vector<8x64xf32>
    %156 = arith.truncf %155 : vector<8x64xf32> to vector<8x64xbf16>
    %c0_70 = arith.constant 0 : index
    %c0_71 = arith.constant 0 : index
    %c0_72 = arith.constant 0 : index
    %157 = vector.load %arg15[%c0_70, %c0_71, %c0_72] : memref<2x64x32xbf16, #tpu.memory_space<vmem>>, vector<1x64x32xbf16>
    %158 = vector.shape_cast %157 : vector<1x64x32xbf16> to vector<64x32xbf16>
    %cst_73 = arith.constant dense<0.000000e+00> : vector<8x32xf32>
    %159 = tpu.matmul %156, %158, %cst_73 {dimension_numbers = #tpu.dot_dimension_numbers<[1], [0], [0], [1], [0, 0, 1, 1], [], []>} : vector<8x64xbf16>, vector<64x32xbf16>, vector<8x32xf32> -> vector<8x32xf32>
    %c0_74 = arith.constant 0 : index
    %c0_75 = arith.constant 0 : index
    %c0_76 = arith.constant 0 : index
    %160 = vector.load %arg16[%c0_74, %c0_75, %c0_76] : memref<2x1x32xf32, #tpu.memory_space<vmem>>, vector<1x1x32xf32>
    %161 = vector.shape_cast %160 : vector<1x1x32xf32> to vector<1x32xf32>
    %162 = vector.broadcast %161 : vector<1x32xf32> to vector<8x32xf32>
    %163 = arith.addf %159, %162 : vector<8x32xf32>
    %164 = arith.addf %145, %163 : vector<8x32xf32>
    %c0_77 = arith.constant 0 : index
    %c0_78 = arith.constant 0 : index
    %c0_79 = arith.constant 0 : index
    %165 = vector.load %arg17[%c0_77, %c0_78, %c0_79] : memref<2x1x32xf32, #tpu.memory_space<vmem>>, vector<1x1x32xf32>
    %166 = vector.shape_cast %165 : vector<1x1x32xf32> to vector<1x32xf32>
    %c0_80 = arith.constant 0 : index
    %c0_81 = arith.constant 0 : index
    %c0_82 = arith.constant 0 : index
    %167 = vector.load %arg18[%c0_80, %c0_81, %c0_82] : memref<2x1x32xf32, #tpu.memory_space<vmem>>, vector<1x1x32xf32>
    %168 = vector.shape_cast %167 : vector<1x1x32xf32> to vector<1x32xf32>
    %cst_83 = arith.constant dense<0.000000e+00> : vector<8xf32>
    %169 = vector.multi_reduction <add>, %164, %cst_83 [1] : vector<8x32xf32> to vector<8xf32>
    %170 = vector.shape_cast %169 : vector<8xf32> to vector<8x1xf32>
    %cst_84 = arith.constant 3.200000e+01 : f32
    %171 = vector.broadcast %cst_84 : f32 to vector<8x1xf32>
    %172 = arith.divf %170, %171 : vector<8x1xf32>
    %173 = vector.broadcast %172 : vector<8x1xf32> to vector<8x32xf32>
    %174 = arith.subf %164, %173 : vector<8x32xf32>
    %175 = arith.mulf %174, %174 : vector<8x32xf32>
    %cst_85 = arith.constant dense<0.000000e+00> : vector<8xf32>
    %176 = vector.multi_reduction <add>, %175, %cst_85 [1] : vector<8x32xf32> to vector<8xf32>
    %177 = vector.shape_cast %176 : vector<8xf32> to vector<8x1xf32>
    %cst_86 = arith.constant 3.200000e+01 : f32
    %178 = vector.broadcast %cst_86 : f32 to vector<8x1xf32>
    %179 = arith.divf %177, %178 : vector<8x1xf32>
    %180 = vector.broadcast %172 : vector<8x1xf32> to vector<8x32xf32>
    %181 = arith.subf %164, %180 : vector<8x32xf32>
    %cst_87 = arith.constant 9.99999974E-6 : f32
    %182 = vector.broadcast %cst_87 : f32 to vector<8x1xf32>
    %183 = arith.addf %179, %182 : vector<8x1xf32>
    %184 = math.rsqrt %183 : vector<8x1xf32>
    %185 = vector.broadcast %184 : vector<8x1xf32> to vector<8x32xf32>
    %186 = arith.mulf %181, %185 : vector<8x32xf32>
    %187 = vector.broadcast %166 : vector<1x32xf32> to vector<8x32xf32>
    %188 = arith.mulf %186, %187 : vector<8x32xf32>
    %189 = vector.broadcast %168 : vector<1x32xf32> to vector<8x32xf32>
    %190 = arith.addf %188, %189 : vector<8x32xf32>
    %191 = vector.shape_cast %190 : vector<8x32xf32> to vector<1x8x32xf32>
    %c1 = arith.constant 1 : index
    %c0_88 = arith.constant 0 : index
    %c0_89 = arith.constant 0 : index
    %c0_90 = arith.constant 0 : index
    %192 = vector.load %arg3[%c1, %c0_88, %c0_89, %c0_90] : memref<2x36x32x8xbf16, #tpu.memory_space<vmem>>, vector<1x36x32x8xbf16>
    %193 = vector.shape_cast %192 : vector<1x36x32x8xbf16> to vector<36x32x8xbf16>
    %c1_91 = arith.constant 1 : index
    %c0_92 = arith.constant 0 : index
    %c0_93 = arith.constant 0 : index
    %c0_94 = arith.constant 0 : index
    %194 = vector.load %arg4[%c1_91, %c0_92, %c0_93, %c0_94] : memref<2x36x1x8xf32, #tpu.memory_space<vmem>>, vector<1x36x1x8xf32>
    %195 = vector.shape_cast %194 : vector<1x36x1x8xf32> to vector<36x1x8xf32>
    %c1_95 = arith.constant 1 : index
    %c0_96 = arith.constant 0 : index
    %c0_97 = arith.constant 0 : index
    %c0_98 = arith.constant 0 : index
    %196 = vector.load %arg5[%c1_95, %c0_96, %c0_97, %c0_98] : memref<2x12x8x64xbf16, #tpu.memory_space<vmem>>, vector<1x12x8x64xbf16>
    %197 = vector.shape_cast %196 : vector<1x12x8x64xbf16> to vector<12x8x64xbf16>
    %c1_99 = arith.constant 1 : index
    %c0_100 = arith.constant 0 : index
    %c0_101 = arith.constant 0 : index
    %c0_102 = arith.constant 0 : index
    %198 = vector.load %arg2[%c1_99, %c0_100, %c0_101, %c0_102] : memref<2x12x8x8xf32, #tpu.memory_space<vmem>>, vector<1x12x8x8xf32>
    %199 = vector.shape_cast %198 : vector<1x12x8x8xf32> to vector<12x8x8xf32>
    %200 = vector.shape_cast %191 : vector<1x8x32xf32> to vector<8x32xf32>
    %201 = arith.truncf %200 : vector<8x32xf32> to vector<8x32xbf16>
    %202 = vector.shape_cast %201 : vector<8x32xbf16> to vector<1x8x32xbf16>
    %203 = vector.broadcast %202 : vector<1x8x32xbf16> to vector<36x8x32xbf16>
    %cst_103 = arith.constant dense<0.000000e+00> : vector<36x8x8xf32>
    %204 = tpu.matmul %203, %193, %cst_103 {dimension_numbers = #tpu.dot_dimension_numbers<[2], [1], [1], [2], [0, 0, 0, 1, 1, 2], [0], [0]>} : vector<36x8x32xbf16>, vector<36x32x8xbf16>, vector<36x8x8xf32> -> vector<36x8x8xf32>
    %205 = vector.broadcast %195 : vector<36x1x8xf32> to vector<36x8x8xf32>
    %206 = arith.addf %204, %205 : vector<36x8x8xf32>
    %207 = vector.extract_strided_slice %206 {offsets = [0, 0, 0], sizes = [12, 8, 8], strides = [1, 1, 1]} : vector<36x8x8xf32> to vector<12x8x8xf32>
    %208 = arith.truncf %207 : vector<12x8x8xf32> to vector<12x8x8xbf16>
    %209 = vector.extract_strided_slice %206 {offsets = [12, 0, 0], sizes = [12, 8, 8], strides = [1, 1, 1]} : vector<36x8x8xf32> to vector<12x8x8xf32>
    %210 = arith.truncf %209 : vector<12x8x8xf32> to vector<12x8x8xbf16>
    %211 = vector.extract_strided_slice %206 {offsets = [24, 0, 0], sizes = [12, 8, 8], strides = [1, 1, 1]} : vector<36x8x8xf32> to vector<12x8x8xf32>
    %212 = arith.truncf %211 : vector<12x8x8xf32> to vector<12x8x8xbf16>
    %cst_104 = arith.constant dense<0.000000e+00> : vector<12x8x8xf32>
    %213 = tpu.matmul %208, %210, %cst_104 {dimension_numbers = #tpu.dot_dimension_numbers<[2], [2], [1], [1], [0, 0, 0, 1, 1, 1], [0], [0]>} : vector<12x8x8xbf16>, vector<12x8x8xbf16>, vector<12x8x8xf32> -> vector<12x8x8xf32>
    %214 = arith.mulf %213, %199 : vector<12x8x8xf32>
    %cst_105 = arith.constant dense<0xFF800000> : vector<12x8xf32>
    %215 = vector.multi_reduction <maximumf>, %214, %cst_105 [2] : vector<12x8x8xf32> to vector<12x8xf32>
    %216 = vector.shape_cast %215 : vector<12x8xf32> to vector<12x8x1xf32>
    %217 = vector.broadcast %216 : vector<12x8x1xf32> to vector<12x8x8xf32>
    %218 = arith.subf %214, %217 : vector<12x8x8xf32>
    %219 = math.exp %218 : vector<12x8x8xf32>
    %cst_106 = arith.constant dense<0.000000e+00> : vector<12x8xf32>
    %220 = vector.multi_reduction <add>, %219, %cst_106 [2] : vector<12x8x8xf32> to vector<12x8xf32>
    %221 = vector.shape_cast %220 : vector<12x8xf32> to vector<12x8x1xf32>
    %222 = tpu.reciprocal %221 {approx = true} : vector<12x8x1xf32> -> vector<12x8x1xf32>
    %223 = vector.broadcast %222 : vector<12x8x1xf32> to vector<12x8x8xf32>
    %224 = arith.mulf %219, %223 : vector<12x8x8xf32>
    %225 = vector.shape_cast %224 : vector<12x8x8xf32> to vector<3x4x8x8xf32>
    %c0_107 = arith.constant 0 : index
    %c1_108 = arith.constant 1 : index
    %c0_109 = arith.constant 0 : index
    %c0_110 = arith.constant 0 : index
    %c0_111 = arith.constant 0 : index
    %c0_112 = arith.constant 0 : index
    %226 = vector.load %arg22[%c0_107, %c1_108, %c0_109, %c0_110, %c0_111, %c0_112] : memref<1x2x3x4x8x8xf32, #tpu.memory_space<vmem>>, vector<1x1x3x4x8x8xf32>
    %227 = vector.shape_cast %226 : vector<1x1x3x4x8x8xf32> to vector<3x4x8x8xf32>
    %228 = vector.shape_cast %225 : vector<3x4x8x8xf32> to vector<1x1x3x4x8x8xf32>
    tpu.vector_store %arg22[%c0_107, %c1_108, %c0_109, %c0_110, %c0_111, %c0_112], %228 {strides = array<i32>} : memref<1x2x3x4x8x8xf32, #tpu.memory_space<vmem>>, vector<1x1x3x4x8x8xf32>,
    %229 = arith.truncf %224 : vector<12x8x8xf32> to vector<12x8x8xbf16>
    %cst_113 = arith.constant dense<0.000000e+00> : vector<12x8x8xf32>
    %230 = tpu.matmul %229, %212, %cst_113 {dimension_numbers = #tpu.dot_dimension_numbers<[2], [1], [1], [2], [0, 0, 0, 1, 1, 2], [0], [0]>} : vector<12x8x8xbf16>, vector<12x8x8xbf16>, vector<12x8x8xf32> -> vector<12x8x8xf32>
    %231 = arith.truncf %230 : vector<12x8x8xf32> to vector<12x8x8xbf16>
    %cst_114 = arith.constant dense<0.000000e+00> : vector<12x8x64xf32>
    %232 = tpu.matmul %231, %197, %cst_114 {dimension_numbers = #tpu.dot_dimension_numbers<[2], [1], [1], [2], [0, 0, 0, 1, 1, 2], [0], [0]>} : vector<12x8x8xbf16>, vector<12x8x64xbf16>, vector<12x8x64xf32> -> vector<12x8x64xf32>
    %233 = vector.extract_strided_slice %232 {offsets = [0, 0, 0], sizes = [1, 8, 64], strides = [1, 1, 1]} : vector<12x8x64xf32> to vector<1x8x64xf32>
    %234 = vector.shape_cast %233 : vector<1x8x64xf32> to vector<8x64xf32>
    %235 = vector.extract_strided_slice %232 {offsets = [1, 0, 0], sizes = [1, 8, 64], strides = [1, 1, 1]} : vector<12x8x64xf32> to vector<1x8x64xf32>
    %236 = vector.shape_cast %235 : vector<1x8x64xf32> to vector<8x64xf32>
    %237 = arith.addf %234, %236 : vector<8x64xf32>
    %238 = vector.extract_strided_slice %232 {offsets = [2, 0, 0], sizes = [1, 8, 64], strides = [1, 1, 1]} : vector<12x8x64xf32> to vector<1x8x64xf32>
    %239 = vector.shape_cast %238 : vector<1x8x64xf32> to vector<8x64xf32>
    %240 = arith.addf %237, %239 : vector<8x64xf32>
    %241 = vector.extract_strided_slice %232 {offsets = [3, 0, 0], sizes = [1, 8, 64], strides = [1, 1, 1]} : vector<12x8x64xf32> to vector<1x8x64xf32>
    %242 = vector.shape_cast %241 : vector<1x8x64xf32> to vector<8x64xf32>
    %243 = arith.addf %240, %242 : vector<8x64xf32>
    %244 = vector.extract_strided_slice %232 {offsets = [4, 0, 0], sizes = [1, 8, 64], strides = [1, 1, 1]} : vector<12x8x64xf32> to vector<1x8x64xf32>
    %245 = vector.shape_cast %244 : vector<1x8x64xf32> to vector<8x64xf32>
    %246 = arith.addf %243, %245 : vector<8x64xf32>
    %247 = vector.extract_strided_slice %232 {offsets = [5, 0, 0], sizes = [1, 8, 64], strides = [1, 1, 1]} : vector<12x8x64xf32> to vector<1x8x64xf32>
    %248 = vector.shape_cast %247 : vector<1x8x64xf32> to vector<8x64xf32>
    %249 = arith.addf %246, %248 : vector<8x64xf32>
    %250 = vector.extract_strided_slice %232 {offsets = [6, 0, 0], sizes = [1, 8, 64], strides = [1, 1, 1]} : vector<12x8x64xf32> to vector<1x8x64xf32>
    %251 = vector.shape_cast %250 : vector<1x8x64xf32> to vector<8x64xf32>
    %252 = arith.addf %249, %251 : vector<8x64xf32>
    %253 = vector.extract_strided_slice %232 {offsets = [7, 0, 0], sizes = [1, 8, 64], strides = [1, 1, 1]} : vector<12x8x64xf32> to vector<1x8x64xf32>
    %254 = vector.shape_cast %253 : vector<1x8x64xf32> to vector<8x64xf32>
    %255 = arith.addf %252, %254 : vector<8x64xf32>
    %256 = vector.extract_strided_slice %232 {offsets = [8, 0, 0], sizes = [1, 8, 64], strides = [1, 1, 1]} : vector<12x8x64xf32> to vector<1x8x64xf32>
    %257 = vector.shape_cast %256 : vector<1x8x64xf32> to vector<8x64xf32>
    %258 = arith.addf %255, %257 : vector<8x64xf32>
    %259 = vector.extract_strided_slice %232 {offsets = [9, 0, 0], sizes = [1, 8, 64], strides = [1, 1, 1]} : vector<12x8x64xf32> to vector<1x8x64xf32>
    %260 = vector.shape_cast %259 : vector<1x8x64xf32> to vector<8x64xf32>
    %261 = arith.addf %258, %260 : vector<8x64xf32>
    %262 = vector.extract_strided_slice %232 {offsets = [10, 0, 0], sizes = [1, 8, 64], strides = [1, 1, 1]} : vector<12x8x64xf32> to vector<1x8x64xf32>
    %263 = vector.shape_cast %262 : vector<1x8x64xf32> to vector<8x64xf32>
    %264 = arith.addf %261, %263 : vector<8x64xf32>
    %265 = vector.extract_strided_slice %232 {offsets = [11, 0, 0], sizes = [1, 8, 64], strides = [1, 1, 1]} : vector<12x8x64xf32> to vector<1x8x64xf32>
    %266 = vector.shape_cast %265 : vector<1x8x64xf32> to vector<8x64xf32>
    %267 = arith.addf %264, %266 : vector<8x64xf32>
    %c1_115 = arith.constant 1 : index
    %c0_116 = arith.constant 0 : index
    %c0_117 = arith.constant 0 : index
    %268 = vector.load %arg6[%c1_115, %c0_116, %c0_117] : memref<2x1x64xf32, #tpu.memory_space<vmem>>, vector<1x1x64xf32>
    %269 = vector.shape_cast %268 : vector<1x1x64xf32> to vector<1x64xf32>
    %270 = vector.broadcast %269 : vector<1x64xf32> to vector<8x64xf32>
    %271 = arith.addf %267, %270 : vector<8x64xf32>
    %c1_118 = arith.constant 1 : index
    %c0_119 = arith.constant 0 : index
    %c0_120 = arith.constant 0 : index
    %272 = vector.load %arg7[%c1_118, %c0_119, %c0_120] : memref<2x1x64xf32, #tpu.memory_space<vmem>>, vector<1x1x64xf32>
    %273 = vector.shape_cast %272 : vector<1x1x64xf32> to vector<1x64xf32>
    %c1_121 = arith.constant 1 : index
    %c0_122 = arith.constant 0 : index
    %c0_123 = arith.constant 0 : index
    %274 = vector.load %arg8[%c1_121, %c0_122, %c0_123] : memref<2x1x64xf32, #tpu.memory_space<vmem>>, vector<1x1x64xf32>
    %275 = vector.shape_cast %274 : vector<1x1x64xf32> to vector<1x64xf32>
    %cst_124 = arith.constant dense<0.000000e+00> : vector<8xf32>
    %276 = vector.multi_reduction <add>, %271, %cst_124 [1] : vector<8x64xf32> to vector<8xf32>
    %277 = vector.shape_cast %276 : vector<8xf32> to vector<8x1xf32>
    %cst_125 = arith.constant 6.400000e+01 : f32
    %278 = vector.broadcast %cst_125 : f32 to vector<8x1xf32>
    %279 = arith.divf %277, %278 : vector<8x1xf32>
    %280 = vector.broadcast %279 : vector<8x1xf32> to vector<8x64xf32>
    %281 = arith.subf %271, %280 : vector<8x64xf32>
    %282 = arith.mulf %281, %281 : vector<8x64xf32>
    %cst_126 = arith.constant dense<0.000000e+00> : vector<8xf32>
    %283 = vector.multi_reduction <add>, %282, %cst_126 [1] : vector<8x64xf32> to vector<8xf32>
    %284 = vector.shape_cast %283 : vector<8xf32> to vector<8x1xf32>
    %cst_127 = arith.constant 6.400000e+01 : f32
    %285 = vector.broadcast %cst_127 : f32 to vector<8x1xf32>
    %286 = arith.divf %284, %285 : vector<8x1xf32>
    %287 = vector.broadcast %279 : vector<8x1xf32> to vector<8x64xf32>
    %288 = arith.subf %271, %287 : vector<8x64xf32>
    %cst_128 = arith.constant 9.99999974E-6 : f32
    %289 = vector.broadcast %cst_128 : f32 to vector<8x1xf32>
    %290 = arith.addf %286, %289 : vector<8x1xf32>
    %291 = math.rsqrt %290 : vector<8x1xf32>
    %292 = vector.broadcast %291 : vector<8x1xf32> to vector<8x64xf32>
    %293 = arith.mulf %288, %292 : vector<8x64xf32>
    %294 = vector.broadcast %273 : vector<1x64xf32> to vector<8x64xf32>
    %295 = arith.mulf %293, %294 : vector<8x64xf32>
    %296 = vector.broadcast %275 : vector<1x64xf32> to vector<8x64xf32>
    %297 = arith.addf %295, %296 : vector<8x64xf32>
    %cst_129 = arith.constant 0.000000e+00 : f32
    %298 = vector.broadcast %cst_129 : f32 to vector<8x64xf32>
    %299 = arith.maximumf %297, %298 : vector<8x64xf32>
    %300 = arith.truncf %299 : vector<8x64xf32> to vector<8x64xbf16>
    %c1_130 = arith.constant 1 : index
    %c0_131 = arith.constant 0 : index
    %c0_132 = arith.constant 0 : index
    %301 = vector.load %arg9[%c1_130, %c0_131, %c0_132] : memref<2x64x32xbf16, #tpu.memory_space<vmem>>, vector<1x64x32xbf16>
    %302 = vector.shape_cast %301 : vector<1x64x32xbf16> to vector<64x32xbf16>
    %cst_133 = arith.constant dense<0.000000e+00> : vector<8x32xf32>
    %303 = tpu.matmul %300, %302, %cst_133 {dimension_numbers = #tpu.dot_dimension_numbers<[1], [0], [0], [1], [0, 0, 1, 1], [], []>} : vector<8x64xbf16>, vector<64x32xbf16>, vector<8x32xf32> -> vector<8x32xf32>
    %c1_134 = arith.constant 1 : index
    %c0_135 = arith.constant 0 : index
    %c0_136 = arith.constant 0 : index
    %304 = vector.load %arg10[%c1_134, %c0_135, %c0_136] : memref<2x1x32xf32, #tpu.memory_space<vmem>>, vector<1x1x32xf32>
    %305 = vector.shape_cast %304 : vector<1x1x32xf32> to vector<1x32xf32>
    %306 = vector.broadcast %305 : vector<1x32xf32> to vector<8x32xf32>
    %307 = arith.addf %303, %306 : vector<8x32xf32>
    %308 = arith.addf %190, %307 : vector<8x32xf32>
    %c1_137 = arith.constant 1 : index
    %c0_138 = arith.constant 0 : index
    %c0_139 = arith.constant 0 : index
    %309 = vector.load %arg11[%c1_137, %c0_138, %c0_139] : memref<2x1x32xf32, #tpu.memory_space<vmem>>, vector<1x1x32xf32>
    %310 = vector.shape_cast %309 : vector<1x1x32xf32> to vector<1x32xf32>
    %c1_140 = arith.constant 1 : index
    %c0_141 = arith.constant 0 : index
    %c0_142 = arith.constant 0 : index
    %311 = vector.load %arg12[%c1_140, %c0_141, %c0_142] : memref<2x1x32xf32, #tpu.memory_space<vmem>>, vector<1x1x32xf32>
    %312 = vector.shape_cast %311 : vector<1x1x32xf32> to vector<1x32xf32>
    %cst_143 = arith.constant dense<0.000000e+00> : vector<8xf32>
    %313 = vector.multi_reduction <add>, %308, %cst_143 [1] : vector<8x32xf32> to vector<8xf32>
    %314 = vector.shape_cast %313 : vector<8xf32> to vector<8x1xf32>
    %cst_144 = arith.constant 3.200000e+01 : f32
    %315 = vector.broadcast %cst_144 : f32 to vector<8x1xf32>
    %316 = arith.divf %314, %315 : vector<8x1xf32>
    %317 = vector.broadcast %316 : vector<8x1xf32> to vector<8x32xf32>
    %318 = arith.subf %308, %317 : vector<8x32xf32>
    %319 = arith.mulf %318, %318 : vector<8x32xf32>
    %cst_145 = arith.constant dense<0.000000e+00> : vector<8xf32>
    %320 = vector.multi_reduction <add>, %319, %cst_145 [1] : vector<8x32xf32> to vector<8xf32>
    %321 = vector.shape_cast %320 : vector<8xf32> to vector<8x1xf32>
    %cst_146 = arith.constant 3.200000e+01 : f32
    %322 = vector.broadcast %cst_146 : f32 to vector<8x1xf32>
    %323 = arith.divf %321, %322 : vector<8x1xf32>
    %324 = vector.broadcast %316 : vector<8x1xf32> to vector<8x32xf32>
    %325 = arith.subf %308, %324 : vector<8x32xf32>
    %cst_147 = arith.constant 9.99999974E-6 : f32
    %326 = vector.broadcast %cst_147 : f32 to vector<8x1xf32>
    %327 = arith.addf %323, %326 : vector<8x1xf32>
    %328 = math.rsqrt %327 : vector<8x1xf32>
    %329 = vector.broadcast %328 : vector<8x1xf32> to vector<8x32xf32>
    %330 = arith.mulf %325, %329 : vector<8x32xf32>
    %331 = vector.broadcast %310 : vector<1x32xf32> to vector<8x32xf32>
    %332 = arith.mulf %330, %331 : vector<8x32xf32>
    %333 = vector.broadcast %312 : vector<1x32xf32> to vector<8x32xf32>
    %334 = arith.addf %332, %333 : vector<8x32xf32>
    %335 = arith.truncf %334 : vector<8x32xf32> to vector<8x32xbf16>
    %c1_148 = arith.constant 1 : index
    %c0_149 = arith.constant 0 : index
    %c0_150 = arith.constant 0 : index
    %336 = vector.load %arg13[%c1_148, %c0_149, %c0_150] : memref<2x32x64xbf16, #tpu.memory_space<vmem>>, vector<1x32x64xbf16>
    %337 = vector.shape_cast %336 : vector<1x32x64xbf16> to vector<32x64xbf16>
    %cst_151 = arith.constant dense<0.000000e+00> : vector<8x64xf32>
    %338 = tpu.matmul %335, %337, %cst_151 {dimension_numbers = #tpu.dot_dimension_numbers<[1], [0], [0], [1], [0, 0, 1, 1], [], []>} : vector<8x32xbf16>, vector<32x64xbf16>, vector<8x64xf32> -> vector<8x64xf32>
    %c1_152 = arith.constant 1 : index
    %c0_153 = arith.constant 0 : index
    %c0_154 = arith.constant 0 : index
    %339 = vector.load %arg14[%c1_152, %c0_153, %c0_154] : memref<2x1x64xf32, #tpu.memory_space<vmem>>, vector<1x1x64xf32>
    %340 = vector.shape_cast %339 : vector<1x1x64xf32> to vector<1x64xf32>
    %341 = vector.broadcast %340 : vector<1x64xf32> to vector<8x64xf32>
    %342 = arith.addf %338, %341 : vector<8x64xf32>
    %cst_155 = arith.constant 0.000000e+00 : f32
    %343 = vector.broadcast %cst_155 : f32 to vector<8x64xf32>
    %344 = arith.maximumf %342, %343 : vector<8x64xf32>
    %345 = arith.truncf %344 : vector<8x64xf32> to vector<8x64xbf16>
    %c1_156 = arith.constant 1 : index
    %c0_157 = arith.constant 0 : index
    %c0_158 = arith.constant 0 : index
    %346 = vector.load %arg15[%c1_156, %c0_157, %c0_158] : memref<2x64x32xbf16, #tpu.memory_space<vmem>>, vector<1x64x32xbf16>
    %347 = vector.shape_cast %346 : vector<1x64x32xbf16> to vector<64x32xbf16>
    %cst_159 = arith.constant dense<0.000000e+00> : vector<8x32xf32>
    %348 = tpu.matmul %345, %347, %cst_159 {dimension_numbers = #tpu.dot_dimension_numbers<[1], [0], [0], [1], [0, 0, 1, 1], [], []>} : vector<8x64xbf16>, vector<64x32xbf16>, vector<8x32xf32> -> vector<8x32xf32>
    %c1_160 = arith.constant 1 : index
    %c0_161 = arith.constant 0 : index
    %c0_162 = arith.constant 0 : index
    %349 = vector.load %arg16[%c1_160, %c0_161, %c0_162] : memref<2x1x32xf32, #tpu.memory_space<vmem>>, vector<1x1x32xf32>
    %350 = vector.shape_cast %349 : vector<1x1x32xf32> to vector<1x32xf32>
    %351 = vector.broadcast %350 : vector<1x32xf32> to vector<8x32xf32>
    %352 = arith.addf %348, %351 : vector<8x32xf32>
    %353 = arith.addf %334, %352 : vector<8x32xf32>
    %c1_163 = arith.constant 1 : index
    %c0_164 = arith.constant 0 : index
    %c0_165 = arith.constant 0 : index
    %354 = vector.load %arg17[%c1_163, %c0_164, %c0_165] : memref<2x1x32xf32, #tpu.memory_space<vmem>>, vector<1x1x32xf32>
    %355 = vector.shape_cast %354 : vector<1x1x32xf32> to vector<1x32xf32>
    %c1_166 = arith.constant 1 : index
    %c0_167 = arith.constant 0 : index
    %c0_168 = arith.constant 0 : index
    %356 = vector.load %arg18[%c1_166, %c0_167, %c0_168] : memref<2x1x32xf32, #tpu.memory_space<vmem>>, vector<1x1x32xf32>
    %357 = vector.shape_cast %356 : vector<1x1x32xf32> to vector<1x32xf32>
    %cst_169 = arith.constant dense<0.000000e+00> : vector<8xf32>
    %358 = vector.multi_reduction <add>, %353, %cst_169 [1] : vector<8x32xf32> to vector<8xf32>
    %359 = vector.shape_cast %358 : vector<8xf32> to vector<8x1xf32>
    %cst_170 = arith.constant 3.200000e+01 : f32
    %360 = vector.broadcast %cst_170 : f32 to vector<8x1xf32>
    %361 = arith.divf %359, %360 : vector<8x1xf32>
    %362 = vector.broadcast %361 : vector<8x1xf32> to vector<8x32xf32>
    %363 = arith.subf %353, %362 : vector<8x32xf32>
    %364 = arith.mulf %363, %363 : vector<8x32xf32>
    %cst_171 = arith.constant dense<0.000000e+00> : vector<8xf32>
    %365 = vector.multi_reduction <add>, %364, %cst_171 [1] : vector<8x32xf32> to vector<8xf32>
    %366 = vector.shape_cast %365 : vector<8xf32> to vector<8x1xf32>
    %cst_172 = arith.constant 3.200000e+01 : f32
    %367 = vector.broadcast %cst_172 : f32 to vector<8x1xf32>
    %368 = arith.divf %366, %367 : vector<8x1xf32>
    %369 = vector.broadcast %361 : vector<8x1xf32> to vector<8x32xf32>
    %370 = arith.subf %353, %369 : vector<8x32xf32>
    %cst_173 = arith.constant 9.99999974E-6 : f32
    %371 = vector.broadcast %cst_173 : f32 to vector<8x1xf32>
    %372 = arith.addf %368, %371 : vector<8x1xf32>
    %373 = math.rsqrt %372 : vector<8x1xf32>
    %374 = vector.broadcast %373 : vector<8x1xf32> to vector<8x32xf32>
    %375 = arith.mulf %370, %374 : vector<8x32xf32>
    %376 = vector.broadcast %355 : vector<1x32xf32> to vector<8x32xf32>
    %377 = arith.mulf %375, %376 : vector<8x32xf32>
    %378 = vector.broadcast %357 : vector<1x32xf32> to vector<8x32xf32>
    %379 = arith.addf %377, %378 : vector<8x32xf32>
    %380 = vector.shape_cast %379 : vector<8x32xf32> to vector<1x8x32xf32>
    %381 = vector.shape_cast %380 : vector<1x8x32xf32> to vector<8x32xf32>
    %cst_174 = arith.constant dense<0.000000e+00> : vector<32xf32>
    %382 = vector.multi_reduction <add>, %381, %cst_174 [0] : vector<8x32xf32> to vector<32xf32>
    %383 = vector.shape_cast %382 : vector<32xf32> to vector<1x32xf32>
    %cst_175 = arith.constant 8.000000e+00 : f32
    %384 = vector.broadcast %cst_175 : f32 to vector<1x32xf32>
    %385 = arith.divf %383, %384 : vector<1x32xf32>
    %386 = arith.truncf %385 : vector<1x32xf32> to vector<1x32xbf16>
    %c0_176 = arith.constant 0 : index
    %c0_177 = arith.constant 0 : index
    %387 = vector.load %arg19[%c0_176, %c0_177] : memref<32x4xbf16, #tpu.memory_space<vmem>>, vector<32x4xbf16>
    %cst_178 = arith.constant dense<0.000000e+00> : vector<1x4xf32>
    %388 = tpu.matmul %386, %387, %cst_178 {dimension_numbers = #tpu.dot_dimension_numbers<[1], [0], [0], [1], [0, 0, 1, 1], [], []>} : vector<1x32xbf16>, vector<32x4xbf16>, vector<1x4xf32> -> vector<1x4xf32>
    %c0_179 = arith.constant 0 : index
    %c0_180 = arith.constant 0 : index
    %389 = vector.load %arg20[%c0_179, %c0_180] : memref<1x4xf32, #tpu.memory_space<vmem>>, vector<1x4xf32>
    %390 = arith.addf %388, %389 : vector<1x4xf32>
    %391 = vector.shape_cast %390 : vector<1x4xf32> to vector<1x1x4xf32>
    %c0_181 = arith.constant 0 : index
    %c0_182 = arith.constant 0 : index
    %c0_183 = arith.constant 0 : index
    %392 = vector.load %arg21[%c0_181, %c0_182, %c0_183] : memref<1x1x4xf32, #tpu.memory_space<vmem>>, vector<1x1x4xf32>
    tpu.vector_store %arg21[%c0_181, %c0_182, %c0_183], %391 {strides = array<i32>} : memref<1x1x4xf32, #tpu.memory_space<vmem>>, vector<1x1x4xf32>,
    return
  }
  func.func @transform_0(%arg0: i32) -> (i32, i32, i32) {
    %c0_i32 = arith.constant 0 : i32
    %c0_i32_0 = arith.constant 0 : i32
    %c0_i32_1 = arith.constant 0 : i32
    return %arg0, %c0_i32, %c0_i32_0 : i32, i32, i32
  }
  func.func @transform_1(%arg0: i32) -> (i32, i32, i32, i32) {
    %c0_i32 = arith.constant 0 : i32
    %c0_i32_0 = arith.constant 0 : i32
    %c0_i32_1 = arith.constant 0 : i32
    %c0_i32_2 = arith.constant 0 : i32
    %c0_i32_3 = arith.constant 0 : i32
    return %c0_i32, %c0_i32_0, %c0_i32_1, %c0_i32_2 : i32, i32, i32, i32
  }
  func.func @transform_2(%arg0: i32) -> (i32, i32, i32, i32) {
    %c0_i32 = arith.constant 0 : i32
    %c0_i32_0 = arith.constant 0 : i32
    %c0_i32_1 = arith.constant 0 : i32
    %c0_i32_2 = arith.constant 0 : i32
    %c0_i32_3 = arith.constant 0 : i32
    return %c0_i32, %c0_i32_0, %c0_i32_1, %c0_i32_2 : i32, i32, i32, i32
  }
  func.func @transform_3(%arg0: i32) -> (i32, i32, i32, i32) {
    %c0_i32 = arith.constant 0 : i32
    %c0_i32_0 = arith.constant 0 : i32
    %c0_i32_1 = arith.constant 0 : i32
    %c0_i32_2 = arith.constant 0 : i32
    %c0_i32_3 = arith.constant 0 : i32
    return %c0_i32, %c0_i32_0, %c0_i32_1, %c0_i32_2 : i32, i32, i32, i32
  }
  func.func @transform_4(%arg0: i32) -> (i32, i32, i32, i32) {
    %c0_i32 = arith.constant 0 : i32
    %c0_i32_0 = arith.constant 0 : i32
    %c0_i32_1 = arith.constant 0 : i32
    %c0_i32_2 = arith.constant 0 : i32
    %c0_i32_3 = arith.constant 0 : i32
    return %c0_i32, %c0_i32_0, %c0_i32_1, %c0_i32_2 : i32, i32, i32, i32
  }
  func.func @transform_5(%arg0: i32) -> (i32, i32, i32) {
    %c0_i32 = arith.constant 0 : i32
    %c0_i32_0 = arith.constant 0 : i32
    %c0_i32_1 = arith.constant 0 : i32
    %c0_i32_2 = arith.constant 0 : i32
    return %c0_i32, %c0_i32_0, %c0_i32_1 : i32, i32, i32
  }
  func.func @transform_6(%arg0: i32) -> (i32, i32, i32) {
    %c0_i32 = arith.constant 0 : i32
    %c0_i32_0 = arith.constant 0 : i32
    %c0_i32_1 = arith.constant 0 : i32
    %c0_i32_2 = arith.constant 0 : i32
    return %c0_i32, %c0_i32_0, %c0_i32_1 : i32, i32, i32
  }
  func.func @transform_7(%arg0: i32) -> (i32, i32, i32) {
    %c0_i32 = arith.constant 0 : i32
    %c0_i32_0 = arith.constant 0 : i32
    %c0_i32_1 = arith.constant 0 : i32
    %c0_i32_2 = arith.constant 0 : i32
    return %c0_i32, %c0_i32_0, %c0_i32_1 : i32, i32, i32
  }
  func.func @transform_8(%arg0: i32) -> (i32, i32, i32) {
    %c0_i32 = arith.constant 0 : i32
    %c0_i32_0 = arith.constant 0 : i32
    %c0_i32_1 = arith.constant 0 : i32
    %c0_i32_2 = arith.constant 0 : i32
    return %c0_i32, %c0_i32_0, %c0_i32_1 : i32, i32, i32
  }
  func.func @transform_9(%arg0: i32) -> (i32, i32, i32) {
    %c0_i32 = arith.constant 0 : i32
    %c0_i32_0 = arith.constant 0 : i32
    %c0_i32_1 = arith.constant 0 : i32
    %c0_i32_2 = arith.constant 0 : i32
    return %c0_i32, %c0_i32_0, %c0_i32_1 : i32, i32, i32
  }
  func.func @transform_10(%arg0: i32) -> (i32, i32, i32) {
    %c0_i32 = arith.constant 0 : i32
    %c0_i32_0 = arith.constant 0 : i32
    %c0_i32_1 = arith.constant 0 : i32
    %c0_i32_2 = arith.constant 0 : i32
    return %c0_i32, %c0_i32_0, %c0_i32_1 : i32, i32, i32
  }
  func.func @transform_11(%arg0: i32) -> (i32, i32, i32) {
    %c0_i32 = arith.constant 0 : i32
    %c0_i32_0 = arith.constant 0 : i32
    %c0_i32_1 = arith.constant 0 : i32
    %c0_i32_2 = arith.constant 0 : i32
    return %c0_i32, %c0_i32_0, %c0_i32_1 : i32, i32, i32
  }
  func.func @transform_12(%arg0: i32) -> (i32, i32, i32) {
    %c0_i32 = arith.constant 0 : i32
    %c0_i32_0 = arith.constant 0 : i32
    %c0_i32_1 = arith.constant 0 : i32
    %c0_i32_2 = arith.constant 0 : i32
    return %c0_i32, %c0_i32_0, %c0_i32_1 : i32, i32, i32
  }
  func.func @transform_13(%arg0: i32) -> (i32, i32, i32) {
    %c0_i32 = arith.constant 0 : i32
    %c0_i32_0 = arith.constant 0 : i32
    %c0_i32_1 = arith.constant 0 : i32
    %c0_i32_2 = arith.constant 0 : i32
    return %c0_i32, %c0_i32_0, %c0_i32_1 : i32, i32, i32
  }
  func.func @transform_14(%arg0: i32) -> (i32, i32, i32) {
    %c0_i32 = arith.constant 0 : i32
    %c0_i32_0 = arith.constant 0 : i32
    %c0_i32_1 = arith.constant 0 : i32
    %c0_i32_2 = arith.constant 0 : i32
    return %c0_i32, %c0_i32_0, %c0_i32_1 : i32, i32, i32
  }
  func.func @transform_15(%arg0: i32) -> (i32, i32, i32) {
    %c0_i32 = arith.constant 0 : i32
    %c0_i32_0 = arith.constant 0 : i32
    %c0_i32_1 = arith.constant 0 : i32
    %c0_i32_2 = arith.constant 0 : i32
    return %c0_i32, %c0_i32_0, %c0_i32_1 : i32, i32, i32
  }
  func.func @transform_16(%arg0: i32) -> (i32, i32, i32) {
    %c0_i32 = arith.constant 0 : i32
    %c0_i32_0 = arith.constant 0 : i32
    %c0_i32_1 = arith.constant 0 : i32
    %c0_i32_2 = arith.constant 0 : i32
    return %c0_i32, %c0_i32_0, %c0_i32_1 : i32, i32, i32
  }
  func.func @transform_17(%arg0: i32) -> (i32, i32, i32) {
    %c0_i32 = arith.constant 0 : i32
    %c0_i32_0 = arith.constant 0 : i32
    %c0_i32_1 = arith.constant 0 : i32
    %c0_i32_2 = arith.constant 0 : i32
    return %c0_i32, %c0_i32_0, %c0_i32_1 : i32, i32, i32
  }
  func.func @transform_18(%arg0: i32) -> (i32, i32) {
    %c0_i32 = arith.constant 0 : i32
    %c0_i32_0 = arith.constant 0 : i32
    %c0_i32_1 = arith.constant 0 : i32
    return %c0_i32, %c0_i32_0 : i32, i32
  }
  func.func @transform_19(%arg0: i32) -> (i32, i32) {
    %c0_i32 = arith.constant 0 : i32
    %c0_i32_0 = arith.constant 0 : i32
    %c0_i32_1 = arith.constant 0 : i32
    return %c0_i32, %c0_i32_0 : i32, i32
  }
  func.func @transform_20(%arg0: i32) -> (i32, i32, i32) {
    %c0_i32 = arith.constant 0 : i32
    %c0_i32_0 = arith.constant 0 : i32
    %c0_i32_1 = arith.constant 0 : i32
    return %arg0, %c0_i32, %c0_i32_0 : i32, i32, i32
  }
  func.func @transform_21(%arg0: i32) -> (i32, i32, i32, i32, i32, i32) {
    %c0_i32 = arith.constant 0 : i32
    %c0_i32_0 = arith.constant 0 : i32
    %c0_i32_1 = arith.constant 0 : i32
    %c0_i32_2 = arith.constant 0 : i32
    %c0_i32_3 = arith.constant 0 : i32
    %c0_i32_4 = arith.constant 0 : i32
    return %arg0, %c0_i32, %c0_i32_0, %c0_i32_1, %c0_i32_2, %c0_i32_3 : i32, i32, i32, i32, i32, i32
  }
}

</mosaic_0001>

<bundles_post_ra>
// kernel: tpu_custom_call.1
= control target key start
LH: loop header
LB: loop body
LE: loop exit
PB: predicated region body
PF: predicated region fallthrough
CT: control target
= control target key end

     0   :  { %s14906_s0 = inlined_call_operand.vmem [shape: f32[2,8,32], index: 0, kind: input, shape index: {}]   ;;  %s14907_s1 = inlined_call_operand.vmem [shape: f32[2,12,8,8], index: 1, kind: input, shape index: {}]   ;;  %s14908_s2 = inlined_call_operand.vmem [shape: bf16[2,36,32,8], index: 2, kind: input, shape index: {}]   ;;  %s14909_s3 = inlined_call_operand.vmem [shape: f32[2,36,1,8], index: 3, kind: input, shape index: {}]   ;;  %s14910_s4 = inlined_call_operand.vmem [shape: bf16[2,12,8,64], index: 4, kind: input, shape index: {}]   ;;  %s14911_s5 = inlined_call_operand.vmem [shape: f32[2,1,64], index: 5, kind: input, shape index: {}]   ;;  %s14912_s6 = inlined_call_operand.vmem [shape: f32[2,1,64], index: 6, kind: input, shape index: {}]   ;;  %s14913_s7 = inlined_call_operand.vmem [shape: f32[2,1,64], index: 7, kind: input, shape index: {}]   ;;  %s14914_s8 = inlined_call_operand.vmem [shape: bf16[2,64,32], index: 8, kind: input, shape index: {}]   ;;  %s14915_s9 = inlined_call_operand.vmem [shape: f32[2,1,32], index: 9, kind: input, shape index: {}]   ;;  %s14916_s10 = inlined_call_operand.vmem [shape: f32[2,1,32], index: 10, kind: input, shape index: {}]   ;;  %s14917_s11 = inlined_call_operand.vmem [shape: f32[2,1,32], index: 11, kind: input, shape index: {}]   ;;  %s14918_s12 = inlined_call_operand.vmem [shape: bf16[2,32,64], index: 12, kind: input, shape index: {}]   ;;  %s14919_s13 = inlined_call_operand.vmem [shape: f32[2,1,64], index: 13, kind: input, shape index: {}]   ;;  %s14920_s14 = inlined_call_operand.vmem [shape: bf16[2,64,32], index: 14, kind: input, shape index: {}]   ;;  %s14921_s15 = inlined_call_operand.vmem [shape: f32[2,1,32], index: 15, kind: input, shape index: {}]   ;;  %s14922_s16 = inlined_call_operand.vmem [shape: f32[2,1,32], index: 16, kind: input, shape index: {}]   ;;  %s14923_s17 = inlined_call_operand.vmem [shape: f32[2,1,32], index: 17, kind: input, shape index: {}]   ;;  %s14924_s18 = inlined_call_operand.vmem [shape: bf16[32,4], index: 18, kind: input, shape index: {}]   ;;  %s14925_s19 = inlined_call_operand.vmem [shape: f32[1,4], index: 19, kind: input, shape index: {}]   ;;  %s14926_s20 = inlined_call_operand.hbm [shape: f32[2,1,4], index: 20, kind: output, shape index: {0}]   ;;  %s14927_s21 = inlined_call_operand.hbm [shape: f32[2,2,3,4,8,8], index: 21, kind: output, shape index: {1}]  }
   0x1   :  { %14943 = sst [smem:[#allocation15_spill]] %s14906_s0 }
   0x2   :  { %14944 = sst [smem:[#allocation16_spill]] %s14907_s1 }
   0x3   :  { %14945 = sst [smem:[#allocation17_spill]] %s14908_s2 }
   0x4   :  { %14946 = sst [smem:[#allocation18_spill]] %s14909_s3 }
   0x5   :  { %14947 = sst [smem:[#allocation19_spill]] %s14910_s4 }
   0x6   :  { %14948 = sst [smem:[#allocation20_spill]] %s14911_s5 }
   0x7   :  { %14949 = sst [smem:[#allocation21_spill]] %s14912_s6 }
   0x8   :  { %14950 = sst [smem:[#allocation22_spill]] %s14913_s7 }
   0x9   :  { %14951 = sst [smem:[#allocation23_spill]] %s14914_s8 }
   0xa   :  { %14952 = sst [smem:[#allocation24_spill]] %s14915_s9 }
   0xb   :  { %14953 = sst [smem:[#allocation25_spill]] %s14916_s10 }
   0xc   :  { %14954 = sst [smem:[#allocation26_spill]] %s14925_s19 }
   0xd   :  { %14955 = sst [smem:[#allocation27_spill]] %s14926_s20 }
   0xe   :  { %14956 = sst [smem:[#allocation28_spill]] %s14927_s21 }
   0xf   :  { %27 = vsyncpa [#allocation3], 0 }
  0x10   :  { %29 = vsyncpa [#allocation3 + $0x1], 0 }
  0x11   :  { %30 = vsyncpa [#allocation5], 0 }
  0x12   :  { %32 = vsyncpa [#allocation5 + $0x1], 0  ;;  %s12569_s2 = smov 0   ;;  %s12571_s25 = smov 0  }
  0x13   :  { %s12573_s26 = smov 0   ;;  %s12575_s27 = smov 0  }
  0x14 LB: > { %14957 = sst [smem:[#allocation8_spill]] %s12439_s2  ;;  %s12590_s3 = sadd.s32 4294967295, %s12451_s27   ;;  %s12451_s27 = sphi %s12575_s27, %s14985_s27   ;;  %s12447_s26 = sphi %s12573_s26, %s14988_s26   ;;  %s12443_s25 = sphi %s12571_s25, %s14987_s25   ;;  %s12439_s2 = sphi %s12569_s2, %s14986_s2  }
  0x15   : > { %14958 = sst [smem:[#allocation9_spill]] %s12443_s25  ;;  %s9903_s28 = sadd.s32 4294967294, %s12451_s27  }
  0x16   : > { %14959 = sst [smem:[#allocation10_spill]] %s12447_s26  ;;  %s12594_s29 = sadd.s32 1, %s12451_s27  }
  0x17   : > { %14960 = sst [smem:[#allocation11_spill]] %s12451_s27  ;;  %s470_s0 = sadd.s32 1, %s12447_s26 }
  0x18   : > { %14961 = sst [smem:[#allocation12_spill]] %s12594_s29  ;;  %s467_s4 = ssub.s32 %s12451_s27, %s12594_s29 }
  0x19   : > { %p480_p0 = scmp.ne.s32.totalorder %s12447_s26, %s12443_s25  ;;  %p468_p1 = scmp.eq.s32.totalorder %s467_s4, 0 }
  0x1a   : > { %p481_p2 = scmp.eq.s32.totalorder %s12590_s3, 1  ;;  %p486_p3 = scmp.ne.s32.totalorder %s12443_s25, %s12439_s2 }
  0x1b   : > { %p487_p4 = scmp.eq.s32.totalorder %s9903_s28, 1  ;;  %p9906_p7 = scmp.ge.s32.totalorder %s12451_s27, 1 }
  0x1c   : > { %s12605_s30 = scalar_select %p468_p1, %s12447_s26, %s470_s0  }
  0x1d   : > { %p12607_p5 = por %p481_p2, %p480_p0  ;;  %p12611_p6 = por %p487_p4, %p486_p3 }
  0x1e   : > { %14962 = sst [smem:[#allocation13_spill]] %s12605_s30  ;;  %p595_p8 = scmp.lt.s32.totalorder %s12451_s27, 3 }
  0x1f   : > { %s14964_s22 = scalar_select %p12611_p6, 1, 0 }
  0x20   : > { %p596_p9 = pnand %p9906_p7, %p595_p8 }
  0x21   : > { %14965 = sst [smem:[#allocation14_spill]] %s14964_s22  ;;  %p658_p10 = scmp.lt.s32.totalorder (!%p596_p9), %s12590_s3, 1 }
  0x22   : > { %599 = sbr.rel (%p596_p9) target bundleno = 5723 (0x165b), region = 100  ;;  %s14966_s24 = sld [smem:[#allocation17_spill]] (!%p596_p9) }
  0x23   : > { %s14967_s22 = sld [smem:[#allocation15_spill]] (!%p596_p9)  ;;  %s13408_s4 = sand.u32 (!%p596_p9), 1, %s12443_s25  }
  0x24   : > { %s14968_s1 = sld [smem:[#allocation18_spill]] (!%p596_p9)  ;;  %s12036_s29 = smul.u32 (!%p596_p9), 192, %s13408_s4 }
  0x25   : > { %s14972_s8 = sld [smem:[#allocation23_spill]] (!%p596_p9)  ;;  %s12037_s21 = smul.u32 (!%p596_p9), 3072, %s12590_s3 }
  0x26   : > { %s13423_s26 = scalar_lea.vmem (!%p596_p9), [#allocation4], %s12036_s29  ;;  %s14971_s29 = sld [smem:[#allocation20_spill]] (!%p596_p9) }
  0x27   : > { %v12453_v1 = vmov 0.0   ;;  %vm12454_vm0 = vmmov 0   ;;  %s659_s28 = scalar_select %p658_p10, %s12590_s3, 1  ;;  %vm1097_vm1 = vcmask 261120   ;;  %vm2997_vm2 = vcmask 64512  }
  0x28   : > { %v12086_v0 = vld [vmem:[%s14966_s24 + $0x8] sm:$0xff]   ;;  %10956 = vmatprep.subr.bf16.mxu0 %v12453_v1  ;;  %10964 = vmatprep.subr.bf16.mxu1 %v12453_v1  ;;  %v12087_v2 = vld [vmem:[%s14966_s24 + $0x18] sm:$0xff]   ;;  %v12088_v3 = vld [vmem:[%s14966_s24] sm:$0xff]   ;;  %vm3721_vm3 = vcmask 1043456   ;;  %vm4856_vm4 = vcmask 523264   ;;  %s14973_s6 = sld [smem:[#allocation21_spill]] }
  0x29   : > { %10957 = vmatpush3.bf16.msra.mxu0 %v12086_v0  ;;  %10960 = vmatprep.mubr.msk.bf16.mxu0 %vm12454_vm0, %v12453_v1  ;;  %v12089_v4 = vld [vmem:[%s14966_s24 + $0x10] sm:$0xff]   ;;  %s9907_s30 = sshll.u32 %s659_s28, 3  ;;  %v12090_v5 = vld [vmem:[%s14966_s24 + $0x28] sm:$0xff]   ;;  %v12091_v6 = vld [vmem:[%s14966_s24 + $0x38] sm:$0xff]   ;;  %s14970_s28 = sld [smem:[#allocation19_spill]] }
  0x2a   : > { %10965 = vmatpush3.bf16.msra.mxu1 %v12087_v2  ;;  %10958 = vmatprep.subr.bf16.mxu0 %v12453_v1  ;;  %s12645_s2 = scalar_lea.vmem %s14967_s22, %s9907_s30  ;;  %v12092_v9 = vld [vmem:[%s14966_s24 + $0x20] sm:$0xff]   ;;  %v12093_v10 = vld [vmem:[%s14966_s24 + $0x30] sm:$0xff]   ;;  %v12094_v11 = vld [vmem:[%s14966_s24 + $0x48] sm:$0xff]   ;;  %s14969_s30 = sld [smem:[#allocation16_spill]] }
  0x2b   : > { %10966 = vmatprep.subr.bf16.mxu1 %v12453_v1  ;;  %10968 = vmatprep.mubr.msk.bf16.mxu1 %vm12454_vm0, %v12453_v1  ;;  %v663_v7 = vld [vmem:[%s12645_s2] sm:$0xff]  ;;  %v12095_v12 = vld [vmem:[%s14966_s24 + $0x58] sm:$0xff]   ;;  %v12097_v14 = vld [vmem:[%s14966_s24 + $0x50] sm:$0xff]   ;;  %s14974_s7 = sld [smem:[#allocation22_spill]]  ;;  %s9813_s23 = sshll.u32 %s13423_s26, 4  ;;  %s14831_s23 = int_to_ptr.vmem [resolvable:$true] %s9813_s23 }
  0x2c   : > { %v12653_v8 = vpack.c.bf16 %v663_v7, %v663_v7  ;;  %v12096_v13 = vld [vmem:[%s14966_s24 + $0x40] sm:$0xff]   ;;  %v12098_v15 = vld [vmem:[%s14966_s24 + $0x68] sm:$0xff]   ;;  %v12099_v16 = vld [vmem:[%s14966_s24 + $0x78] sm:$0xff]   ;;  %s14975_s9 = sld [smem:[#allocation24_spill]]  ;;  %s12361_s19 = scalar_lea.vmem %s14831_s23, 3072 }
  0x2d   : > { %10959 = vmatpush3.bf16.msra.mxu0 %v12088_v3  ;;  %v12100_v17 = vld [vmem:[%s14966_s24 + $0x60] sm:$0xff]   ;;  %v12101_v18 = vld [vmem:[%s14966_s24 + $0x70] sm:$0xff]   ;;  %v12102_v19 = vld [vmem:[%s14966_s24 + $0x88] sm:$0xff]   ;;  %s14976_s10 = sld [smem:[#allocation25_spill]]  ;;  %p12362_p11 = scmp.ne.s32.totalorder %s14831_s23, %s12361_s19 }
  0x2e   : > { %10967 = vmatpush3.bf16.msra.mxu1 %v12089_v4  ;;  %10972 = vmatprep.subr.bf16.mxu0 %v12453_v1  ;;  %v12103_v20 = vld [vmem:[%s14966_s24 + $0x98] sm:$0xff]   ;;  %v12104_v21 = vld [vmem:[%s14966_s24 + $0x80] sm:$0xff]   ;;  %v12105_v22 = vld [vmem:[%s14966_s24 + $0x90] sm:$0xff]  }
  0x2f   : > { %10980 = vmatprep.subr.bf16.mxu1 %v12453_v1  ;;  %v12106_v23 = vld [vmem:[%s14966_s24 + $0xa8] sm:$0xff]   ;;  %v12107_v24 = vld [vmem:[%s14966_s24 + $0xb8] sm:$0xff]   ;;  %v12108_v25 = vld [vmem:[%s14966_s24 + $0xa0] sm:$0xff]   ;;  %p12363_p12 = pnand %p12362_p11, %p12607_p5 }
  0x30   : > { %10961 = vmatmul.mubr.msk.bf16.vlgmr.msra.gmra.mxu0 %vm1097_vm1, %v12653_v8  ;;  %v12109_v26 = vld [vmem:[%s14966_s24 + $0xb0] sm:$0xff]   ;;  %v12110_v27 = vld [vmem:[%s14966_s24 + $0xc8] sm:$0xff]   ;;  %v12111_v28 = vld [vmem:[%s14966_s24 + $0xd8] sm:$0xff]  }
  0x31   : > { %10969 = vmatmul.mubr.msk.bf16.vlgmr.msra.gmra.mxu1 %vm1097_vm1, %v12653_v8  ;;  %10973 = vmatpush3.bf16.msra.mxu0 %v12090_v5  ;;  %v12112_v29 = vld [vmem:[%s14966_s24 + $0xc0] sm:$0xff]   ;;  %v12113_v30 = vld [vmem:[%s14966_s24 + $0xd0] sm:$0xff]   ;;  %v12114_v31 = vld [vmem:[%s14966_s24 + $0xe8] sm:$0xff]   ;;  %p12364_p13 = pneg %p12363_p12 }
  0x32   : > { %10981 = vmatpush3.bf16.msra.mxu1 %v12091_v6  ;;  %10974 = vmatprep.subr.bf16.mxu0 %v12453_v1  ;;  %v12115_v32 = vld [vmem:[%s14966_s24 + $0xf8] sm:$0xff]   ;;  %v12116_v33 = vld [vmem:[%s14966_s24 + $0xe0] sm:$0xff]   ;;  %v12117_v34 = vld [vmem:[%s14966_s24 + $0xf0] sm:$0xff]  }
  0x33   : > { %10982 = vmatprep.subr.bf16.mxu1 %v12453_v1  ;;  %10976 = vmatprep.mubr.msk.bf16.mxu0 %vm12454_vm0, %v12453_v1  ;;  %v12118_v35 = vld [vmem:[%s14966_s24 + $0x108] sm:$0xff]   ;;  %v12119_v36 = vld [vmem:[%s14966_s24 + $0x118] sm:$0xff]   ;;  %v12120_v37 = vld [vmem:[%s14966_s24 + $0x100] sm:$0xff]  }
  0x34   : > { %10984 = vmatprep.mubr.msk.bf16.mxu1 %vm12454_vm0, %v12453_v1  ;;  %v12121_v38 = vld [vmem:[%s14966_s24 + $0x110] sm:$0xff]   ;;  %v12122_v39 = vld [vmem:[%s14966_s24 + $0x128] sm:$0xff]   ;;  %v12123_v40 = vld [vmem:[%s14966_s24 + $0x138] sm:$0xff]  }
  0x35   : > { %10975 = vmatpush3.bf16.msra.mxu0 %v12092_v9  ;;  %v12124_v41 = vld [vmem:[%s14966_s24 + $0x120] sm:$0xff]   ;;  %v12125_v42 = vld [vmem:[%s14966_s24 + $0x130] sm:$0xff]   ;;  %v12126_v43 = vld [vmem:[%s14966_s24 + $0x148] sm:$0xff]  }
  0x36   : > { %10983 = vmatpush3.bf16.msra.mxu1 %v12093_v10  ;;  %10988 = vmatprep.subr.bf16.mxu0 %v12453_v1  ;;  %v12127_v44 = vld [vmem:[%s14966_s24 + $0x158] sm:$0xff]   ;;  %v12128_v45 = vld [vmem:[%s14966_s24 + $0x140] sm:$0xff]   ;;  %v12129_v46 = vld [vmem:[%s14966_s24 + $0x150] sm:$0xff]  }
  0x37   : > { %10996 = vmatprep.subr.bf16.mxu1 %v12453_v1  ;;  %v12130_v47 = vld [vmem:[%s14966_s24 + $0x168] sm:$0xff]   ;;  %v12131_v48 = vld [vmem:[%s14966_s24 + $0x178] sm:$0xff]   ;;  %v12132_v49 = vld [vmem:[%s14966_s24 + $0x160] sm:$0xff]  }
  0x38   : > { %10977 = vmatmul.mubr.msk.bf16.vlgmr.msra.gmra.mxu0 %vm1097_vm1, %v12653_v8  ;;  %v12133_v50 = vld [vmem:[%s14966_s24 + $0x170] sm:$0xff]   ;;  %v12134_v51 = vld [vmem:[%s14966_s24 + $0x188] sm:$0xff]   ;;  %v12136_v52 = vld [vmem:[%s14966_s24 + $0x198] sm:$0xff]  }
  0x39   : > { %10985 = vmatmul.mubr.msk.bf16.vlgmr.msra.gmra.mxu1 %vm1097_vm1, %v12653_v8  ;;  %10989 = vmatpush3.bf16.msra.mxu0 %v12094_v11  ;;  %v12135_v53 = vld [vmem:[%s14966_s24 + $0x180] sm:$0xff]   ;;  %v12137_v54 = vld [vmem:[%s14966_s24 + $0x190] sm:$0xff]   ;;  %v12138_v55 = vld [vmem:[%s14966_s24 + $0x1a8] sm:$0xff]  }
  0x3a   : > { %10997 = vmatpush3.bf16.msra.mxu1 %v12095_v12  ;;  %10990 = vmatprep.subr.bf16.mxu0 %v12453_v1  ;;  %v12140_v56 = vld [vmem:[%s14966_s24 + $0x1b8] sm:$0xff]   ;;  %v12139_v57 = vld [vmem:[%s14966_s24 + $0x1a0] sm:$0xff]   ;;  %v12141_v58 = vld [vmem:[%s14966_s24 + $0x1b0] sm:$0xff]  }
  0x3b   : > { %10998 = vmatprep.subr.bf16.mxu1 %v12453_v1  ;;  %10992 = vmatprep.mubr.msk.bf16.mxu0 %vm12454_vm0, %v12453_v1  ;;  %v12142_v59 = vld [vmem:[%s14966_s24 + $0x1c8] sm:$0xff]   ;;  %v12144_v60 = vld [vmem:[%s14966_s24 + $0x1d8] sm:$0xff]   ;;  %v12143_v61 = vld [vmem:[%s14966_s24 + $0x1c0] sm:$0xff]  }
  0x3c   : > { %11000 = vmatprep.mubr.msk.bf16.mxu1 %vm12454_vm0, %v12453_v1  ;;  %v12145_v62 = vld [vmem:[%s14966_s24 + $0x1d0] sm:$0xff]   ;;  %v12146_v63 = vld [vmem:[%s14966_s24 + $0x1e8] sm:$0xff]   ;;  %v12148_v0 = vld [vmem:[%s14966_s24 + $0x1f8] sm:$0xff]  }
  0x3d   : > { %10991 = vmatpush3.bf16.msra.mxu0 %v12096_v13  ;;  %v12147_v2 = vld [vmem:[%s14966_s24 + $0x1e0] sm:$0xff]   ;;  %v12149_v3 = vld [vmem:[%s14966_s24 + $0x1f0] sm:$0xff]   ;;  %v12150_v4 = vld [vmem:[%s14966_s24 + $0x208] sm:$0xff]  }
  0x3e   : > { %10999 = vmatpush3.bf16.msra.mxu1 %v12097_v14  ;;  %11004 = vmatprep.subr.bf16.mxu0 %v12453_v1  ;;  %v12152_v5 = vld [vmem:[%s14966_s24 + $0x218] sm:$0xff]   ;;  %v12151_v6 = vld [vmem:[%s14966_s24 + $0x200] sm:$0xff]   ;;  %v12153_v7 = vld [vmem:[%s14966_s24 + $0x210] sm:$0xff]  }
  0x3f   : > { %11012 = vmatprep.subr.bf16.mxu1 %v12453_v1  ;;  %v12154_v9 = vld [vmem:[%s14966_s24 + $0x228] sm:$0xff]   ;;  %v12156_v10 = vld [vmem:[%s14966_s24 + $0x238] sm:$0xff]   ;;  %v12155_v11 = vld [vmem:[%s14966_s24 + $0x220] sm:$0xff]  }
  0x40   : > { %10993 = vmatmul.mubr.msk.bf16.vlgmr.msra.gmra.mxu0 %vm1097_vm1, %v12653_v8  ;;  %v12157_v12 = vld [vmem:[%s14966_s24 + $0x230] sm:$0xff]  }
  0x41   : > { %11001 = vmatmul.mubr.msk.bf16.vlgmr.msra.gmra.mxu1 %vm1097_vm1, %v12653_v8  ;;  %11005 = vmatpush3.bf16.msra.mxu0 %v12098_v15 }
  0x42   : > { %11013 = vmatpush3.bf16.msra.mxu1 %v12099_v16  ;;  %11006 = vmatprep.subr.bf16.mxu0 %v12453_v1 }
  0x43   : > { %11014 = vmatprep.subr.bf16.mxu1 %v12453_v1  ;;  %11008 = vmatprep.mubr.msk.bf16.mxu0 %vm12454_vm0, %v12453_v1 }
  0x44   : > { %11016 = vmatprep.mubr.msk.bf16.mxu1 %vm12454_vm0, %v12453_v1 }
  0x45   : > { %11007 = vmatpush3.bf16.msra.mxu0 %v12100_v17 }
  0x46   : > { %11015 = vmatpush3.bf16.msra.mxu1 %v12101_v18  ;;  %11020 = vmatprep.subr.bf16.mxu0 %v12453_v1 }
  0x47   : > { %11028 = vmatprep.subr.bf16.mxu1 %v12453_v1 }
  0x48   : > { %11009 = vmatmul.mubr.msk.bf16.vlgmr.msra.gmra.mxu0 %vm1097_vm1, %v12653_v8 }
  0x49   : > { %11017 = vmatmul.mubr.msk.bf16.vlgmr.msra.gmra.mxu1 %vm1097_vm1, %v12653_v8  ;;  %11021 = vmatpush3.bf16.msra.mxu0 %v12102_v19 }
  0x4a   : > { %11029 = vmatpush3.bf16.msra.mxu1 %v12103_v20  ;;  %11022 = vmatprep.subr.bf16.mxu0 %v12453_v1 }
  0x4b   : > { %11030 = vmatprep.subr.bf16.mxu1 %v12453_v1  ;;  %11024 = vmatprep.mubr.msk.bf16.mxu0 %vm12454_vm0, %v12453_v1 }
  0x4c   : > { %11032 = vmatprep.mubr.msk.bf16.mxu1 %vm12454_vm0, %v12453_v1 }
  0x4d   : > { %11023 = vmatpush3.bf16.msra.mxu0 %v12104_v21 }
  0x4e   : > { %11031 = vmatpush3.bf16.msra.mxu1 %v12105_v22  ;;  %11036 = vmatprep.subr.bf16.mxu0 %v12453_v1 }
  0x4f   : > { %11044 = vmatprep.subr.bf16.mxu1 %v12453_v1 }
  0x50   : > { %11025 = vmatmul.mubr.msk.bf16.vlgmr.msra.gmra.mxu0 %vm1097_vm1, %v12653_v8 }
  0x51   : > { %11033 = vmatmul.mubr.msk.bf16.vlgmr.msra.gmra.mxu1 %vm1097_vm1, %v12653_v8  ;;  %11037 = vmatpush3.bf16.msra.mxu0 %v12106_v23 }
  0x52   : > { %11045 = vmatpush3.bf16.msra.mxu1 %v12107_v24  ;;  %11038 = vmatprep.subr.bf16.mxu0 %v12453_v1 }
  0x53   : > { %11046 = vmatprep.subr.bf16.mxu1 %v12453_v1  ;;  %11040 = vmatprep.mubr.msk.bf16.mxu0 %vm12454_vm0, %v12453_v1 }
  0x54   : > { %11048 = vmatprep.mubr.msk.bf16.mxu1 %vm12454_vm0, %v12453_v1 }
  0x55   : > { %11039 = vmatpush3.bf16.msra.mxu0 %v12108_v25 }
  0x56   : > { %11047 = vmatpush3.bf16.msra.mxu1 %v12109_v26  ;;  %11052 = vmatprep.subr.bf16.mxu0 %v12453_v1 }
  0x57   : > { %11060 = vmatprep.subr.bf16.mxu1 %v12453_v1 }
  0x58   : > { %11041 = vmatmul.mubr.msk.bf16.vlgmr.msra.gmra.mxu0 %vm1097_vm1, %v12653_v8 }
  0x59   : > { %11049 = vmatmul.mubr.msk.bf16.vlgmr.msra.gmra.mxu1 %vm1097_vm1, %v12653_v8  ;;  %11053 = vmatpush3.bf16.msra.mxu0 %v12110_v27 }
  0x5a   : > { %11061 = vmatpush3.bf16.msra.mxu1 %v12111_v28  ;;  %11054 = vmatprep.subr.bf16.mxu0 %v12453_v1 }
  0x5b   : > { %11062 = vmatprep.subr.bf16.mxu1 %v12453_v1  ;;  %11056 = vmatprep.mubr.msk.bf16.mxu0 %vm12454_vm0, %v12453_v1 }
  0x5c   : > { %11064 = vmatprep.mubr.msk.bf16.mxu1 %vm12454_vm0, %v12453_v1 }
  0x5d   : > { %11055 = vmatpush3.bf16.msra.mxu0 %v12112_v29 }
  0x5e   : > { %11063 = vmatpush3.bf16.msra.mxu1 %v12113_v30  ;;  %11068 = vmatprep.subr.bf16.mxu0 %v12453_v1 }
  0x5f   : > { %11076 = vmatprep.subr.bf16.mxu1 %v12453_v1 }
  0x60   : > { %11057 = vmatmul.mubr.msk.bf16.vlgmr.msra.gmra.mxu0 %vm1097_vm1, %v12653_v8 }
  0x61   : > { %11065 = vmatmul.mubr.msk.bf16.vlgmr.msra.gmra.mxu1 %vm1097_vm1, %v12653_v8  ;;  %11069 = vmatpush3.bf16.msra.mxu0 %v12114_v31 }
  0x62   : > { %11077 = vmatpush3.bf16.msra.mxu1 %v12115_v32  ;;  %11070 = vmatprep.subr.bf16.mxu0 %v12453_v1 }
  0x63   : > { %11078 = vmatprep.subr.bf16.mxu1 %v12453_v1  ;;  %11072 = vmatprep.mubr.msk.bf16.mxu0 %vm12454_vm0, %v12453_v1 }
  0x64   : > { %11080 = vmatprep.mubr.msk.bf16.mxu1 %vm12454_vm0, %v12453_v1 }
  0x65   : > { %11071 = vmatpush3.bf16.msra.mxu0 %v12116_v33 }
  0x66   : > { %11079 = vmatpush3.bf16.msra.mxu1 %v12117_v34  ;;  %11084 = vmatprep.subr.bf16.mxu0 %v12453_v1 }
  0x67   : > { %11092 = vmatprep.subr.bf16.mxu1 %v12453_v1 }
  0x68   : > { %11073 = vmatmul.mubr.msk.bf16.vlgmr.msra.gmra.mxu0 %vm1097_vm1, %v12653_v8 }
  0x69   : > { %11081 = vmatmul.mubr.msk.bf16.vlgmr.msra.gmra.mxu1 %vm1097_vm1, %v12653_v8  ;;  %11085 = vmatpush3.bf16.msra.mxu0 %v12118_v35 }
  0x6a   : > { %11093 = vmatpush3.bf16.msra.mxu1 %v12119_v36  ;;  %11086 = vmatprep.subr.bf16.mxu0 %v12453_v1 }
  0x6b   : > { %11094 = vmatprep.subr.bf16.mxu1 %v12453_v1  ;;  %11088 = vmatprep.mubr.msk.bf16.mxu0 %vm12454_vm0, %v12453_v1 }
  0x6c   : > { %11096 = vmatprep.mubr.msk.bf16.mxu1 %vm12454_vm0, %v12453_v1 }
  0x6d   : > { %11087 = vmatpush3.bf16.msra.mxu0 %v12120_v37 }
  0x6e   : > { %11095 = vmatpush3.bf16.msra.mxu1 %v12121_v38  ;;  %11100 = vmatprep.subr.bf16.mxu0 %v12453_v1 }
  0x6f   : > { %11108 = vmatprep.subr.bf16.mxu1 %v12453_v1 }
  0x70   : > { %11089 = vmatmul.mubr.msk.bf16.vlgmr.msra.gmra.mxu0 %vm1097_vm1, %v12653_v8 }
  0x71   : > { %11097 = vmatmul.mubr.msk.bf16.vlgmr.msra.gmra.mxu1 %vm1097_vm1, %v12653_v8  ;;  %11101 = vmatpush3.bf16.msra.mxu0 %v12122_v39 }
  0x72   : > { %11109 = vmatpush3.bf16.msra.mxu1 %v12123_v40  ;;  %11102 = vmatprep.subr.bf16.mxu0 %v12453_v1 }
  0x73   : > { %11110 = vmatprep.subr.bf16.mxu1 %v12453_v1  ;;  %11104 = vmatprep.mubr.msk.bf16.mxu0 %vm12454_vm0, %v12453_v1 }
  0x74   : > { %11112 = vmatprep.mubr.msk.bf16.mxu1 %vm12454_vm0, %v12453_v1 }
  0x75   : > { %11103 = vmatpush3.bf16.msra.mxu0 %v12124_v41 }
  0x76   : > { %11111 = vmatpush3.bf16.msra.mxu1 %v12125_v42  ;;  %11116 = vmatprep.subr.bf16.mxu0 %v12453_v1 }
  0x77   : > { %11124 = vmatprep.subr.bf16.mxu1 %v12453_v1 }
  0x78   : > { %11105 = vmatmul.mubr.msk.bf16.vlgmr.msra.gmra.mxu0 %vm1097_vm1, %v12653_v8 }
  0x79   : > { %11113 = vmatmul.mubr.msk.bf16.vlgmr.msra.gmra.mxu1 %vm1097_vm1, %v12653_v8  ;;  %11117 = vmatpush3.bf16.msra.mxu0 %v12126_v43 }
  0x7a   : > { %11125 = vmatpush3.bf16.msra.mxu1 %v12127_v44  ;;  %11118 = vmatprep.subr.bf16.mxu0 %v12453_v1 }
  0x7b   : > { %11126 = vmatprep.subr.bf16.mxu1 %v12453_v1  ;;  %11120 = vmatprep.mubr.msk.bf16.mxu0 %vm12454_vm0, %v12453_v1 }
  0x7c   : > { %11128 = vmatprep.mubr.msk.bf16.mxu1 %vm12454_vm0, %v12453_v1 }
  0x7d   : > { %11119 = vmatpush3.bf16.msra.mxu0 %v12128_v45 }
  0x7e   : > { %11127 = vmatpush3.bf16.msra.mxu1 %v12129_v46  ;;  %11132 = vmatprep.subr.bf16.mxu0 %v12453_v1 }
  0x7f   : > { %11140 = vmatprep.subr.bf16.mxu1 %v12453_v1 }
  0x80   : > { %11121 = vmatmul.mubr.msk.bf16.vlgmr.msra.gmra.mxu0 %vm1097_vm1, %v12653_v8 }
  0x81   : > { %11129 = vmatmul.mubr.msk.bf16.vlgmr.msra.gmra.mxu1 %vm1097_vm1, %v12653_v8  ;;  %11133 = vmatpush3.bf16.msra.mxu0 %v12130_v47 }
  0x82   : > { %11141 = vmatpush3.bf16.msra.mxu1 %v12131_v48  ;;  %11134 = vmatprep.subr.bf16.mxu0 %v12453_v1 }
  0x83   : > { %11142 = vmatprep.subr.bf16.mxu1 %v12453_v1  ;;  %11136 = vmatprep.mubr.msk.bf16.mxu0 %vm12454_vm0, %v12453_v1 }
  0x84   : > { %11144 = vmatprep.mubr.msk.bf16.mxu1 %vm12454_vm0, %v12453_v1 }
  0x85   : > { %11135 = vmatpush3.bf16.msra.mxu0 %v12132_v49 }
  0x86   : > { %11143 = vmatpush3.bf16.msra.mxu1 %v12133_v50  ;;  %11148 = vmatprep.subr.bf16.mxu0 %v12453_v1 }
  0x87   : > { %11156 = vmatprep.subr.bf16.mxu1 %v12453_v1 }
  0x88   : > { %11137 = vmatmul.mubr.msk.bf16.vlgmr.msra.gmra.mxu0 %vm1097_vm1, %v12653_v8 }
  0x89   : > { %11145 = vmatmul.mubr.msk.bf16.vlgmr.msra.gmra.mxu1 %vm1097_vm1, %v12653_v8  ;;  %11149 = vmatpush3.bf16.msra.mxu0 %v12134_v51 }
  0x8a   : > { %11157 = vmatpush3.bf16.msra.mxu1 %v12136_v52  ;;  %11150 = vmatprep.subr.bf16.mxu0 %v12453_v1 }
  0x8b   : > { %11152 = vmatprep.mubr.msk.bf16.mxu0 %vm12454_vm0, %v12453_v1  ;;  %11158 = vmatprep.subr.bf16.mxu1 %v12453_v1 }
  0x8c   : > { %11160 = vmatprep.mubr.msk.bf16.mxu1 %vm12454_vm0, %v12453_v1 }
  0x8d   : > { %11151 = vmatpush3.bf16.msra.mxu0 %v12135_v53 }
  0x8e   : > { %11159 = vmatpush3.bf16.msra.mxu1 %v12137_v54  ;;  %11164 = vmatprep.subr.bf16.mxu0 %v12453_v1 }
  0x8f   : > { %11172 = vmatprep.subr.bf16.mxu1 %v12453_v1 }
  0x90   : > { %11153 = vmatmul.mubr.msk.bf16.vlgmr.msra.gmra.mxu0 %vm1097_vm1, %v12653_v8 }
  0x91   : > { %11161 = vmatmul.mubr.msk.bf16.vlgmr.msra.gmra.mxu1 %vm1097_vm1, %v12653_v8  ;;  %11165 = vmatpush3.bf16.msra.mxu0 %v12138_v55 }
  0x92   : > { %11173 = vmatpush3.bf16.msra.mxu1 %v12140_v56  ;;  %11166 = vmatprep.subr.bf16.mxu0 %v12453_v1 }
  0x93   : > { %11168 = vmatprep.mubr.msk.bf16.mxu0 %vm12454_vm0, %v12453_v1  ;;  %11174 = vmatprep.subr.bf16.mxu1 %v12453_v1 }
  0x94   : > { %11176 = vmatprep.mubr.msk.bf16.mxu1 %vm12454_vm0, %v12453_v1 }
  0x95   : > { %11167 = vmatpush3.bf16.msra.mxu0 %v12139_v57 }
  0x96   : > { %11175 = vmatpush3.bf16.msra.mxu1 %v12141_v58  ;;  %11180 = vmatprep.subr.bf16.mxu0 %v12453_v1 }
  0x97   : > { %11188 = vmatprep.subr.bf16.mxu1 %v12453_v1 }
  0x98   : > { %11169 = vmatmul.mubr.msk.bf16.vlgmr.msra.gmra.mxu0 %vm1097_vm1, %v12653_v8 }
  0x99   : > { %11177 = vmatmul.mubr.msk.bf16.vlgmr.msra.gmra.mxu1 %vm1097_vm1, %v12653_v8  ;;  %11181 = vmatpush3.bf16.msra.mxu0 %v12142_v59 }
  0x9a   : > { %11189 = vmatpush3.bf16.msra.mxu1 %v12144_v60  ;;  %11182 = vmatprep.subr.bf16.mxu0 %v12453_v1  ;;  %v9920_v60 = vld [vmem:[%s14968_s1 + $0xc] ss:$0 sm:$0xff] }
  0x9b   : > { %11184 = vmatprep.mubr.msk.bf16.mxu0 %vm12454_vm0, %v12453_v1  ;;  %11190 = vmatprep.subr.bf16.mxu1 %v12453_v1 }
  0x9c   : > { %11192 = vmatprep.mubr.msk.bf16.mxu1 %vm12454_vm0, %v12453_v1 }
  0x9d   : > { %11183 = vmatpush3.bf16.msra.mxu0 %v12143_v61  ;;  %v9921_v61 = vld [vmem:[%s14968_s1 + $0xd] ss:$0 sm:$0xff] }
  0x9e   : > { %11191 = vmatpush3.bf16.msra.mxu1 %v12145_v62  ;;  %11196 = vmatprep.subr.bf16.mxu0 %v12453_v1 }
  0x9f   : > { %11204 = vmatprep.subr.bf16.mxu1 %v12453_v1 }
  0xa0   : > { %11185 = vmatmul.mubr.msk.bf16.vlgmr.msra.gmra.mxu0 %vm1097_vm1, %v12653_v8 }
  0xa1   : > { %11193 = vmatmul.mubr.msk.bf16.vlgmr.msra.gmra.mxu1 %vm1097_vm1, %v12653_v8  ;;  %11197 = vmatpush3.bf16.msra.mxu0 %v12146_v63 }
  0xa2   : > { %11205 = vmatpush3.bf16.msra.mxu1 %v12148_v0  ;;  %11198 = vmatprep.subr.bf16.mxu0 %v12453_v1 }
  0xa3   : > { %11200 = vmatprep.mubr.msk.bf16.mxu0 %vm12454_vm0, %v12453_v1  ;;  %11206 = vmatprep.subr.bf16.mxu1 %v12453_v1 }
  0xa4   : > { %11208 = vmatprep.mubr.msk.bf16.mxu1 %vm12454_vm0, %v12453_v1 }
  0xa5   : > { %11199 = vmatpush3.bf16.msra.mxu0 %v12147_v2 }
  0xa6   : > { %11207 = vmatpush3.bf16.msra.mxu1 %v12149_v3  ;;  %11212 = vmatprep.subr.bf16.mxu0 %v12453_v1 }
  0xa7   : > { %11220 = vmatprep.subr.bf16.mxu1 %v12453_v1 }
  0xa8   : > { %11201 = vmatmul.mubr.msk.bf16.vlgmr.msra.gmra.mxu0 %vm1097_vm1, %v12653_v8 }
  0xa9   : > { %11209 = vmatmul.mubr.msk.bf16.vlgmr.msra.gmra.mxu1 %vm1097_vm1, %v12653_v8  ;;  %11213 = vmatpush3.bf16.msra.mxu0 %v12150_v4 }
  0xaa   : > { %11221 = vmatpush3.bf16.msra.mxu1 %v12152_v5  ;;  %11214 = vmatprep.subr.bf16.mxu0 %v12453_v1 }
  0xab   : > { %11216 = vmatprep.mubr.msk.bf16.mxu0 %vm12454_vm0, %v12453_v1  ;;  %11222 = vmatprep.subr.bf16.mxu1 %v12453_v1 }
  0xac   : > { %11224 = vmatprep.mubr.msk.bf16.mxu1 %vm12454_vm0, %v12453_v1 }
  0xad   : > { %11215 = vmatpush3.bf16.msra.mxu0 %v12151_v6 }
  0xae   : > { %11223 = vmatpush3.bf16.msra.mxu1 %v12153_v7  ;;  %11228 = vmatprep.subr.bf16.mxu0 %v12453_v1  ;;  %v9908_v7 = vld [vmem:[%s14968_s1] ss:$0 sm:$0xff] }
  0xaf   : > { %11236 = vmatprep.subr.bf16.mxu1 %v12453_v1 }
  0xb0   : > { %11217 = vmatmul.mubr.msk.bf16.vlgmr.msra.gmra.mxu0 %vm1097_vm1, %v12653_v8 }
  0xb1   : > { %11225 = vmatmul.mubr.msk.bf16.vlgmr.msra.gmra.mxu1 %vm1097_vm1, %v12653_v8  ;;  %11229 = vmatpush3.bf16.msra.mxu0 %v12154_v9  ;;  %v9909_v9 = vld [vmem:[%s14968_s1 + $0x1] ss:$0 sm:$0xff] }
  0xb2   : > { %11237 = vmatpush3.bf16.msra.mxu1 %v12156_v10  ;;  %11230 = vmatprep.subr.bf16.mxu0 %v12453_v1 }
  0xb3   : > { %11232 = vmatprep.mubr.msk.bf16.mxu0 %vm12454_vm0, %v12453_v1  ;;  %11238 = vmatprep.subr.bf16.mxu1 %v12453_v1 }
  0xb4   : > { %11240 = vmatprep.mubr.msk.bf16.mxu1 %vm12454_vm0, %v12453_v1 }
  0xb5   : > { %11231 = vmatpush3.bf16.msra.mxu0 %v12155_v11 }
  0xb6   : > { %11239 = vmatpush3.bf16.msra.mxu1 %v12157_v12  ;;  %11244 = vmatprep.subr.bf16.mxu0 %v12453_v1 }
  0xb7   : > { %11250 = vmatprep.subr.bf16.mxu1 %v12453_v1 }
  0xb8   : > { %11233 = vmatmul.mubr.msk.bf16.vlgmr.msra.gmra.mxu0 %vm1097_vm1, %v12653_v8 }
  0xb9   : > { %11241 = vmatmul.mubr.msk.bf16.vlgmr.msra.gmra.mxu1 %vm1097_vm1, %v12653_v8  ;;  %11246 = vmatprep.mubr.msk.bf16.mxu0 %vm12454_vm0, %v12453_v1 }
  0xba   : > { %11252 = vmatprep.mubr.msk.bf16.mxu1 %vm12454_vm0, %v12453_v1 }
  0xf0   : > { %v13065_v13 = vpop.f32.mrf.mxu0 }
  0xf1   : > { %v13067_v14 = vpop.f32.mrf.mxu1 }
  0xf2   : > { %v10962_v15 = vpop.f32.mrf.mxu0 }
  0xf3   : > { %v10970_v16 = vpop.f32.mrf.mxu1 }
  0xf4   : > { %v1138_v17 = vpop.f32.mrf.mxu0 }
  0xf5   : > { %v1190_v18 = vpop.f32.mrf.mxu1 }
  0xf6   : > { %v10963_v19 = vpop.f32.mrf.mxu0  ;;  %v9922_v18 = vld [vmem:[%s14968_s1 + $0xe] ss:$0 sm:$0xff] }
  0xf7   : > { %v10971_v20 = vpop.f32.mrf.mxu1  ;;  %v9923_v19 = vld [vmem:[%s14968_s1 + $0xf] ss:$0 sm:$0xff] }
  0xf8   : > { %v13069_v21 = vpop.f32.mrf.mxu0  ;;  %v1136_v20 = vadd.f32 %v9908_v7, %v13065_v13  ;;  %v9910_v13 = vld [vmem:[%s14968_s1 + $0x2] ss:$0 sm:$0xff] }
  0xf9   : > { %v13071_v22 = vpop.f32.mrf.mxu1 }
  0xfa   : > { %v10978_v8 = vpop.f32.mrf.mxu0 }
  0xfb   : > { %v10986_v23 = vpop.f32.mrf.mxu1  ;;  %v1188_v8 = vadd.f32 %v9909_v9, %v13067_v14  ;;  %v9911_v14 = vld [vmem:[%s14968_s1 + $0x3] ss:$0 sm:$0xff] }
  0xfc   : > { %v1242_v24 = vpop.f32.mrf.mxu0 }
  0xfd   : > { %v1294_v25 = vpop.f32.mrf.mxu1 }
  0xfe   : > { %v10979_v26 = vpop.f32.mrf.mxu0 }
  0xff   : > { %v10987_v27 = vpop.f32.mrf.mxu1 }
 0x100   : > { %v13073_v28 = vpop.f32.mrf.mxu0 }
 0x101   : > { %v13075_v29 = vpop.f32.mrf.mxu1 }
 0x102   : > { %v10994_v30 = vpop.f32.mrf.mxu0 }
 0x103   : > { %v11002_v31 = vpop.f32.mrf.mxu1 }
 0x104   : > { %v1346_v32 = vpop.f32.mrf.mxu0  ;;  %v2961_v31 = vpack.c.bf16 %v1136_v20, %v1136_v20  ;;  %v9915_v20 = vld [vmem:[%s14968_s1 + $0x7] ss:$0 sm:$0xff] }
 0x105   : > { %v1398_v33 = vpop.f32.mrf.mxu1  ;;  %v2962_v32 = vpack.c.bf16 %v1188_v8, %v1188_v8 }
 0x106   : > { %v10995_v34 = vpop.f32.mrf.mxu0 }
 0x107   : > { %v11003_v35 = vpop.f32.mrf.mxu1 }
 0x108   : > { %v13077_v36 = vpop.f32.mrf.mxu0 }
 0x109   : > { %v13079_v37 = vpop.f32.mrf.mxu1 }
 0x10a   : > { %v11010_v38 = vpop.f32.mrf.mxu0 }
 0x10b   : > { %v11018_v39 = vpop.f32.mrf.mxu1 }
 0x10c   : > { %v1450_v40 = vpop.f32.mrf.mxu0 }
 0x10d   : > { %v1502_v41 = vpop.f32.mrf.mxu1 }
 0x10e   : > { %v11011_v42 = vpop.f32.mrf.mxu0 }
 0x10f   : > { %v11019_v43 = vpop.f32.mrf.mxu1 }
 0x110   : > { %v13081_v44 = vpop.f32.mrf.mxu0  ;;  %v9924_v43 = vld [vmem:[%s14968_s1 + $0x10] ss:$0 sm:$0xff] }
 0x111   : > { %v13083_v45 = vpop.f32.mrf.mxu1 }
 0x112   : > { %v11026_v46 = vpop.f32.mrf.mxu0 }
 0x113   : > { %v11034_v47 = vpop.f32.mrf.mxu1  ;;  %v9925_v46 = vld [vmem:[%s14968_s1 + $0x11] ss:$0 sm:$0xff] }
 0x114   : > { %v1554_v48 = vpop.f32.mrf.mxu0  ;;  %v1240_v47 = vadd.f32 %v9910_v13, %v13069_v21 }
 0x115   : > { %v1606_v49 = vpop.f32.mrf.mxu1  ;;  %v1292_v48 = vadd.f32 %v9911_v14, %v13071_v22 }
 0x116   : > { %v11027_v50 = vpop.f32.mrf.mxu0 }
 0x117   : > { %v11035_v51 = vpop.f32.mrf.mxu1  ;;  %v2964_v21 = vpack.c.bf16 %v1292_v48, %v1292_v48 }
 0x118   : > { %v13085_v52 = vpop.f32.mrf.mxu0 }
 0x119   : > { %v13087_v53 = vpop.f32.mrf.mxu1 }
 0x11a   : > { %v11042_v54 = vpop.f32.mrf.mxu0 }
 0x11b   : > { %v11050_v55 = vpop.f32.mrf.mxu1 }
 0x11c   : > { %v1658_v56 = vpop.f32.mrf.mxu0 }
 0x11d   : > { %v1710_v57 = vpop.f32.mrf.mxu1 }
 0x11e   : > { %v11043_v58 = vpop.f32.mrf.mxu0  ;;  %v2963_v57 = vpack.c.bf16 %v1240_v47, %v1240_v47 }
 0x11f   : > { %v11051_v59 = vpop.f32.mrf.mxu1 }
 0x120   : > { %v1759_v62 = vpop.f32.mrf.mxu0  ;;  %v9912_v59 = vld [vmem:[%s14968_s1 + $0x4] ss:$0 sm:$0xff] }
 0x121   : > { %v1811_v63 = vpop.f32.mrf.mxu1  ;;  %v1760_v0 = vadd.f32 %v9920_v60, %v1759_v62  ;;  %v9913_v60 = vld [vmem:[%s14968_s1 + $0x5] ss:$0 sm:$0xff] }
 0x122   : > { %v1812_v2 = vadd.f32 %v9921_v61, %v1811_v63  ;;  %v11058_v3 = vpop.f32.mrf.mxu0  ;;  %v1396_v7 = vadd.f32 %v9913_v60, %v13075_v29 }
 0x123   : > { %v11066_v4 = vpop.f32.mrf.mxu1  ;;  %v2973_v5 = vpack.c.bf16 %v1760_v0, %v1760_v0 }
 0x124   : > { %v2974_v6 = vpack.c.bf16 %v1812_v2, %v1812_v2  ;;  %v1762_v10 = vpop.f32.mrf.mxu0  ;;  %v9926_v4 = vld [vmem:[%s14968_s1 + $0x12] ss:$0 sm:$0xff] }
 0x125   : > { %v1814_v11 = vpop.f32.mrf.mxu1  ;;  %v3002_v12 = vsel %vm2997_vm2, %v2973_v5, 0  ;;  %v9927_v5 = vld [vmem:[%s14968_s1 + $0x13] ss:$0 sm:$0xff] }
 0x126   : > { %v3048_v15 = vsel %vm2997_vm2, %v2974_v6, 0  ;;  %v11059_v16 = vpop.f32.mrf.mxu0  ;;  %11245 = vmatpush3.bf16.xpose.msra.mxu0 %v3002_v12  ;;  %v1344_v6 = vadd.f32 %v9912_v59, %v13073_v28  ;;  %v2966_v28 = vpack.c.bf16 %v1396_v7, %v1396_v7 }
 0x127   : > { %v11067_v17 = vpop.f32.mrf.mxu1  ;;  %11251 = vmatpush3.bf16.xpose.msra.mxu1 %v3048_v15  ;;  %11256 = vmatprep.subr.bf16.mxu0 %v12453_v1 }
 0x128   : > { %11262 = vmatprep.subr.bf16.mxu1 %v12453_v1  ;;  %v1863_v23 = vpop.f32.mrf.mxu0  ;;  %v2965_v17 = vpack.c.bf16 %v1344_v6, %v1344_v6 }
 0x129   : > { %v1915_v24 = vpop.f32.mrf.mxu1  ;;  %v1864_v25 = vadd.f32 %v9922_v18, %v1863_v23 }
 0x12a   : > { %v1916_v26 = vadd.f32 %v9923_v19, %v1915_v24  ;;  %v11074_v27 = vpop.f32.mrf.mxu0  ;;  %v9914_v19 = vld [vmem:[%s14968_s1 + $0x6] ss:$0 sm:$0xff] }
 0x12b   : > { %v11082_v30 = vpop.f32.mrf.mxu1  ;;  %v2975_v33 = vpack.c.bf16 %v1864_v25, %v1864_v25 }
 0x12c   : > { %v2976_v34 = vpack.c.bf16 %v1916_v26, %v1916_v26  ;;  %v1866_v35 = vpop.f32.mrf.mxu0  ;;  %v9928_v30 = vld [vmem:[%s14968_s1 + $0x14] ss:$0 sm:$0xff] }
 0x12d   : > { %v1918_v38 = vpop.f32.mrf.mxu1  ;;  %v3094_v39 = vsel %vm2997_vm2, %v2975_v33, 0  ;;  %11247 = vmatmul.mubr.msk.bf16.vlgmr.msra.gmra.mxu0 %vm2997_vm2, %v2961_v31  ;;  %v9929_v31 = vld [vmem:[%s14968_s1 + $0x15] ss:$0 sm:$0xff]  ;;  %v1500_v33 = vadd.f32 %v9915_v20, %v13079_v37 }
 0x12e   : > { %v3140_v40 = vsel %vm2997_vm2, %v2976_v34, 0  ;;  %11253 = vmatmul.mubr.msk.bf16.vlgmr.msra.gmra.mxu1 %vm2997_vm2, %v2962_v32  ;;  %v11075_v41 = vpop.f32.mrf.mxu0  ;;  %11257 = vmatpush3.bf16.xpose.msra.mxu0 %v3094_v39  ;;  %v1448_v32 = vadd.f32 %v9914_v19, %v13077_v36 }
 0x12f   : > { %v11083_v42 = vpop.f32.mrf.mxu1  ;;  %11263 = vmatpush3.bf16.xpose.msra.mxu1 %v3140_v40  ;;  %11258 = vmatprep.mubr.msk.bf16.mxu0 %vm12454_vm0, %v12453_v1  ;;  %v2968_v36 = vpack.c.bf16 %v1500_v33, %v1500_v33 }
 0x130   : > { %11264 = vmatprep.mubr.msk.bf16.mxu1 %vm12454_vm0, %v12453_v1  ;;  %v1967_v49 = vpop.f32.mrf.mxu0  ;;  %11268 = vmatprep.subr.bf16.mxu0 %v12453_v1  ;;  %v2967_v40 = vpack.c.bf16 %v1448_v32, %v1448_v32  ;;  %v9916_v42 = vld [vmem:[%s14968_s1 + $0x8] ss:$0 sm:$0xff] }
 0x131   : > { %v2019_v50 = vpop.f32.mrf.mxu1  ;;  %11274 = vmatprep.subr.bf16.mxu1 %v12453_v1  ;;  %v1968_v51 = vadd.f32 %v9924_v43, %v1967_v49  ;;  %v9917_v43 = vld [vmem:[%s14968_s1 + $0x9] ss:$0 sm:$0xff] }
 0x132   : > { %v2020_v54 = vadd.f32 %v9925_v46, %v2019_v50  ;;  %v11090_v55 = vpop.f32.mrf.mxu0 }
 0x133   : > { %v11098_v56 = vpop.f32.mrf.mxu1  ;;  %v2977_v58 = vpack.c.bf16 %v1968_v51, %v1968_v51  ;;  %v9931_v55 = vld [vmem:[%s14968_s1 + $0x17] ss:$0 sm:$0xff] }
 0x134   : > { %v2978_v22 = vpack.c.bf16 %v2020_v54, %v2020_v54  ;;  %v1970_v61 = vpop.f32.mrf.mxu0  ;;  %v9930_v54 = vld [vmem:[%s14968_s1 + $0x16] ss:$0 sm:$0xff]  ;;  %v1552_v56 = vadd.f32 %v9916_v42, %v13081_v44 }
 0x135   : > { %v2022_v62 = vpop.f32.mrf.mxu1  ;;  %v3186_v63 = vsel %vm2997_vm2, %v2977_v58, 0  ;;  %11259 = vmatmul.mubr.msk.bf16.vlgmr.msra.gmra.mxu0 %vm2997_vm2, %v2963_v57  ;;  %v1604_v57 = vadd.f32 %v9917_v43, %v13083_v45 }
 0x136   : > { %v3232_v0 = vsel %vm2997_vm2, %v2978_v22, 0  ;;  %11265 = vmatmul.mubr.msk.bf16.vlgmr.msra.gmra.mxu1 %vm2997_vm2, %v2964_v21  ;;  %v11091_v2 = vpop.f32.mrf.mxu0  ;;  %11269 = vmatpush3.bf16.xpose.msra.mxu0 %v3186_v63  ;;  %v2969_v62 = vpack.c.bf16 %v1552_v56, %v1552_v56 }
 0x137   : > { %v11099_v3 = vpop.f32.mrf.mxu1  ;;  %11275 = vmatpush3.bf16.xpose.msra.mxu1 %v3232_v0  ;;  %11270 = vmatprep.mubr.msk.bf16.mxu0 %vm12454_vm0, %v12453_v1  ;;  %v2970_v44 = vpack.c.bf16 %v1604_v57, %v1604_v57  ;;  %v9918_v0 = vld [vmem:[%s14968_s1 + $0xa] ss:$0 sm:$0xff]  ;;  %v9919_v2 = vld [vmem:[%s14968_s1 + $0xb] ss:$0 sm:$0xff] }
 0x138   : > { %11276 = vmatprep.mubr.msk.bf16.mxu1 %vm12454_vm0, %v12453_v1  ;;  %v2071_v9 = vpop.f32.mrf.mxu0  ;;  %11280 = vmatprep.subr.bf16.mxu0 %v12453_v1 }
 0x139   : > { %v2123_v10 = vpop.f32.mrf.mxu1  ;;  %11286 = vmatprep.subr.bf16.mxu1 %v12453_v1  ;;  %v2072_v11 = vadd.f32 %v9926_v4, %v2071_v9 }
 0x13a   : > { %v2124_v12 = vadd.f32 %v9927_v5, %v2123_v10  ;;  %v11106_v15 = vpop.f32.mrf.mxu0  ;;  %v9932_v10 = vld [vmem:[%s14968_s1 + $0x18] ss:$0 sm:$0xff] }
 0x13b   : > { %v11114_v16 = vpop.f32.mrf.mxu1  ;;  %v2979_v18 = vpack.c.bf16 %v2072_v11, %v2072_v11  ;;  %v9933_v11 = vld [vmem:[%s14968_s1 + $0x19] ss:$0 sm:$0xff]  ;;  %v1708_v15 = vadd.f32 %v9919_v2, %v13087_v53 }
 0x13c   : > { %v2980_v29 = vpack.c.bf16 %v2124_v12, %v2124_v12  ;;  %v2074_v8 = vpop.f32.mrf.mxu0  ;;  %v1656_v12 = vadd.f32 %v9918_v0, %v13085_v52 }
 0x13d   : > { %v2126_v23 = vpop.f32.mrf.mxu1  ;;  %v3278_v24 = vsel %vm2997_vm2, %v2979_v18, 0  ;;  %11271 = vmatmul.mubr.msk.bf16.vlgmr.msra.gmra.mxu0 %vm2997_vm2, %v2965_v17  ;;  %v2972_v20 = vpack.c.bf16 %v1708_v15, %v1708_v15 }
 0x13e   : > { %v3324_v25 = vsel %vm2997_vm2, %v2980_v29, 0  ;;  %11277 = vmatmul.mubr.msk.bf16.vlgmr.msra.gmra.mxu1 %vm2997_vm2, %v2966_v28  ;;  %v11107_v26 = vpop.f32.mrf.mxu0  ;;  %11281 = vmatpush3.bf16.xpose.msra.mxu0 %v3278_v24  ;;  %v2971_v52 = vpack.c.bf16 %v1656_v12, %v1656_v12 }
 0x13f   : > { %v11115_v27 = vpop.f32.mrf.mxu1  ;;  %11287 = vmatpush3.bf16.xpose.msra.mxu1 %v3324_v25  ;;  %11282 = vmatprep.mubr.msk.bf16.mxu0 %vm12454_vm0, %v12453_v1 }
 0x140   : > { %11288 = vmatprep.mubr.msk.bf16.mxu1 %vm12454_vm0, %v12453_v1  ;;  %v2175_v34 = vpop.f32.mrf.mxu0  ;;  %11292 = vmatprep.subr.bf16.mxu0 %v12453_v1 }
 0x141   : > { %v2227_v13 = vpop.f32.mrf.mxu1  ;;  %11298 = vmatprep.subr.bf16.mxu1 %v12453_v1  ;;  %v2176_v14 = vadd.f32 %v9928_v30, %v2175_v34 }
 0x142   : > { %v2228_v35 = vadd.f32 %v9929_v31, %v2227_v13  ;;  %v11122_v38 = vpop.f32.mrf.mxu0 }
 0x143   : > { %v11130_v39 = vpop.f32.mrf.mxu1  ;;  %v2981_v41 = vpack.c.bf16 %v2176_v14, %v2176_v14 }
 0x144   : > { %v2982_v37 = vpack.c.bf16 %v2228_v35, %v2228_v35  ;;  %v2178_v46 = vpop.f32.mrf.mxu0 }
 0x145   : > { %v2230_v47 = vpop.f32.mrf.mxu1  ;;  %v3370_v48 = vsel %vm2997_vm2, %v2981_v41, 0  ;;  %11283 = vmatmul.mubr.msk.bf16.vlgmr.msra.gmra.mxu0 %vm2997_vm2, %v2967_v40 }
 0x146   : > { %v3416_v49 = vsel %vm2997_vm2, %v2982_v37, 0  ;;  %11289 = vmatmul.mubr.msk.bf16.vlgmr.msra.gmra.mxu1 %vm2997_vm2, %v2968_v36  ;;  %v11123_v50 = vpop.f32.mrf.mxu0  ;;  %11293 = vmatpush3.bf16.xpose.msra.mxu0 %v3370_v48 }
 0x147   : > { %v11131_v51 = vpop.f32.mrf.mxu1  ;;  %11299 = vmatpush3.bf16.xpose.msra.mxu1 %v3416_v49  ;;  %11294 = vmatprep.mubr.msk.bf16.mxu0 %vm12454_vm0, %v12453_v1 }
 0x148   : > { %11300 = vmatprep.mubr.msk.bf16.mxu1 %vm12454_vm0, %v12453_v1  ;;  %v2279_v21 = vpop.f32.mrf.mxu0  ;;  %11304 = vmatprep.subr.bf16.mxu0 %v12453_v1 }
 0x149   : > { %v2331_v58 = vpop.f32.mrf.mxu1  ;;  %11310 = vmatprep.subr.bf16.mxu1 %v12453_v1  ;;  %v2280_v22 = vadd.f32 %v9930_v54, %v2279_v21 }
 0x14a   : > { %v2332_v59 = vadd.f32 %v9931_v55, %v2331_v58  ;;  %v11138_v60 = vpop.f32.mrf.mxu0 }
 0x14b   : > { %v11146_v61 = vpop.f32.mrf.mxu1  ;;  %v2983_v63 = vpack.c.bf16 %v2280_v22, %v2280_v22 }
 0x14c   : > { %v2984_v45 = vpack.c.bf16 %v2332_v59, %v2332_v59  ;;  %v2282_v3 = vpop.f32.mrf.mxu0 }
 0x14d   : > { %v2334_v4 = vpop.f32.mrf.mxu1  ;;  %v3462_v5 = vsel %vm2997_vm2, %v2983_v63, 0  ;;  %11295 = vmatmul.mubr.msk.bf16.vlgmr.msra.gmra.mxu0 %vm2997_vm2, %v2969_v62 }
 0x14e   : > { %v3508_v6 = vsel %vm2997_vm2, %v2984_v45, 0  ;;  %11301 = vmatmul.mubr.msk.bf16.vlgmr.msra.gmra.mxu1 %vm2997_vm2, %v2970_v44  ;;  %v11139_v7 = vpop.f32.mrf.mxu0  ;;  %11305 = vmatpush3.bf16.xpose.msra.mxu0 %v3462_v5 }
 0x14f   : > { %v11147_v9 = vpop.f32.mrf.mxu1  ;;  %11311 = vmatpush3.bf16.xpose.msra.mxu1 %v3508_v6  ;;  %11306 = vmatprep.mubr.msk.bf16.mxu0 %vm12454_vm0, %v12453_v1  ;;  %v856_v6 = vld [vmem:[%s14969_s30] sm:$0xff] }
 0x150   : > { %11312 = vmatprep.mubr.msk.bf16.mxu1 %vm12454_vm0, %v12453_v1  ;;  %v2383_v16 = vpop.f32.mrf.mxu0  ;;  %11316 = vmatprep.subr.bf16.mxu0 %v12453_v1  ;;  %v857_v9 = vld [vmem:[%s14969_s30 + $0x8] sm:$0xff] }
 0x151   : > { %v2435_v17 = vpop.f32.mrf.mxu1  ;;  %11322 = vmatprep.subr.bf16.mxu1 %v12453_v1  ;;  %v2384_v28 = vadd.f32 %v9932_v10, %v2383_v16 }
 0x152   : > { %v2436_v18 = vadd.f32 %v9933_v11, %v2435_v17  ;;  %v11154_v29 = vpop.f32.mrf.mxu0 }
 0x153   : > { %v11162_v19 = vpop.f32.mrf.mxu1  ;;  %v2985_v53 = vpack.c.bf16 %v2384_v28, %v2384_v28 }
 0x154   : > { %v2986_v8 = vpack.c.bf16 %v2436_v18, %v2436_v18  ;;  %v2386_v23 = vpop.f32.mrf.mxu0 }
 0x155   : > { %v2438_v24 = vpop.f32.mrf.mxu1  ;;  %11307 = vmatmul.mubr.msk.bf16.vlgmr.msra.gmra.mxu0 %vm2997_vm2, %v2971_v52  ;;  %v3723_v25 = vsel %vm3721_vm3, %v2985_v53, 0  ;;  %v858_v52 = vld [vmem:[%s14969_s30 + $0x10] sm:$0xff]  ;;  %v859_v53 = vld [vmem:[%s14969_s30 + $0x18] sm:$0xff] }
 0x156   : > { %11313 = vmatmul.mubr.msk.bf16.vlgmr.msra.gmra.mxu1 %vm2997_vm2, %v2972_v20  ;;  %v3769_v26 = vsel %vm3721_vm3, %v2986_v8, 0  ;;  %v11155_v27 = vpop.f32.mrf.mxu0  ;;  %11317 = vmatpush3.bf16.msra.mxu0 %v3723_v25 }
 0x157   : > { %v11163_v30 = vpop.f32.mrf.mxu1  ;;  %11323 = vmatpush3.bf16.msra.mxu1 %v3769_v26  ;;  %11318 = vmatprep.mubr.msk.bf16.mxu0 %vm12454_vm0, %v12453_v1 }
 0x158   : > { %11328 = vmatprep.subr.bf16.mxu0 %v12453_v1  ;;  %v13240_v31 = vpop.f32.mrf.mxu0  ;;  %11324 = vmatprep.mubr.msk.bf16.mxu1 %vm12454_vm0, %v12453_v1 }
 0x159   : > { %v13242_v32 = vpop.f32.mrf.mxu1  ;;  %11334 = vmatprep.subr.bf16.mxu1 %v12453_v1 }
 0x15a   : > { %v11170_v33 = vpop.f32.mrf.mxu0 }
 0x15b   : > { %v11178_v34 = vpop.f32.mrf.mxu1 }
 0x15c   : > { %v2490_v13 = vpop.f32.mrf.mxu0 }
 0x15d   : > { %v2542_v14 = vpop.f32.mrf.mxu1 }
 0x15e   : > { %v11171_v35 = vpop.f32.mrf.mxu0 }
 0x15f   : > { %v11179_v38 = vpop.f32.mrf.mxu1  ;;  %v861_v35 = vld [vmem:[%s14969_s30 + $0x28] sm:$0xff] }
 0x160   : > { %v13247_v39 = vpop.f32.mrf.mxu0  ;;  %v860_v38 = vld [vmem:[%s14969_s30 + $0x20] sm:$0xff] }
 0x161   : > { %v13249_v40 = vpop.f32.mrf.mxu1 }
 0x162   : > { %v11186_v36 = vpop.f32.mrf.mxu0 }
 0x163   : > { %v11194_v41 = vpop.f32.mrf.mxu1 }
 0x164   : > { %v2594_v37 = vpop.f32.mrf.mxu0 }
 0x165   : > { %v2646_v42 = vpop.f32.mrf.mxu1 }
 0x166   : > { %v11187_v43 = vpop.f32.mrf.mxu0 }
 0x167   : > { %v11195_v46 = vpop.f32.mrf.mxu1 }
 0x168   : > { %v13251_v47 = vpop.f32.mrf.mxu0 }
 0x169   : > { %v13253_v48 = vpop.f32.mrf.mxu1 }
 0x16a   : > { %v11202_v49 = vpop.f32.mrf.mxu0 }
 0x16b   : > { %v11210_v50 = vpop.f32.mrf.mxu1 }
 0x16c   : > { %v2698_v51 = vpop.f32.mrf.mxu0 }
 0x16d   : > { %v2750_v54 = vpop.f32.mrf.mxu1 }
 0x16e   : > { %v11203_v55 = vpop.f32.mrf.mxu0 }
 0x16f   : > { %v11211_v56 = vpop.f32.mrf.mxu1 }
 0x170   : > { %v13255_v57 = vpop.f32.mrf.mxu0 }
 0x171   : > { %v13257_v21 = vpop.f32.mrf.mxu1 }
 0x172   : > { %v11218_v58 = vpop.f32.mrf.mxu0 }
 0x173   : > { %v11226_v22 = vpop.f32.mrf.mxu1 }
 0x174   : > { %v2802_v59 = vpop.f32.mrf.mxu0  ;;  %v862_v22 = vld [vmem:[%s14969_s30 + $0x30] sm:$0xff] }
 0x175   : > { %v2854_v60 = vpop.f32.mrf.mxu1  ;;  %v863_v59 = vld [vmem:[%s14969_s30 + $0x38] sm:$0xff] }
 0x176   : > { %v11219_v61 = vpop.f32.mrf.mxu0 }
 0x177   : > { %v11227_v62 = vpop.f32.mrf.mxu1 }
 0x178   : > { %v13259_v44 = vpop.f32.mrf.mxu0 }
 0x179   : > { %v13261_v63 = vpop.f32.mrf.mxu1 }
 0x17a   : > { %v11234_v45 = vpop.f32.mrf.mxu0 }
 0x17b   : > { %v11242_v0 = vpop.f32.mrf.mxu1 }
 0x17c   : > { %v2906_v2 = vpop.f32.mrf.mxu0 }
 0x17d   : > { %v2958_v3 = vpop.f32.mrf.mxu1 }
 0x17e   : > { %v11235_v4 = vpop.f32.mrf.mxu0 }
 0x17f   : > { %v11243_v5 = vpop.f32.mrf.mxu1 }
 0x1ed   : > { %v3038_v7 = vpop.f32.mrf.mxu0 }
 0x1ee   : > { %v3084_v10 = vpop.f32.mrf.mxu1  ;;  %v13269_v11 = vmul.f32 %v3038_v7, %v856_v6 }
 0x1ef   : > { %v11248_v12 = vpop.f32.mrf.mxu0  ;;  %v13271_v16 = vmul.f32 %v3084_v10, %v857_v9  ;;  %v864_v10 = vld [vmem:[%s14969_s30 + $0x40] sm:$0xff] }
 0x1f0   : > { %v11254_v15 = vpop.f32.mrf.mxu1  ;;  %v3562_v17 = vsel %vm2997_vm2, %v13269_v11, -inf  ;;  %v865_v12 = vld [vmem:[%s14969_s30 + $0x48] sm:$0xff] }
 0x1f1   : > { %3563 = vmax.xlane.f32.xlu0 %v3562_v17  ;;  %v3041_v18 = vpop.f32.mrf.mxu0  ;;  %v3565_v20 = vsel %vm2997_vm2, %v13271_v16, -inf }
 0x1f2   : > { %v3087_v28 = vpop.f32.mrf.mxu1 }
 0x1f3   : > { %v11249_v29 = vpop.f32.mrf.mxu0 }
 0x1f4   : > { %v11255_v19 = vpop.f32.mrf.mxu1 }
 0x1f5   : > { %3566 = vmax.xlane.f32.xlu0 %v3565_v20  ;;  %v3130_v23 = vpop.f32.mrf.mxu0 }
 0x1f6   : > { %v3176_v8 = vpop.f32.mrf.mxu1  ;;  %v13283_v24 = vmul.f32 %v3130_v23, %v858_v52 }
 0x1f7   : > { %v11260_v25 = vpop.f32.mrf.mxu0  ;;  %v13285_v27 = vmul.f32 %v3176_v8, %v859_v53 }
 0x1f8   : > { %v11266_v26 = vpop.f32.mrf.mxu1  ;;  %v3568_v30 = vsel %vm2997_vm2, %v13283_v24, -inf }
 0x1f9   : > { %3569 = vmax.xlane.f32.xlu1 %v3568_v30  ;;  %v3133_v34 = vpop.f32.mrf.mxu0  ;;  %v3571_v36 = vsel %vm2997_vm2, %v13285_v27, -inf  ;;  %v866_v26 = vld [vmem:[%s14969_s30 + $0x50] sm:$0xff]  ;;  %v867_v30 = vld [vmem:[%s14969_s30 + $0x58] sm:$0xff] }
 0x1fa   : > { %v3179_v33 = vpop.f32.mrf.mxu1 }
 0x1fb   : > { %v11261_v13 = vpop.f32.mrf.mxu0 }
 0x1fc   : > { %v11267_v14 = vpop.f32.mrf.mxu1 }
 0x1fd   : > { %3572 = vmax.xlane.f32.xlu1 %v3571_v36  ;;  %v3222_v37 = vpop.f32.mrf.mxu0 }
 0x1fe   : > { %v3268_v41 = vpop.f32.mrf.mxu1  ;;  %v13299_v43 = vmul.f32 %v3222_v37, %v860_v38 }
 0x1ff   : > { %v13297_v42 = vmul.f32 %v3268_v41, %v861_v35  ;;  %v11272_v46 = vpop.f32.mrf.mxu0 }
 0x200   : > { %v11278_v49 = vpop.f32.mrf.mxu1  ;;  %v3574_v51 = vsel %vm2997_vm2, %v13299_v43, -inf }
 0x201   : > { %v3577_v50 = vsel %vm2997_vm2, %v13297_v42, -inf  ;;  %3575 = vmax.xlane.f32.xlu0 %v3574_v51  ;;  %v3225_v55 = vpop.f32.mrf.mxu0 }
 0x202   : > { %v3271_v54 = vpop.f32.mrf.mxu1  ;;  %3578 = vmax.xlane.f32.xlu1 %v3577_v50 }
 0x203   : > { %v11273_v56 = vpop.f32.mrf.mxu0 }
 0x204   : > { %v11279_v58 = vpop.f32.mrf.mxu1 }
 0x205   : > { %v3314_v60 = vpop.f32.mrf.mxu0 }
 0x206   : > { %v3360_v61 = vpop.f32.mrf.mxu1  ;;  %v13311_v62 = vmul.f32 %v3314_v60, %v862_v22 }
 0x207   : > { %v13313_v45 = vmul.f32 %v3360_v61, %v863_v59  ;;  %v11284_v0 = vpop.f32.mrf.mxu0 }
 0x208   : > { %v11290_v2 = vpop.f32.mrf.mxu1  ;;  %v3580_v4 = vsel %vm2997_vm2, %v13311_v62, -inf }
 0x209   : > { %v3583_v3 = vsel %vm2997_vm2, %v13313_v45, -inf  ;;  %3581 = vmax.xlane.f32.xlu0 %v3580_v4  ;;  %v3317_v6 = vpop.f32.mrf.mxu0 }
 0x20a   : > { %v3363_v5 = vpop.f32.mrf.mxu1  ;;  %3584 = vmax.xlane.f32.xlu1 %v3583_v3 }
 0x20b   : > { %v11285_v7 = vpop.f32.mrf.mxu0 }
 0x20c   : > { %v11291_v9 = vpop.f32.mrf.mxu1 }
 0x20d   : > { %v3406_v15 = vpop.f32.mrf.mxu0 }
 0x20e   : > { %v3452_v17 = vpop.f32.mrf.mxu1  ;;  %v13325_v28 = vmul.f32 %v3406_v15, %v864_v10 }
 0x20f   : > { %v13327_v18 = vmul.f32 %v3452_v17, %v865_v12  ;;  %v11296_v29 = vpop.f32.mrf.mxu0 }
 0x210   : > { %v11302_v19 = vpop.f32.mrf.mxu1  ;;  %v3586_v20 = vsel %vm2997_vm2, %v13325_v28, -inf }
 0x211   : > { %v3589_v52 = vsel %vm2997_vm2, %v13327_v18, -inf  ;;  %3587 = vmax.xlane.f32.xlu0 %v3586_v20  ;;  %v3409_v8 = vpop.f32.mrf.mxu0 }
 0x212   : > { %v3455_v53 = vpop.f32.mrf.mxu1  ;;  %3590 = vmax.xlane.f32.xlu1 %v3589_v52 }
 0x213   : > { %v11297_v23 = vpop.f32.mrf.mxu0 }
 0x214   : > { %v11303_v25 = vpop.f32.mrf.mxu1 }
 0x215   : > { %v3498_v33 = vpop.f32.mrf.mxu0 }
 0x216   : > { %v3544_v34 = vpop.f32.mrf.mxu1  ;;  %v13339_v13 = vmul.f32 %v3498_v33, %v866_v26 }
 0x217   : > { %v13341_v14 = vmul.f32 %v3544_v34, %v867_v30  ;;  %v11308_v35 = vpop.f32.mrf.mxu0 }
 0x218   : > { %v11314_v38 = vpop.f32.mrf.mxu1  ;;  %v3592_v41 = vsel %vm2997_vm2, %v13339_v13, -inf }
 0x219   : > { %v3595_v36 = vsel %vm2997_vm2, %v13341_v14, -inf  ;;  %3593 = vmax.xlane.f32.xlu0 %v3592_v41  ;;  %v3501_v46 = vpop.f32.mrf.mxu0 }
 0x21a   : > { %v3547_v37 = vpop.f32.mrf.mxu1  ;;  %3596 = vmax.xlane.f32.xlu1 %v3595_v36 }
 0x21b   : > { %v11309_v49 = vpop.f32.mrf.mxu0 }
 0x21c   : > { %v11315_v50 = vpop.f32.mrf.mxu1 }
 0x27a   : > { %v3564_v51 = vpop.xlane.xlu0 %3563 }
 0x27b   : > { %v3598_v54 = vsub.f32 %v13269_v11, %v3564_v51 }
 0x27d   : > { %v3610_v55 = vmul.f32 1.442695, %v3598_v54 }
 0x27e   : > { %v3567_v56 = vpop.xlane.xlu0 %3566 }
 0x27f   : > { %12252 = vpow2.f32 %v3610_v55  ;;  %v3599_v58 = vsub.f32 %v13271_v16, %v3567_v56 }
 0x281   : > { %v3612_v22 = vmul.f32 1.442695, %v3599_v58 }
 0x282   : > { %v3570_v59 = vpop.xlane.xlu1 %3569 }
 0x283   : > { %12254 = vpow2.f32 %v3612_v22  ;;  %v3600_v60 = vsub.f32 %v13283_v24, %v3570_v59 }
 0x285   : > { %v3614_v61 = vmul.f32 1.442695, %v3600_v60 }
 0x286   : > { %v3573_v0 = vpop.xlane.xlu1 %3572 }
 0x287   : > { %12256 = vpow2.f32 %v3614_v61  ;;  %v3601_v2 = vsub.f32 %v13285_v27, %v3573_v0  ;;  %v9934_v0 = vld [vmem:[%s14968_s1 + $0x1a] ss:$0 sm:$0xff] }
 0x289   : > { %v3616_v3 = vmul.f32 1.442695, %v3601_v2 }
 0x28a   : > { %v3576_v5 = vpop.xlane.xlu0 %3575 }
 0x28b   : > { %v3579_v4 = vpop.xlane.xlu1 %3578  ;;  %12258 = vpow2.f32 %v3616_v3  ;;  %v3602_v6 = vsub.f32 %v13299_v43, %v3576_v5  ;;  %v2488_v3 = vadd.f32 %v9934_v0, %v13240_v31 }
 0x28c   : > { %v3603_v11 = vsub.f32 %v13297_v42, %v3579_v4  ;;  %v13353_v7 = vpop.eup %12252  ;;  %v9935_v4 = vld [vmem:[%s14968_s1 + $0x1b] ss:$0 sm:$0xff] }
 0x28d   : > { %v3618_v9 = vmul.f32 1.442695, %v3602_v6  ;;  %v3634_v24 = vsel %vm2997_vm2, %v13353_v7, 0.0  ;;  %v2987_v6 = vpack.c.bf16 %v2488_v3, %v2488_v3 }
 0x28e   : > { %v3620_v16 = vmul.f32 1.442695, %v3603_v11  ;;  %3635 = vadd.xlane.f32.xlu0 %v3634_v24  ;;  %v9936_v24 = vld [vmem:[%s14968_s1 + $0x1c] ss:$0 sm:$0xff] }
 0x290   : > { %12260 = vpow2.f32 %v3620_v16  ;;  %v13357_v10 = vpop.eup %12254  ;;  %v2540_v16 = vadd.f32 %v9935_v4, %v13242_v32  ;;  %v3815_v32 = vsel %vm3721_vm3, %v2987_v6, 0  ;;  %v9942_v6 = vld [vmem:[%s14968_s1 + $0x22] ss:$0 sm:$0xff] }
 0x291   : > { %12262 = vpow2.f32 %v3618_v9  ;;  %v3637_v27 = vsel %vm2997_vm2, %v13357_v10, 0.0 }
 0x292   : > { %3638 = vadd.xlane.f32.xlu1 %v3637_v27  ;;  %v3582_v42 = vpop.xlane.xlu0 %3581 }
 0x293   : > { %v3585_v12 = vpop.xlane.xlu1 %3584  ;;  %v3604_v15 = vsub.f32 %v13311_v62, %v3582_v42 }
 0x294   : > { %v3605_v43 = vsub.f32 %v13313_v45, %v3585_v12  ;;  %v13363_v17 = vpop.eup %12256 }
 0x295   : > { %v3622_v19 = vmul.f32 1.442695, %v3604_v15  ;;  %v3640_v52 = vsel %vm2997_vm2, %v13363_v17, 0.0 }
 0x296   : > { %v3624_v29 = vmul.f32 1.442695, %v3605_v43  ;;  %3641 = vadd.xlane.f32.xlu0 %v3640_v52  ;;  %v2988_v43 = vpack.c.bf16 %v2540_v16, %v2540_v16 }
 0x298   : > { %12264 = vpow2.f32 %v3624_v29  ;;  %v13367_v20 = vpop.eup %12258  ;;  %v9937_v29 = vld [vmem:[%s14968_s1 + $0x1d] ss:$0 sm:$0xff] }
 0x299   : > { %12266 = vpow2.f32 %v3622_v19  ;;  %v3643_v53 = vsel %vm2997_vm2, %v13367_v20, 0.0 }
 0x29a   : > { %3644 = vadd.xlane.f32.xlu1 %v3643_v53  ;;  %v3588_v45 = vpop.xlane.xlu0 %3587 }
 0x29b   : > { %v3591_v8 = vpop.xlane.xlu1 %3590  ;;  %v3606_v23 = vsub.f32 %v13325_v28, %v3588_v45 }
 0x29c   : > { %v3607_v62 = vsub.f32 %v13327_v18, %v3591_v8 }
 0x29d   : > { %v13373_v25 = vpop.eup %12260  ;;  %v3626_v33 = vmul.f32 1.442695, %v3606_v23 }
 0x29e   : > { %v13375_v26 = vpop.eup %12262  ;;  %v3628_v30 = vmul.f32 1.442695, %v3607_v62  ;;  %v3649_v34 = vsel %vm2997_vm2, %v13373_v25, 0.0  ;;  %v9938_v62 = vld [vmem:[%s14968_s1 + $0x1e] ss:$0 sm:$0xff] }
 0x29f   : > { %3650 = vadd.xlane.f32.xlu1 %v3649_v34  ;;  %v3646_v35 = vsel %vm2997_vm2, %v13375_v26, 0.0 }
 0x2a0   : > { %12268 = vpow2.f32 %v3628_v30  ;;  %3647 = vadd.xlane.f32.xlu0 %v3646_v35  ;;  %v2696_v35 = vadd.f32 %v9938_v62, %v13251_v47 }
 0x2a1   : > { %12270 = vpow2.f32 %v3626_v33 }
 0x2a2   : > { %v3594_v18 = vpop.xlane.xlu0 %3593 }
 0x2a3   : > { %v3597_v38 = vpop.xlane.xlu1 %3596  ;;  %v3608_v36 = vsub.f32 %v13339_v13, %v3594_v18 }
 0x2a4   : > { %v3609_v28 = vsub.f32 %v13341_v14, %v3597_v38  ;;  %v9939_v38 = vld [vmem:[%s14968_s1 + $0x1f] ss:$0 sm:$0xff] }
 0x2a5   : > { %v13383_v41 = vpop.eup %12264  ;;  %v3630_v49 = vmul.f32 1.442695, %v3608_v36  ;;  %v2748_v47 = vadd.f32 %v9939_v38, %v13253_v48 }
 0x2a6   : > { %v13385_v37 = vpop.eup %12266  ;;  %v3632_v46 = vmul.f32 1.442695, %v3609_v28  ;;  %v3655_v50 = vsel %vm2997_vm2, %v13383_v41, 0.0 }
 0x2a7   : > { %3656 = vadd.xlane.f32.xlu1 %v3655_v50  ;;  %v3652_v51 = vsel %vm2997_vm2, %v13385_v37, 0.0 }
 0x2a8   : > { %12272 = vpow2.f32 %v3632_v46  ;;  %3653 = vadd.xlane.f32.xlu0 %v3652_v51 }
 0x2a9   : > { %12274 = vpow2.f32 %v3630_v49  ;;  %v2991_v49 = vpack.c.bf16 %v2696_v35, %v2696_v35 }
 0x2ad   : > { %v13391_v54 = vpop.eup %12268 }
 0x2ae   : > { %v13393_v13 = vpop.eup %12270  ;;  %v3661_v14 = vsel %vm2997_vm2, %v13391_v54, 0.0 }
 0x2af   : > { %3662 = vadd.xlane.f32.xlu1 %v3661_v14  ;;  %v3658_v55 = vsel %vm2997_vm2, %v13393_v13, 0.0  ;;  %v9940_v14 = vld [vmem:[%s14968_s1 + $0x20] ss:$0 sm:$0xff] }
 0x2b0   : > { %3659 = vadd.xlane.f32.xlu0 %v3658_v55 }
 0x2b5   : > { %v13399_v56 = vpop.eup %12272 }
 0x2b6   : > { %v13401_v58 = vpop.eup %12274  ;;  %v3667_v22 = vsel %vm2997_vm2, %v13399_v56, 0.0 }
 0x2b7   : > { %3668 = vadd.xlane.f32.xlu1 %v3667_v22  ;;  %v3664_v59 = vsel %vm2997_vm2, %v13401_v58, 0.0  ;;  %v2800_v22 = vadd.f32 %v9940_v14, %v13255_v57 }
 0x2b8   : > { %3665 = vadd.xlane.f32.xlu0 %v3664_v59  ;;  %v9941_v59 = vld [vmem:[%s14968_s1 + $0x21] ss:$0 sm:$0xff] }
 0x2b9   : > { %v2852_v57 = vadd.f32 %v9941_v59, %v13257_v21  ;;  %v2993_v4 = vpack.c.bf16 %v2800_v22, %v2800_v22 }
 0x317   : > { %v3636_v60 = vpop.xlane.xlu0 %3635 }
 0x318   : > { %12276 = vrcp.f32 %v3636_v60 }
 0x31b   : > { %v3639_v61 = vpop.xlane.xlu1 %3638 }
 0x31c   : > { %12278 = vrcp.f32 %v3639_v61 }
 0x31f   : > { %v3642_v2 = vpop.xlane.xlu0 %3641 }
 0x320   : > { %12280 = vrcp.f32 %v3642_v2 }
 0x323   : > { %v3645_v5 = vpop.xlane.xlu1 %3644 }
 0x324   : > { %12282 = vrcp.f32 %v3645_v5 }
 0x325   : > { %v12277_v11 = vpop.eup %12276 }
 0x326   : > { %v3682_v9 = vmul.f32 %v12277_v11, %v13353_v7  ;;  %v2592_v7 = vadd.f32 %v9936_v24, %v13247_v39  ;;  %v3861_v39 = vsel %vm3721_vm3, %v2988_v43, 0  ;;  %v9943_v24 = vld [vmem:[%s14968_s1 + $0x23] ss:$0 sm:$0xff] }
 0x328   : > { %v3651_v27 = vpop.xlane.xlu1 %3650  ;;  %v3706_v31 = vpack.c.bf16 %v3682_v9, %v3682_v9  ;;  %3694 = vst.msk [vmem:[%s13423_s26] sm:$0xff] %vm2997_vm2, %v3682_v9  ;;  %v2989_v53 = vpack.c.bf16 %v2592_v7, %v2592_v7  ;;  %v2904_v9 = vadd.f32 %v9942_v6, %v13259_v44  ;;  %v2956_v44 = vadd.f32 %v9943_v24, %v13261_v63 }
 0x329   : > { %12284 = vrcp.f32 %v3651_v27  ;;  %v3648_v12 = vpop.xlane.xlu0 %3647  ;;  %v12279_v42 = vpop.eup %12278 }
 0x32a   : > { %12286 = vrcp.f32 %v3648_v12  ;;  %11319 = vmatmul.mubr.msk.bf16.vlgmr.msra.gmra.mxu0 %vm2997_vm2, %v3706_v31  ;;  %v3683_v15 = vmul.f32 %v12279_v42, %v13357_v10  ;;  %v2644_v10 = vadd.f32 %v9937_v29, %v13249_v40  ;;  %v2995_v43 = vpack.c.bf16 %v2904_v9, %v2904_v9 }
 0x32b   : > { %11329 = vmatpush3.bf16.msra.mxu0 %v3815_v32  ;;  %11330 = vmatprep.mubr.msk.bf16.mxu0 %vm12454_vm0, %v12453_v1  ;;  %v2996_v29 = vpack.c.bf16 %v2956_v44, %v2956_v44 }
 0x32c   : > { %v3707_v19 = vpack.c.bf16 %v3683_v15, %v3683_v15  ;;  %11340 = vmatprep.subr.bf16.mxu0 %v12453_v1  ;;  %3695 = vst.msk [vmem:[%s13423_s26 + $0x8] sm:$0xff] %vm2997_vm2, %v3683_v15  ;;  %v2990_v33 = vpack.c.bf16 %v2644_v10, %v2644_v10  ;;  %v4183_v63 = vsel %vm3721_vm3, %v2995_v43, 0  ;;  %v853_v43 = vld [vmem:[%s14970_s28 + $0x24] sm:$0xf] }
 0x32d   : > { %v12281_v52 = vpop.eup %12280 }
 0x32e   : > { %11325 = vmatmul.mubr.msk.bf16.vlgmr.msra.gmra.mxu1 %vm2997_vm2, %v3707_v19  ;;  %v3684_v8 = vmul.f32 %v12281_v52, %v13363_v17  ;;  %v3907_v17 = vsel %vm3721_vm3, %v2989_v53, 0  ;;  %v4229_v52 = vsel %vm3721_vm3, %v2996_v29, 0  ;;  %v844_v53 = vld [vmem:[%s14970_s28] sm:$0xf] }
 0x32f   : > { %11335 = vmatpush3.bf16.msra.mxu1 %v3861_v39  ;;  %11336 = vmatprep.mubr.msk.bf16.mxu1 %vm12454_vm0, %v12453_v1 }
 0x330   : > { %v3657_v45 = vpop.xlane.xlu1 %3656  ;;  %v3708_v30 = vpack.c.bf16 %v3684_v8, %v3684_v8  ;;  %11346 = vmatprep.subr.bf16.mxu1 %v12453_v1  ;;  %3696 = vst.msk [vmem:[%s13423_s26 + $0x10] sm:$0xff] %vm2997_vm2, %v3684_v8 }
 0x331   : > { %12288 = vrcp.f32 %v3657_v45  ;;  %v3654_v23 = vpop.xlane.xlu0 %3653  ;;  %v12283_v40 = vpop.eup %12282  ;;  %v4287_v45 = vsel %vm3721_vm3, %v844_v53, 0 }
 0x332   : > { %12290 = vrcp.f32 %v3654_v23  ;;  %11331 = vmatmul.mubr.msk.bf16.vlgmr.msra.gmra.mxu0 %vm2997_vm2, %v3708_v30  ;;  %v3685_v34 = vmul.f32 %v12283_v40, %v13367_v20  ;;  %v3953_v20 = vsel %vm3721_vm3, %v2990_v33, 0  ;;  %v846_v23 = vld [vmem:[%s14970_s28 + $0x8] sm:$0xf] }
 0x333   : > { %11341 = vmatpush3.bf16.msra.mxu0 %v3907_v17  ;;  %11342 = vmatprep.mubr.msk.bf16.mxu0 %vm12454_vm0, %v12453_v1  ;;  %v4379_v17 = vsel %vm3721_vm3, %v846_v23, 0 }
 0x334   : > { %v3709_v18 = vpack.c.bf16 %v3685_v34, %v3685_v34  ;;  %11352 = vmatprep.subr.bf16.mxu0 %v12453_v1  ;;  %3697 = vst.msk [vmem:[%s13423_s26 + $0x18] sm:$0xff] %vm2997_vm2, %v3685_v34  ;;  %v847_v34 = vld [vmem:[%s14970_s28 + $0xc] sm:$0xf] }
 0x336   : > { %v12285_v28 = vpop.eup %12284  ;;  %11337 = vmatmul.mubr.msk.bf16.vlgmr.msra.gmra.mxu1 %vm2997_vm2, %v3709_v18 }
 0x337   : > { %v12287_v36 = vpop.eup %12286  ;;  %v3687_v46 = vmul.f32 %v12285_v28, %v13373_v25  ;;  %11347 = vmatpush3.bf16.msra.mxu1 %v3953_v20  ;;  %11348 = vmatprep.mubr.msk.bf16.mxu1 %vm12454_vm0, %v12453_v1  ;;  %v2992_v25 = vpack.c.bf16 %v2748_v47, %v2748_v47  ;;  %v4425_v28 = vsel %vm3721_vm3, %v847_v34, 0  ;;  %v848_v47 = vld [vmem:[%s14970_s28 + $0x10] sm:$0xf] }
 0x338   : > { %v3663_v50 = vpop.xlane.xlu1 %3662  ;;  %v3686_v51 = vmul.f32 %v12287_v36, %v13375_v26  ;;  %11358 = vmatprep.subr.bf16.mxu1 %v12453_v1  ;;  %v3999_v26 = vsel %vm3721_vm3, %v2991_v49, 0 }
 0x339   : > { %12292 = vrcp.f32 %v3663_v50  ;;  %v3660_v55 = vpop.xlane.xlu0 %3659  ;;  %3699 = vst.msk [vmem:[%s13423_s26 + $0x28] sm:$0xff] %vm2997_vm2, %v3687_v46  ;;  %v3711_v60 = vpack.c.bf16 %v3687_v46, %v3687_v46  ;;  %v4045_v2 = vsel %vm3721_vm3, %v2992_v25, 0 }
 0x33a   : > { %12294 = vrcp.f32 %v3660_v55  ;;  %v3710_v48 = vpack.c.bf16 %v3686_v51, %v3686_v51  ;;  %3698 = vst.msk [vmem:[%s13423_s26 + $0x20] sm:$0xff] %vm2997_vm2, %v3686_v51  ;;  %v4471_v51 = vsel %vm3721_vm3, %v848_v47, 0 }
 0x33c   : > { %11343 = vmatmul.mubr.msk.bf16.vlgmr.msra.gmra.mxu0 %vm2997_vm2, %v3710_v48  ;;  %v849_v48 = vld [vmem:[%s14970_s28 + $0x14] sm:$0xf] }
 0x33d   : > { %11353 = vmatpush3.bf16.msra.mxu0 %v3999_v26  ;;  %11354 = vmatprep.mubr.msk.bf16.mxu0 %vm12454_vm0, %v12453_v1  ;;  %v4517_v59 = vsel %vm3721_vm3, %v849_v48, 0 }
 0x33e   : > { %v12289_v61 = vpop.eup %12288  ;;  %11364 = vmatprep.subr.bf16.mxu0 %v12453_v1  ;;  %11349 = vmatmul.mubr.msk.bf16.vlgmr.msra.gmra.mxu1 %vm2997_vm2, %v3711_v60 }
 0x33f   : > { %v12291_v0 = vpop.eup %12290  ;;  %v3689_v3 = vmul.f32 %v12289_v61, %v13383_v41  ;;  %11359 = vmatpush3.bf16.msra.mxu1 %v4045_v2  ;;  %11360 = vmatprep.mubr.msk.bf16.mxu1 %vm12454_vm0, %v12453_v1  ;;  %v2994_v41 = vpack.c.bf16 %v2852_v57, %v2852_v57 }
 0x340   : > { %v3669_v5 = vpop.xlane.xlu1 %3668  ;;  %v3688_v11 = vmul.f32 %v12291_v0, %v13385_v37  ;;  %11370 = vmatprep.subr.bf16.mxu1 %v12453_v1  ;;  %v4091_v37 = vsel %vm3721_vm3, %v2993_v4, 0  ;;  %v850_v0 = vld [vmem:[%s14970_s28 + $0x18] sm:$0xf] }
 0x341   : > { %12296 = vrcp.f32 %v3669_v5  ;;  %v3666_v16 = vpop.xlane.xlu0 %3665  ;;  %3701 = vst.msk [vmem:[%s13423_s26 + $0x38] sm:$0xff] %vm2997_vm2, %v3689_v3  ;;  %v3713_v27 = vpack.c.bf16 %v3689_v3, %v3689_v3  ;;  %v4137_v42 = vsel %vm3721_vm3, %v2994_v41, 0  ;;  %v4563_v5 = vsel %vm3721_vm3, %v850_v0, 0 }
 0x342   : > { %12298 = vrcp.f32 %v3666_v16  ;;  %v3712_v21 = vpack.c.bf16 %v3688_v11, %v3688_v11  ;;  %3700 = vst.msk [vmem:[%s13423_s26 + $0x30] sm:$0xff] %vm2997_vm2, %v3688_v11  ;;  %v851_v11 = vld [vmem:[%s14970_s28 + $0x1c] sm:$0xf] }
 0x344   : > { %11355 = vmatmul.mubr.msk.bf16.vlgmr.msra.gmra.mxu0 %vm2997_vm2, %v3712_v21 }
 0x345   : > { %11365 = vmatpush3.bf16.msra.mxu0 %v4091_v37  ;;  %11366 = vmatprep.mubr.msk.bf16.mxu0 %vm12454_vm0, %v12453_v1  ;;  %v4609_v37 = vsel %vm3721_vm3, %v851_v11, 0 }
 0x346   : > { %v12293_v12 = vpop.eup %12292  ;;  %11376 = vmatprep.subr.bf16.mxu0 %v12453_v1  ;;  %11361 = vmatmul.mubr.msk.bf16.vlgmr.msra.gmra.mxu1 %vm2997_vm2, %v3713_v27  ;;  %v852_v27 = vld [vmem:[%s14970_s28 + $0x20] sm:$0xf] }
 0x347   : > { %v12295_v31 = vpop.eup %12294  ;;  %v3691_v32 = vmul.f32 %v12293_v12, %v13391_v54  ;;  %11371 = vmatpush3.bf16.msra.mxu1 %v4137_v42  ;;  %11372 = vmatprep.mubr.msk.bf16.mxu1 %vm12454_vm0, %v12453_v1 }
 0x348   : > { %v3690_v7 = vmul.f32 %v12295_v31, %v13393_v13  ;;  %11382 = vmatprep.subr.bf16.mxu1 %v12453_v1 }
 0x349   : > { %3703 = vst.msk [vmem:[%s13423_s26 + $0x48] sm:$0xff] %vm2997_vm2, %v3691_v32  ;;  %v3715_v54 = vpack.c.bf16 %v3691_v32, %v3691_v32  ;;  %v4655_v32 = vsel %vm3721_vm3, %v852_v27, 0 }
 0x34a   : > { %v3714_v15 = vpack.c.bf16 %v3690_v7, %v3690_v7  ;;  %3702 = vst.msk [vmem:[%s13423_s26 + $0x40] sm:$0xff] %vm2997_vm2, %v3690_v7 }
 0x34c   : > { %11367 = vmatmul.mubr.msk.bf16.vlgmr.msra.gmra.mxu0 %vm2997_vm2, %v3714_v15 }
 0x34d   : > { %11377 = vmatpush3.bf16.msra.mxu0 %v4183_v63  ;;  %11378 = vmatprep.mubr.msk.bf16.mxu0 %vm12454_vm0, %v12453_v1 }
 0x34e   : > { %v12297_v13 = vpop.eup %12296  ;;  %11388 = vmatprep.subr.bf16.mxu0 %v12453_v1  ;;  %11373 = vmatmul.mubr.msk.bf16.vlgmr.msra.gmra.mxu1 %vm2997_vm2, %v3715_v54  ;;  %v4701_v54 = vsel %vm3721_vm3, %v853_v43, 0 }
 0x34f   : > { %v12299_v19 = vpop.eup %12298  ;;  %v3693_v39 = vmul.f32 %v12297_v13, %v13399_v56  ;;  %11383 = vmatpush3.bf16.msra.mxu1 %v4229_v52  ;;  %11384 = vmatprep.mubr.msk.bf16.mxu1 %vm12454_vm0, %v12453_v1  ;;  %v854_v52 = vld [vmem:[%s14970_s28 + $0x28] sm:$0xf] }
 0x350   : > { %v3692_v10 = vmul.f32 %v12299_v19, %v13401_v58  ;;  %11394 = vmatprep.subr.bf16.mxu1 %v12453_v1  ;;  %v845_v58 = vld [vmem:[%s14970_s28 + $0x4] sm:$0xf] }
 0x351   : > { %3705 = vst.msk [vmem:[%s13423_s26 + $0x58] sm:$0xff] %vm2997_vm2, %v3693_v39  ;;  %v3717_v56 = vpack.c.bf16 %v3693_v39, %v3693_v39  ;;  %v4333_v62 = vsel %vm3721_vm3, %v845_v58, 0 }
 0x352   : > { %v3716_v8 = vpack.c.bf16 %v3692_v10, %v3692_v10  ;;  %3704 = vst.msk [vmem:[%s13423_s26 + $0x50] sm:$0xff] %vm2997_vm2, %v3692_v10 }
 0x354   : > { %11379 = vmatmul.mubr.msk.bf16.vlgmr.msra.gmra.mxu0 %vm2997_vm2, %v3716_v8 }
 0x355   : > { %11389 = vmatpush3.bf16.msra.mxu0 %v4287_v45  ;;  %11390 = vmatprep.mubr.msk.bf16.mxu0 %vm12454_vm0, %v12453_v1  ;;  %v4747_v45 = vsel %vm3721_vm3, %v854_v52, 0 }
 0x356   : > { %11400 = vmatprep.subr.bf16.mxu0 %v12453_v1  ;;  %11385 = vmatmul.mubr.msk.bf16.vlgmr.msra.gmra.mxu1 %vm2997_vm2, %v3717_v56  ;;  %v855_v56 = vld [vmem:[%s14970_s28 + $0x2c] sm:$0xf] }
 0x357   : > { %11396 = vmatprep.mubr.msk.bf16.mxu1 %vm12454_vm0, %v12453_v1  ;;  %11395 = vmatpush3.bf16.msra.mxu1 %v4333_v62 }
 0x358   : > { %11406 = vmatprep.subr.bf16.mxu1 %v12453_v1 }
 0x3ea   : > { %v3759_v30 = vpop.f32.mrf.mxu0 }
 0x3eb   : > { %v4271_v40 = vpack.c.bf16 %v3759_v30, %v3759_v30 }
 0x3ec   : > { %v11320_v33 = vpop.f32.mrf.mxu0 }
 0x3ed   : > { %11391 = vmatmul.mubr.msk.bf16.vlgmr.msra.gmra.mxu0 %vm2997_vm2, %v4271_v40  ;;  %v4793_v40 = vsel %vm3721_vm3, %v855_v56, 0 }
 0x3ee   : > { %v3762_v35 = vpop.f32.mrf.mxu0  ;;  %v3805_v38 = vpop.f32.mrf.mxu1  ;;  %11401 = vmatpush3.bf16.msra.mxu0 %v4379_v17  ;;  %11402 = vmatprep.mubr.msk.bf16.mxu0 %vm12454_vm0, %v12453_v1 }
 0x3ef   : > { %v4272_v18 = vpack.c.bf16 %v3805_v38, %v3805_v38  ;;  %11412 = vmatprep.subr.bf16.mxu0 %v12453_v1 }
 0x3f0   : > { %v11321_v36 = vpop.f32.mrf.mxu0  ;;  %v11326_v20 = vpop.f32.mrf.mxu1 }
 0x3f1   : > { %11397 = vmatmul.mubr.msk.bf16.vlgmr.msra.gmra.mxu1 %vm2997_vm2, %v4272_v18 }
 0x3f2   : > { %v3808_v46 = vpop.f32.mrf.mxu1  ;;  %v3851_v49 = vpop.f32.mrf.mxu0  ;;  %11407 = vmatpush3.bf16.msra.mxu1 %v4425_v28  ;;  %11408 = vmatprep.mubr.msk.bf16.mxu1 %vm12454_vm0, %v12453_v1 }
 0x3f3   : > { %v4273_v50 = vpack.c.bf16 %v3851_v49, %v3851_v49  ;;  %11418 = vmatprep.subr.bf16.mxu1 %v12453_v1 }
 0x3f4   : > { %v11327_v14 = vpop.f32.mrf.mxu1  ;;  %v11332_v55 = vpop.f32.mrf.mxu0 }
 0x3f5   : > { %11403 = vmatmul.mubr.msk.bf16.vlgmr.msra.gmra.mxu0 %vm2997_vm2, %v4273_v50 }
 0x3f6   : > { %v3854_v25 = vpop.f32.mrf.mxu0  ;;  %v3897_v26 = vpop.f32.mrf.mxu1  ;;  %11413 = vmatpush3.bf16.msra.mxu0 %v4471_v51  ;;  %11414 = vmatprep.mubr.msk.bf16.mxu0 %vm12454_vm0, %v12453_v1 }
 0x3f7   : > { %v4274_v22 = vpack.c.bf16 %v3897_v26, %v3897_v26  ;;  %11424 = vmatprep.subr.bf16.mxu0 %v12453_v1 }
 0x3f8   : > { %v11333_v60 = vpop.f32.mrf.mxu0  ;;  %v11338_v61 = vpop.f32.mrf.mxu1 }
 0x3f9   : > { %11409 = vmatmul.mubr.msk.bf16.vlgmr.msra.gmra.mxu1 %vm2997_vm2, %v4274_v22 }
 0x3fa   : > { %v3900_v2 = vpop.f32.mrf.mxu1  ;;  %11419 = vmatpush3.bf16.msra.mxu1 %v4517_v59  ;;  %11420 = vmatprep.mubr.msk.bf16.mxu1 %vm12454_vm0, %v12453_v1 }
 0x3fb   : > { %11430 = vmatprep.subr.bf16.mxu1 %v12453_v1 }
 0x3fc   : > { %v3943_v57 = vpop.f32.mrf.mxu0  ;;  %v11339_v4 = vpop.f32.mrf.mxu1 }
 0x3fd   : > { %v4275_v3 = vpack.c.bf16 %v3943_v57, %v3943_v57 }
 0x3fe   : > { %v11344_v6 = vpop.f32.mrf.mxu0  ;;  %v3989_v16 = vpop.f32.mrf.mxu1 }
 0x3ff   : > { %11415 = vmatmul.mubr.msk.bf16.vlgmr.msra.gmra.mxu0 %vm2997_vm2, %v4275_v3  ;;  %v4276_v41 = vpack.c.bf16 %v3989_v16, %v3989_v16 }
 0x400   : > { %v3946_v21 = vpop.f32.mrf.mxu0  ;;  %11425 = vmatpush3.bf16.msra.mxu0 %v4563_v5  ;;  %11426 = vmatprep.mubr.msk.bf16.mxu0 %vm12454_vm0, %v12453_v1  ;;  %v11350_v9 = vpop.f32.mrf.mxu1 }
 0x401   : > { %11436 = vmatprep.subr.bf16.mxu0 %v12453_v1  ;;  %11421 = vmatmul.mubr.msk.bf16.vlgmr.msra.gmra.mxu1 %vm2997_vm2, %v4276_v41 }
 0x402   : > { %v11345_v24 = vpop.f32.mrf.mxu0  ;;  %v3992_v12 = vpop.f32.mrf.mxu1  ;;  %11431 = vmatpush3.bf16.msra.mxu1 %v4609_v37  ;;  %11432 = vmatprep.mubr.msk.bf16.mxu1 %vm12454_vm0, %v12453_v1 }
 0x403   : > { %11442 = vmatprep.subr.bf16.mxu1 %v12453_v1 }
 0x404   : > { %v4035_v31 = vpop.f32.mrf.mxu0  ;;  %v11351_v44 = vpop.f32.mrf.mxu1 }
 0x405   : > { %v4277_v42 = vpack.c.bf16 %v4035_v31, %v4035_v31 }
 0x406   : > { %v11356_v7 = vpop.f32.mrf.mxu0  ;;  %v4081_v15 = vpop.f32.mrf.mxu1 }
 0x407   : > { %11427 = vmatmul.mubr.msk.bf16.vlgmr.msra.gmra.mxu0 %vm2997_vm2, %v4277_v42  ;;  %v4278_v63 = vpack.c.bf16 %v4081_v15, %v4081_v15 }
 0x408   : > { %v4038_v29 = vpop.f32.mrf.mxu0  ;;  %11437 = vmatpush3.bf16.msra.mxu0 %v4655_v32  ;;  %11438 = vmatprep.mubr.msk.bf16.mxu0 %vm12454_vm0, %v12453_v1  ;;  %v11362_v13 = vpop.f32.mrf.mxu1 }
 0x409   : > { %11448 = vmatprep.subr.bf16.mxu0 %v12453_v1  ;;  %11433 = vmatmul.mubr.msk.bf16.vlgmr.msra.gmra.mxu1 %vm2997_vm2, %v4278_v63 }
 0x40a   : > { %v11357_v19 = vpop.f32.mrf.mxu0  ;;  %v4084_v39 = vpop.f32.mrf.mxu1  ;;  %11443 = vmatpush3.bf16.msra.mxu1 %v4701_v54  ;;  %11444 = vmatprep.mubr.msk.bf16.mxu1 %vm12454_vm0, %v12453_v1 }
 0x40b   : > { %11454 = vmatprep.subr.bf16.mxu1 %v12453_v1 }
 0x40c   : > { %v4127_v53 = vpop.f32.mrf.mxu0  ;;  %v11363_v8 = vpop.f32.mrf.mxu1 }
 0x40d   : > { %v4279_v10 = vpack.c.bf16 %v4127_v53, %v4127_v53 }
 0x40e   : > { %v11368_v58 = vpop.f32.mrf.mxu0  ;;  %v4173_v62 = vpop.f32.mrf.mxu1 }
 0x40f   : > { %11439 = vmatmul.mubr.msk.bf16.vlgmr.msra.gmra.mxu0 %vm2997_vm2, %v4279_v10  ;;  %v4280_v30 = vpack.c.bf16 %v4173_v62, %v4173_v62 }
 0x410   : > { %v4130_v23 = vpop.f32.mrf.mxu0  ;;  %11449 = vmatpush3.bf16.msra.mxu0 %v4747_v45  ;;  %11450 = vmatprep.mubr.msk.bf16.mxu0 %vm12454_vm0, %v12453_v1  ;;  %v11374_v17 = vpop.f32.mrf.mxu1 }
 0x411   : > { %11460 = vmatprep.subr.bf16.mxu0 %v12453_v1  ;;  %11445 = vmatmul.mubr.msk.bf16.vlgmr.msra.gmra.mxu1 %vm2997_vm2, %v4280_v30 }
 0x412   : > { %v11369_v33 = vpop.f32.mrf.mxu0  ;;  %v4176_v34 = vpop.f32.mrf.mxu1  ;;  %11455 = vmatpush3.bf16.msra.mxu1 %v4793_v40  ;;  %11456 = vmatprep.mubr.msk.bf16.mxu1 %vm12454_vm0, %v12453_v1 }
 0x413   : > { %11472 = vmatprep.subr.bf16.mxu1 %v12453_v1 }
 0x414   : > { %v4219_v35 = vpop.f32.mrf.mxu0  ;;  %v11375_v18 = vpop.f32.mrf.mxu1 }
 0x415   : > { %v4281_v38 = vpack.c.bf16 %v4219_v35, %v4219_v35 }
 0x416   : > { %v11380_v28 = vpop.f32.mrf.mxu0  ;;  %v4265_v36 = vpop.f32.mrf.mxu1 }
 0x417   : > { %11451 = vmatmul.mubr.msk.bf16.vlgmr.msra.gmra.mxu0 %vm2997_vm2, %v4281_v38  ;;  %v4282_v47 = vpack.c.bf16 %v4265_v36, %v4265_v36  ;;  %v10088_v38 = vld [vmem:[%s14971_s29] ss:$0 sm:$0xff] }
 0x418   : > { %v4222_v20 = vpop.f32.mrf.mxu0  ;;  %11468 = vmatprep.mubr.msk.bf16.mxu0 %vm12454_vm0, %v12453_v1  ;;  %v11386_v46 = vpop.f32.mrf.mxu1 }
 0x419   : > { %11457 = vmatmul.mubr.msk.bf16.vlgmr.msra.gmra.mxu1 %vm2997_vm2, %v4282_v47 }
 0x41a   : > { %v11381_v49 = vpop.f32.mrf.mxu0  ;;  %v4268_v50 = vpop.f32.mrf.mxu1  ;;  %11476 = vmatprep.mubr.msk.bf16.mxu1 %vm12454_vm0, %v12453_v1 }
 0x41c   : > { %v11387_v51 = vpop.f32.mrf.mxu1 }
 0x4ad   : > { %v4323_v14 = vpop.f32.mrf.mxu0 }
 0x4af   : > { %v11392_v55 = vpop.f32.mrf.mxu0 }
 0x4b1   : > { %v4326_v48 = vpop.f32.mrf.mxu0  ;;  %v4369_v25 = vpop.f32.mrf.mxu1 }
 0x4b2   : > { %v4835_v27 = vadd.f32 %v4369_v25, %v4323_v14 }
 0x4b3   : > { %v11393_v26 = vpop.f32.mrf.mxu0  ;;  %v11398_v22 = vpop.f32.mrf.mxu1 }
 0x4b4   : > { %v12158_v26 = vld [vmem:[%s14972_s8 + $0x18] sm:$0xff]   ;;  %v12159_v22 = vld [vmem:[%s14972_s8 + $0x10] sm:$0xff]  }
 0x4b5   : > { %v4372_v59 = vpop.f32.mrf.mxu1  ;;  %v4415_v60 = vpop.f32.mrf.mxu0  ;;  %11461 = vmatpush3.bf16.msra.mxu0 %v12158_v26 }
 0x4b6   : > { %v4836_v42 = vadd.f32 %v4835_v27, %v4415_v60  ;;  %11462 = vmatprep.subr.bf16.mxu0 %v12453_v1  ;;  %v12160_v59 = vld [vmem:[%s14972_s8 + $0x8] sm:$0xff]   ;;  %v12161_v60 = vld [vmem:[%s14972_s8] sm:$0xff]  }
 0x4b7   : > { %v11399_v61 = vpop.f32.mrf.mxu1  ;;  %v11404_v0 = vpop.f32.mrf.mxu0  ;;  %v12360_v27 = vld [vmem:[%s12645_s2] sm:$0xff]  ;;  %s14977_s2 = sld [smem:[#allocation28_spill]] }
 0x4b9   : > { %v4418_v2 = vpop.f32.mrf.mxu0  ;;  %v4461_v57 = vpop.f32.mrf.mxu1  ;;  %11463 = vmatpush3.bf16.msra.mxu0 %v12159_v22 }
 0x4ba   : > { %v4837_v43 = vadd.f32 %v4836_v42, %v4461_v57  ;;  %11464 = vmatprep.subr.bf16.mxu0 %v12453_v1 }
 0x4bb   : > { %v11405_v3 = vpop.f32.mrf.mxu0  ;;  %v11410_v4 = vpop.f32.mrf.mxu1 }
 0x4bc   : > { %v10089_v3 = vld [vmem:[%s14973_s6] ss:$0 sm:$0xff] }
 0x4bd   : > { %v4464_v5 = vpop.f32.mrf.mxu1  ;;  %11465 = vmatpush3.bf16.msra.mxu0 %v12160_v59  ;;  %s14978_s20 = smov %s14977_s2  ;;  %s14829_s25 = scalar_lea.hbm %s14977_s2, %s12037_s21 }
 0x4be   : > { %11466 = vmatprep.subr.bf16.mxu0 %v12453_v1  ;;  %v10090_v5 = vld [vmem:[%s14974_s7] ss:$0 sm:$0xff] }
 0x4bf   : > { %v4507_v11 = vpop.f32.mrf.mxu0  ;;  %v11411_v6 = vpop.f32.mrf.mxu1 }
 0x4c0   : > { %v4838_v29 = vadd.f32 %v4837_v43, %v4507_v11 }
 0x4c1   : > { %v11416_v16 = vpop.f32.mrf.mxu0  ;;  %v4553_v21 = vpop.f32.mrf.mxu1  ;;  %11467 = vmatpush3.bf16.msra.mxu0 %v12161_v60  ;;  %v12168_v60 = vld [vmem:[%s14966_s24 + $0x248] sm:$0xff]  }
 0x4c2   : > { %v4839_v13 = vadd.f32 %v4838_v29, %v4553_v21  ;;  %11492 = vmatprep.subr.bf16.mxu0 %v12453_v1 }
 0x4c3   : > { %v4510_v41 = vpop.f32.mrf.mxu0  ;;  %v11422_v37 = vpop.f32.mrf.mxu1 }
 0x4c4   : > { %v10091_v41 = vld [vmem:[%s14975_s9] ss:$0 sm:$0xff] }
 0x4c5   : > { %v11417_v9 = vpop.f32.mrf.mxu0  ;;  %v4556_v24 = vpop.f32.mrf.mxu1 }
 0x4c7   : > { %v4599_v12 = vpop.f32.mrf.mxu0  ;;  %v11423_v31 = vpop.f32.mrf.mxu1 }
 0x4c8   : > { %v4840_v39 = vadd.f32 %v4839_v13, %v4599_v12 }
 0x4c9   : > { %v11428_v44 = vpop.f32.mrf.mxu0  ;;  %v4645_v32 = vpop.f32.mrf.mxu1 }
 0x4ca   : > { %v4841_v8 = vadd.f32 %v4840_v39, %v4645_v32 }
 0x4cb   : > { %v4602_v7 = vpop.f32.mrf.mxu0  ;;  %v11434_v15 = vpop.f32.mrf.mxu1 }
 0x4cd   : > { %v11429_v63 = vpop.f32.mrf.mxu0  ;;  %v4648_v54 = vpop.f32.mrf.mxu1 }
 0x4ce   : > { %v12162_v63 = vld [vmem:[%s14918_s12 + $0x8] sm:$0xff]   ;;  %v12163_v54 = vld [vmem:[%s14918_s12] sm:$0xff]  }
 0x4cf   : > { %v4691_v19 = vpop.f32.mrf.mxu0  ;;  %v11435_v52 = vpop.f32.mrf.mxu1  ;;  %11473 = vmatpush3.bf16.msra.mxu1 %v12162_v63  ;;  %v12184_v63 = vld [vmem:[%s14966_s24 + $0x2b8] sm:$0xff]  }
 0x4d0   : > { %v4842_v58 = vadd.f32 %v4841_v8, %v4691_v19  ;;  %11474 = vmatprep.subr.bf16.mxu1 %v12453_v1  ;;  %v10098_v8 = vld [vmem:[%s14917_s11] ss:$0 sm:$0xff] }
 0x4d1   : > { %v11440_v53 = vpop.f32.mrf.mxu0  ;;  %v4737_v10 = vpop.f32.mrf.mxu1 }
 0x4d2   : > { %v4843_v30 = vadd.f32 %v4842_v58, %v4737_v10  ;;  %v10097_v53 = vld [vmem:[%s14976_s10] ss:$0 sm:$0xff]  ;;  %v12164_v58 = vld [vmem:[%s14920_s14 + $0x18] sm:$0xff]  }
 0x4d3   : > { %v4694_v45 = vpop.f32.mrf.mxu0  ;;  %v11446_v56 = vpop.f32.mrf.mxu1  ;;  %11475 = vmatpush3.bf16.msra.mxu1 %v12163_v54  ;;  %v12185_v54 = vld [vmem:[%s14966_s24 + $0x2e8] sm:$0xff]  }
 0x4d4   : > { %11480 = vmatprep.subr.bf16.mxu1 %v12453_v1 }
 0x4d5   : > { %v11441_v62 = vpop.f32.mrf.mxu0  ;;  %v4740_v23 = vpop.f32.mrf.mxu1 }
 0x4d6   : > { %v12165_v23 = vld [vmem:[%s14920_s14 + $0x10] sm:$0xff]  }
 0x4d7   : > { %v4783_v40 = vpop.f32.mrf.mxu0  ;;  %v11447_v17 = vpop.f32.mrf.mxu1 }
 0x4d8   : > { %v4844_v33 = vadd.f32 %v4843_v30, %v4783_v40  ;;  %v12166_v30 = vld [vmem:[%s14920_s14 + $0x8] sm:$0xff]   ;;  %v12167_v40 = vld [vmem:[%s14920_s14] sm:$0xff]  }
 0x4d9   : > { %v11452_v34 = vpop.f32.mrf.mxu0  ;;  %v4829_v35 = vpop.f32.mrf.mxu1  ;;  %v10099_v17 = vld [vmem:[%s14919_s13] ss:$0 sm:$0xff] }
 0x4da   : > { %v4845_v28 = vadd.f32 %v4844_v33, %v4829_v35 }
 0x4db   : > { %v4786_v18 = vpop.f32.mrf.mxu0  ;;  %v11458_v36 = vpop.f32.mrf.mxu1 }
 0x4dc   : > { %v4853_v47 = vadd.f32 %v10088_v38, %v4845_v28 }
 0x4dd   : > { %v11453_v20 = vpop.f32.mrf.mxu0  ;;  %v4832_v46 = vpop.f32.mrf.mxu1 }
 0x4de   : > { %v4857_v49 = vsel %vm4856_vm4, %v4853_v47, 0.0  ;;  %v10103_v20 = vld [vmem:[%s14921_s15] ss:$0 sm:$0xff] }
 0x4df   : > { %v11459_v50 = vpop.f32.mrf.mxu1  ;;  %4858 = vadd.xlane.f32.xlu0 %v4857_v49 }
 0x568   : > { %v4859_v51 = vpop.xlane.xlu0 %4858 }
 0x569   : > { %v4861_v14 = vmul.f32 0.015625, %v4859_v51 }
 0x56b   : > { %v4862_v55 = vsub.f32 %v4853_v47, %v4861_v14 }
 0x56d   : > { %v4863_v48 = vmul.f32 %v4862_v55, %v4862_v55 }
 0x56f   : > { %v4864_v25 = vsel %vm4856_vm4, %v4863_v48, 0.0 }
 0x570   : > { %4865 = vadd.xlane.f32.xlu1 %v4864_v25 }
 0x5f9   : > { %v4866_v61 = vpop.xlane.xlu1 %4865 }
 0x5fa   : > { %v4867_v0 = vmul.f32 0.015625, %v4866_v61  ;;  %v12169_v61 = vld [vmem:[%s14966_s24 + $0x268] sm:$0xff]  }
 0x5fc   : > { %v4868_v2 = vadd.f32 1e-05, %v4867_v0  ;;  %v12170_v0 = vld [vmem:[%s14966_s24 + $0x240] sm:$0xff]  }
 0x5fe   : > { %12300 = vrsqrt.f32 %v4868_v2  ;;  %v12171_v2 = vld [vmem:[%s14966_s24 + $0x260] sm:$0xff]  }
 0x60b   : > { %v12301_v57 = vpop.eup %12300 }
 0x60c   : > { %v4870_v4 = vmul.f32 %v12301_v57, %v4862_v55 }
 0x60e   : > { %v4877_v11 = vmul.f32 %v10089_v3, %v4870_v4 }
 0x610   : > { %v4884_v6 = vadd.f32 %v10090_v5, %v4877_v11  ;;  %v10109_v11 = vld [vmem:[%s14922_s16] ss:$0 sm:$0xff] }
 0x612   : > { %v4885_v16 = vmax.f32 %v4884_v6, 0.0 }
 0x614   : > { %v4886_v21 = vpack.c.bf16 %v4885_v16, %v4885_v16  ;;  %v10110_v16 = vld [vmem:[%s14923_s17] ss:$0 sm:$0xff] }
 0x616   : > { %11469 = vmatmul.mubr.msk.bf16.vlgmr.msra.gmra.mxu0 %vm4856_vm4, %v4886_v21 }
 0x617   : > { %11496 = vmatprep.mubr.msk.bf16.mxu0 %vm12454_vm0, %v12453_v1  ;;  %11493 = vmatpush3.bf16.msra.mxu0 %v12168_v60  ;;  %v12221_v60 = vld [vmem:[%s14966_s24 + $0x408] sm:$0xff]  }
 0x618   : > { %11494 = vmatprep.subr.bf16.mxu0 %v12453_v1 }
 0x61b   : > { %11495 = vmatpush3.bf16.msra.mxu0 %v12170_v0  ;;  %v12223_v0 = vld [vmem:[%s14966_s24 + $0x400] sm:$0xff]  }
 0x61c   : > { %11500 = vmatprep.subr.bf16.mxu0 %v12453_v1 }
 0x6d6   : > { %v4963_v37 = vpop.f32.mrf.mxu0 }
 0x6d7   : > { %v4964_v9 = vadd.f32 %v10091_v41, %v4963_v37  ;;  %v12172_v37 = vld [vmem:[%s14966_s24 + $0x258] sm:$0xff]  }
 0x6d8   : > { %v11470_v24 = vpop.f32.mrf.mxu0 }
 0x6d9   : > { %v4969_v12 = vadd.f32 %v12360_v27, %v4964_v9  ;;  %v12173_v9 = vld [vmem:[%s14966_s24 + $0x288] sm:$0xff]   ;;  %v12174_v27 = vld [vmem:[%s14966_s24 + $0x250] sm:$0xff]  }
 0x6da   : > { %v4966_v31 = vpop.f32.mrf.mxu0 }
 0x6db   : > { %v4972_v42 = vsel %vm1097_vm1, %v4969_v12, 0.0  ;;  %v12176_v31 = vld [vmem:[%s14966_s24 + $0x278] sm:$0xff]  }
 0x6dc   : > { %4973 = vadd.xlane.f32.xlu0 %v4972_v42  ;;  %v11471_v44 = vpop.f32.mrf.mxu0  ;;  %v12177_v42 = vld [vmem:[%s14966_s24 + $0x2a8] sm:$0xff]  }
 0x6dd   : > { %v12178_v44 = vld [vmem:[%s14966_s24 + $0x270] sm:$0xff]  }
 0x765   : > { %v4974_v32 = vpop.xlane.xlu0 %4973 }
 0x766   : > { %v4976_v43 = vmul.f32 0.03125, %v4974_v32  ;;  %v12179_v32 = vld [vmem:[%s14966_s24 + $0x2a0] sm:$0xff]  }
 0x768   : > { %v4977_v7 = vsub.f32 %v4969_v12, %v4976_v43  ;;  %v12175_v12 = vld [vmem:[%s14966_s24 + $0x280] sm:$0xff]   ;;  %v12180_v43 = vld [vmem:[%s14966_s24 + $0x298] sm:$0xff]  }
 0x76a   : > { %v4978_v15 = vmul.f32 %v4977_v7, %v4977_v7 }
 0x76c   : > { %v4979_v29 = vsel %vm1097_vm1, %v4978_v15, 0.0  ;;  %v12182_v15 = vld [vmem:[%s14966_s24 + $0x290] sm:$0xff]  }
 0x76d   : > { %4980 = vadd.xlane.f32.xlu1 %v4979_v29  ;;  %v12183_v29 = vld [vmem:[%s14966_s24 + $0x2c0] sm:$0xff]  }
 0x7f6   : > { %v4981_v13 = vpop.xlane.xlu1 %4980 }
 0x7f7   : > { %v4982_v19 = vmul.f32 0.03125, %v4981_v13  ;;  %v12186_v13 = vld [vmem:[%s14966_s24 + $0x2b0] sm:$0xff]  }
 0x7f9   : > { %v4983_v52 = vadd.f32 1e-05, %v4982_v19  ;;  %v12187_v19 = vld [vmem:[%s14966_s24 + $0x2e0] sm:$0xff]  }
 0x7fb   : > { %12302 = vrsqrt.f32 %v4983_v52  ;;  %v12188_v52 = vld [vmem:[%s14966_s24 + $0x2d8] sm:$0xff]  }
 0x808   : > { %v12303_v39 = vpop.eup %12302 }
 0x809   : > { %v4985_v10 = vmul.f32 %v12303_v39, %v4977_v7  ;;  %v12181_v7 = vld [vmem:[%s14966_s24 + $0x2c8] sm:$0xff]  }
 0x80a   : > { %v12189_v39 = vld [vmem:[%s14966_s24 + $0x308] sm:$0xff]  }
 0x80b   : > { %v4992_v45 = vmul.f32 %v10097_v53, %v4985_v10  ;;  %v12190_v53 = vld [vmem:[%s14966_s24 + $0x2d0] sm:$0xff]   ;;  %v12191_v10 = vld [vmem:[%s14966_s24 + $0x300] sm:$0xff]  }
 0x80d   : > { %v4999_v56 = vadd.f32 %v10098_v8, %v4992_v45  ;;  %v12192_v8 = vld [vmem:[%s14966_s24 + $0x2f8] sm:$0xff]   ;;  %v12193_v45 = vld [vmem:[%s14966_s24 + $0x328] sm:$0xff]  }
 0x80f   : > { %v5000_v62 = vpack.c.bf16 %v4999_v56, %v4999_v56 }
 0x811   : > { %11477 = vmatmul.mubr.msk.bf16.vlgmr.msra.gmra.mxu1 %vm1097_vm1, %v5000_v62  ;;  %v12196_v62 = vld [vmem:[%s14966_s24 + $0x318] sm:$0xff]  }
 0x812   : > { %11481 = vmatpush3.bf16.msra.mxu1 %v12164_v58  ;;  %11488 = vmatprep.mubr.msk.bf16.mxu1 %vm12454_vm0, %v12453_v1  ;;  %v12195_v58 = vld [vmem:[%s14966_s24 + $0x320] sm:$0xff]  }
 0x813   : > { %11482 = vmatprep.subr.bf16.mxu1 %v12453_v1 }
 0x816   : > { %11483 = vmatpush3.bf16.msra.mxu1 %v12165_v23  ;;  %v12197_v23 = vld [vmem:[%s14966_s24 + $0x348] sm:$0xff]  }
 0x817   : > { %11484 = vmatprep.subr.bf16.mxu1 %v12453_v1 }
 0x81a   : > { %11485 = vmatpush3.bf16.msra.mxu1 %v12166_v30  ;;  %v12198_v30 = vld [vmem:[%s14966_s24 + $0x310] sm:$0xff]  }
 0x81b   : > { %11486 = vmatprep.subr.bf16.mxu1 %v12453_v1 }
 0x81e   : > { %11487 = vmatpush3.bf16.msra.mxu1 %v12167_v40  ;;  %v12199_v40 = vld [vmem:[%s14966_s24 + $0x340] sm:$0xff]  }
 0x81f   : > { %11508 = vmatprep.subr.bf16.mxu1 %v12453_v1 }
 0x8d1   : > { %v5061_v33 = vpop.f32.mrf.mxu1 }
 0x8d2   : > { %v5062_v34 = vadd.f32 %v10099_v17, %v5061_v33  ;;  %v12200_v17 = vld [vmem:[%s14966_s24 + $0x338] sm:$0xff]   ;;  %v12201_v33 = vld [vmem:[%s14966_s24 + $0x368] sm:$0xff]  }
 0x8d3   : > { %v11478_v35 = vpop.f32.mrf.mxu1 }
 0x8d4   : > { %v5067_v38 = vmax.f32 %v5062_v34, 0.0  ;;  %v12202_v34 = vld [vmem:[%s14966_s24 + $0x330] sm:$0xff]   ;;  %v12203_v35 = vld [vmem:[%s14966_s24 + $0x360] sm:$0xff]  }
 0x8d5   : > { %v5064_v18 = vpop.f32.mrf.mxu1 }
 0x8d6   : > { %v5068_v28 = vpack.c.bf16 %v5067_v38, %v5067_v38  ;;  %v12204_v38 = vld [vmem:[%s14966_s24 + $0x358] sm:$0xff]   ;;  %v12205_v18 = vld [vmem:[%s14966_s24 + $0x388] sm:$0xff]  }
 0x8d7   : > { %v11479_v36 = vpop.f32.mrf.mxu1 }
 0x8d8   : > { %11489 = vmatmul.mubr.msk.bf16.vlgmr.msra.gmra.mxu1 %vm4856_vm4, %v5068_v28  ;;  %v12206_v28 = vld [vmem:[%s14966_s24 + $0x350] sm:$0xff]   ;;  %v12207_v36 = vld [vmem:[%s14966_s24 + $0x380] sm:$0xff]  }
 0x8d9   : > { %11512 = vmatprep.mubr.msk.bf16.mxu1 %vm12454_vm0, %v12453_v1  ;;  %11509 = vmatpush3.bf16.msra.mxu1 %v12169_v61  ;;  %v12222_v61 = vld [vmem:[%s14966_s24 + $0x3d0] sm:$0xff]  }
 0x8da   : > { %11510 = vmatprep.subr.bf16.mxu1 %v12453_v1 }
 0x8dd   : > { %11511 = vmatpush3.bf16.msra.mxu1 %v12171_v2  ;;  %v12224_v2 = vld [vmem:[%s14966_s24 + $0x3f8] sm:$0xff]  }
 0x8de   : > { %11524 = vmatprep.subr.bf16.mxu1 %v12453_v1 }
 0x998   : > { %v5145_v47 = vpop.f32.mrf.mxu1 }
 0x999   : > { %v5146_v46 = vadd.f32 %v10103_v20, %v5145_v47  ;;  %v12208_v20 = vld [vmem:[%s14966_s24 + $0x378] sm:$0xff]   ;;  %v12209_v47 = vld [vmem:[%s14966_s24 + $0x3a8] sm:$0xff]  }
 0x99a   : > { %v11490_v49 = vpop.f32.mrf.mxu1 }
 0x99b   : > { %v5151_v50 = vadd.f32 %v5146_v46, %v4999_v56  ;;  %v12194_v56 = vld [vmem:[%s14966_s24 + $0x2f0] sm:$0xff]   ;;  %v12211_v49 = vld [vmem:[%s14966_s24 + $0x3a0] sm:$0xff]  }
 0x99c   : > { %v5148_v51 = vpop.f32.mrf.mxu1  ;;  %v12210_v46 = vld [vmem:[%s14966_s24 + $0x370] sm:$0xff]  }
 0x99d   : > { %v5154_v14 = vsel %vm1097_vm1, %v5151_v50, 0.0  ;;  %v12213_v51 = vld [vmem:[%s14966_s24 + $0x3c8] sm:$0xff]  }
 0x99e   : > { %5155 = vadd.xlane.f32.xlu0 %v5154_v14  ;;  %v11491_v55 = vpop.f32.mrf.mxu1  ;;  %v12214_v14 = vld [vmem:[%s14966_s24 + $0x390] sm:$0xff]  }
 0x99f   : > { %v12215_v55 = vld [vmem:[%s14966_s24 + $0x3c0] sm:$0xff]  }
 0xa27   : > { %v5156_v48 = vpop.xlane.xlu0 %5155 }
 0xa28   : > { %v5157_v25 = vmul.f32 0.03125, %v5156_v48  ;;  %v12216_v48 = vld [vmem:[%s14966_s24 + $0x3b8] sm:$0xff]  }
 0xa2a   : > { %v5158_v26 = vsub.f32 %v5151_v50, %v5157_v25  ;;  %v12212_v50 = vld [vmem:[%s14966_s24 + $0x398] sm:$0xff]   ;;  %v12217_v25 = vld [vmem:[%s14966_s24 + $0x3e8] sm:$0xff]  }
 0xa2c   : > { %v5159_v22 = vmul.f32 %v5158_v26, %v5158_v26 }
 0xa2e   : > { %v5160_v59 = vsel %vm1097_vm1, %v5159_v22, 0.0  ;;  %v12219_v22 = vld [vmem:[%s14966_s24 + $0x3e0] sm:$0xff]  }
 0xa2f   : > { %5161 = vadd.xlane.f32.xlu1 %v5160_v59  ;;  %v12220_v59 = vld [vmem:[%s14966_s24 + $0x3d8] sm:$0xff]  }
 0xab8   : > { %v5162_v57 = vpop.xlane.xlu1 %5161 }
 0xab9   : > { %v5163_v3 = vmul.f32 0.03125, %v5162_v57  ;;  %v12225_v57 = vld [vmem:[%s14966_s24 + $0x428] sm:$0xff]  }
 0xabb   : > { %v5164_v4 = vadd.f32 1e-05, %v5163_v3  ;;  %v12226_v3 = vld [vmem:[%s14966_s24 + $0x3f0] sm:$0xff]  }
 0xabd   : > { %12304 = vrsqrt.f32 %v5164_v4  ;;  %v12227_v4 = vld [vmem:[%s14966_s24 + $0x420] sm:$0xff]  }
 0xaca   : > { %v12305_v5 = vpop.eup %12304 }
 0xacb   : > { %v5166_v6 = vmul.f32 %v12305_v5, %v5158_v26  ;;  %v12218_v26 = vld [vmem:[%s14966_s24 + $0x3b0] sm:$0xff]   ;;  %v12228_v5 = vld [vmem:[%s14966_s24 + $0x418] sm:$0xff]  }
 0xacd   : > { %v5173_v21 = vmul.f32 %v10109_v11, %v5166_v6  ;;  %v12229_v11 = vld [vmem:[%s14966_s24 + $0x448] sm:$0xff]   ;;  %v12230_v6 = vld [vmem:[%s14966_s24 + $0x410] sm:$0xff]  }
 0xacf   : > { %v13743_v41 = vadd.f32 %v10110_v16, %v5173_v21  ;;  %v12231_v16 = vld [vmem:[%s14966_s24 + $0x440] sm:$0xff]   ;;  %v12232_v21 = vld [vmem:[%s14966_s24 + $0x438] sm:$0xff]  }
 0xad1   : > { %v13753_v24 = vpack.c.bf16 %v13743_v41, %v13743_v41 }
 0xad3   : > { %11497 = vmatmul.mubr.msk.bf16.vlgmr.msra.gmra.mxu0 %vm1097_vm1, %v13753_v24  ;;  %11513 = vmatmul.mubr.msk.bf16.vlgmr.msra.gmra.mxu1 %vm1097_vm1, %v13753_v24 }
 0xad4   : > { %11501 = vmatpush3.bf16.msra.mxu0 %v12172_v37  ;;  %11525 = vmatpush3.bf16.msra.mxu1 %v12173_v9  ;;  %v12233_v37 = vld [vmem:[%s14966_s24 + $0x468] sm:$0xff]   ;;  %v12234_v9 = vld [vmem:[%s14966_s24 + $0x430] sm:$0xff]  }
 0xad5   : > { %11502 = vmatprep.subr.bf16.mxu0 %v12453_v1  ;;  %11526 = vmatprep.subr.bf16.mxu1 %v12453_v1 }
 0xad6   : > { %11504 = vmatprep.mubr.msk.bf16.mxu0 %vm12454_vm0, %v12453_v1  ;;  %11528 = vmatprep.mubr.msk.bf16.mxu1 %vm12454_vm0, %v12453_v1 }
 0xad8   : > { %11503 = vmatpush3.bf16.msra.mxu0 %v12174_v27  ;;  %11527 = vmatpush3.bf16.msra.mxu1 %v12175_v12  ;;  %v12235_v27 = vld [vmem:[%s14966_s24 + $0x460] sm:$0xff]   ;;  %v12236_v12 = vld [vmem:[%s14966_s24 + $0x458] sm:$0xff]  }
 0xad9   : > { %11516 = vmatprep.subr.bf16.mxu0 %v12453_v1  ;;  %11540 = vmatprep.subr.bf16.mxu1 %v12453_v1 }
 0xadb   : > { %11505 = vmatmul.mubr.msk.bf16.vlgmr.msra.gmra.mxu0 %vm1097_vm1, %v13753_v24  ;;  %11529 = vmatmul.mubr.msk.bf16.vlgmr.msra.gmra.mxu1 %vm1097_vm1, %v13753_v24 }
 0xadc   : > { %11517 = vmatpush3.bf16.msra.mxu0 %v12176_v31  ;;  %11541 = vmatpush3.bf16.msra.mxu1 %v12177_v42  ;;  %v12237_v31 = vld [vmem:[%s14966_s24 + $0x450] sm:$0xff]   ;;  %v12238_v42 = vld [vmem:[%s14966_s24 + $0x478] sm:$0xff]  }
 0xadd   : > { %11518 = vmatprep.subr.bf16.mxu0 %v12453_v1  ;;  %11542 = vmatprep.subr.bf16.mxu1 %v12453_v1 }
 0xade   : > { %11520 = vmatprep.mubr.msk.bf16.mxu0 %vm12454_vm0, %v12453_v1  ;;  %11544 = vmatprep.mubr.msk.bf16.mxu1 %vm12454_vm0, %v12453_v1 }
 0xae0   : > { %11519 = vmatpush3.bf16.msra.mxu0 %v12178_v44  ;;  %11543 = vmatpush3.bf16.msra.mxu1 %v12179_v32  ;;  %v12239_v44 = vld [vmem:[%s14966_s24 + $0x470] sm:$0xff]  }
 0xae1   : > { %11532 = vmatprep.subr.bf16.mxu0 %v12453_v1  ;;  %11556 = vmatprep.subr.bf16.mxu1 %v12453_v1 }
 0xae3   : > { %11521 = vmatmul.mubr.msk.bf16.vlgmr.msra.gmra.mxu0 %vm1097_vm1, %v13753_v24  ;;  %11545 = vmatmul.mubr.msk.bf16.vlgmr.msra.gmra.mxu1 %vm1097_vm1, %v13753_v24 }
 0xae4   : > { %11533 = vmatpush3.bf16.msra.mxu0 %v12180_v43  ;;  %11557 = vmatpush3.bf16.msra.mxu1 %v12181_v7 }
 0xae5   : > { %11534 = vmatprep.subr.bf16.mxu0 %v12453_v1  ;;  %11558 = vmatprep.subr.bf16.mxu1 %v12453_v1 }
 0xae6   : > { %11536 = vmatprep.mubr.msk.bf16.mxu0 %vm12454_vm0, %v12453_v1  ;;  %11560 = vmatprep.mubr.msk.bf16.mxu1 %vm12454_vm0, %v12453_v1 }
 0xae8   : > { %11535 = vmatpush3.bf16.msra.mxu0 %v12182_v15  ;;  %11559 = vmatpush3.bf16.msra.mxu1 %v12183_v29 }
 0xae9   : > { %11548 = vmatprep.subr.bf16.mxu0 %v12453_v1  ;;  %11572 = vmatprep.subr.bf16.mxu1 %v12453_v1 }
 0xaeb   : > { %11537 = vmatmul.mubr.msk.bf16.vlgmr.msra.gmra.mxu0 %vm1097_vm1, %v13753_v24  ;;  %11561 = vmatmul.mubr.msk.bf16.vlgmr.msra.gmra.mxu1 %vm1097_vm1, %v13753_v24 }
 0xaec   : > { %11549 = vmatpush3.bf16.msra.mxu0 %v12184_v63  ;;  %11573 = vmatpush3.bf16.msra.mxu1 %v12185_v54 }
 0xaed   : > { %11550 = vmatprep.subr.bf16.mxu0 %v12453_v1  ;;  %11574 = vmatprep.subr.bf16.mxu1 %v12453_v1 }
 0xaee   : > { %11552 = vmatprep.mubr.msk.bf16.mxu0 %vm12454_vm0, %v12453_v1  ;;  %11576 = vmatprep.mubr.msk.bf16.mxu1 %vm12454_vm0, %v12453_v1 }
 0xaf0   : > { %11551 = vmatpush3.bf16.msra.mxu0 %v12186_v13  ;;  %11575 = vmatpush3.bf16.msra.mxu1 %v12187_v19 }
 0xaf1   : > { %11564 = vmatprep.subr.bf16.mxu0 %v12453_v1  ;;  %11588 = vmatprep.subr.bf16.mxu1 %v12453_v1 }
 0xaf3   : > { %11553 = vmatmul.mubr.msk.bf16.vlgmr.msra.gmra.mxu0 %vm1097_vm1, %v13753_v24  ;;  %11577 = vmatmul.mubr.msk.bf16.vlgmr.msra.gmra.mxu1 %vm1097_vm1, %v13753_v24 }
 0xaf4   : > { %11565 = vmatpush3.bf16.msra.mxu0 %v12188_v52  ;;  %11589 = vmatpush3.bf16.msra.mxu1 %v12189_v39 }
 0xaf5   : > { %11566 = vmatprep.subr.bf16.mxu0 %v12453_v1  ;;  %11590 = vmatprep.subr.bf16.mxu1 %v12453_v1 }
 0xaf6   : > { %11568 = vmatprep.mubr.msk.bf16.mxu0 %vm12454_vm0, %v12453_v1  ;;  %11592 = vmatprep.mubr.msk.bf16.mxu1 %vm12454_vm0, %v12453_v1 }
 0xaf8   : > { %11567 = vmatpush3.bf16.msra.mxu0 %v12190_v53  ;;  %11591 = vmatpush3.bf16.msra.mxu1 %v12191_v10 }
 0xaf9   : > { %11580 = vmatprep.subr.bf16.mxu0 %v12453_v1  ;;  %11604 = vmatprep.subr.bf16.mxu1 %v12453_v1 }
 0xafb   : > { %11569 = vmatmul.mubr.msk.bf16.vlgmr.msra.gmra.mxu0 %vm1097_vm1, %v13753_v24  ;;  %11593 = vmatmul.mubr.msk.bf16.vlgmr.msra.gmra.mxu1 %vm1097_vm1, %v13753_v24 }
 0xafc   : > { %11581 = vmatpush3.bf16.msra.mxu0 %v12192_v8  ;;  %11605 = vmatpush3.bf16.msra.mxu1 %v12193_v45 }
 0xafd   : > { %11582 = vmatprep.subr.bf16.mxu0 %v12453_v1  ;;  %11606 = vmatprep.subr.bf16.mxu1 %v12453_v1 }
 0xafe   : > { %11584 = vmatprep.mubr.msk.bf16.mxu0 %vm12454_vm0, %v12453_v1  ;;  %11608 = vmatprep.mubr.msk.bf16.mxu1 %vm12454_vm0, %v12453_v1 }
 0xb00   : > { %11583 = vmatpush3.bf16.msra.mxu0 %v12194_v56  ;;  %11607 = vmatpush3.bf16.msra.mxu1 %v12195_v58 }
 0xb01   : > { %11596 = vmatprep.subr.bf16.mxu0 %v12453_v1  ;;  %11620 = vmatprep.subr.bf16.mxu1 %v12453_v1 }
 0xb03   : > { %11585 = vmatmul.mubr.msk.bf16.vlgmr.msra.gmra.mxu0 %vm1097_vm1, %v13753_v24  ;;  %11609 = vmatmul.mubr.msk.bf16.vlgmr.msra.gmra.mxu1 %vm1097_vm1, %v13753_v24 }
 0xb04   : > { %11597 = vmatpush3.bf16.msra.mxu0 %v12196_v62  ;;  %11621 = vmatpush3.bf16.msra.mxu1 %v12197_v23 }
 0xb05   : > { %11598 = vmatprep.subr.bf16.mxu0 %v12453_v1  ;;  %11622 = vmatprep.subr.bf16.mxu1 %v12453_v1 }
 0xb06   : > { %11600 = vmatprep.mubr.msk.bf16.mxu0 %vm12454_vm0, %v12453_v1  ;;  %11624 = vmatprep.mubr.msk.bf16.mxu1 %vm12454_vm0, %v12453_v1 }
 0xb08   : > { %11599 = vmatpush3.bf16.msra.mxu0 %v12198_v30  ;;  %11623 = vmatpush3.bf16.msra.mxu1 %v12199_v40 }
 0xb09   : > { %11612 = vmatprep.subr.bf16.mxu0 %v12453_v1  ;;  %11636 = vmatprep.subr.bf16.mxu1 %v12453_v1 }
 0xb0b   : > { %11601 = vmatmul.mubr.msk.bf16.vlgmr.msra.gmra.mxu0 %vm1097_vm1, %v13753_v24  ;;  %11625 = vmatmul.mubr.msk.bf16.vlgmr.msra.gmra.mxu1 %vm1097_vm1, %v13753_v24 }
 0xb0c   : > { %11613 = vmatpush3.bf16.msra.mxu0 %v12200_v17  ;;  %11637 = vmatpush3.bf16.msra.mxu1 %v12201_v33 }
 0xb0d   : > { %11614 = vmatprep.subr.bf16.mxu0 %v12453_v1  ;;  %11638 = vmatprep.subr.bf16.mxu1 %v12453_v1 }
 0xb0e   : > { %11616 = vmatprep.mubr.msk.bf16.mxu0 %vm12454_vm0, %v12453_v1  ;;  %11640 = vmatprep.mubr.msk.bf16.mxu1 %vm12454_vm0, %v12453_v1 }
 0xb10   : > { %11615 = vmatpush3.bf16.msra.mxu0 %v12202_v34  ;;  %11639 = vmatpush3.bf16.msra.mxu1 %v12203_v35 }
 0xb11   : > { %11628 = vmatprep.subr.bf16.mxu0 %v12453_v1  ;;  %11652 = vmatprep.subr.bf16.mxu1 %v12453_v1 }
 0xb13   : > { %11617 = vmatmul.mubr.msk.bf16.vlgmr.msra.gmra.mxu0 %vm1097_vm1, %v13753_v24  ;;  %11641 = vmatmul.mubr.msk.bf16.vlgmr.msra.gmra.mxu1 %vm1097_vm1, %v13753_v24 }
 0xb14   : > { %11629 = vmatpush3.bf16.msra.mxu0 %v12204_v38  ;;  %11653 = vmatpush3.bf16.msra.mxu1 %v12205_v18 }
 0xb15   : > { %11630 = vmatprep.subr.bf16.mxu0 %v12453_v1  ;;  %11654 = vmatprep.subr.bf16.mxu1 %v12453_v1 }
 0xb16   : > { %11632 = vmatprep.mubr.msk.bf16.mxu0 %vm12454_vm0, %v12453_v1  ;;  %11656 = vmatprep.mubr.msk.bf16.mxu1 %vm12454_vm0, %v12453_v1 }
 0xb18   : > { %11631 = vmatpush3.bf16.msra.mxu0 %v12206_v28  ;;  %11655 = vmatpush3.bf16.msra.mxu1 %v12207_v36 }
 0xb19   : > { %11644 = vmatprep.subr.bf16.mxu0 %v12453_v1  ;;  %11668 = vmatprep.subr.bf16.mxu1 %v12453_v1 }
 0xb1b   : > { %11633 = vmatmul.mubr.msk.bf16.vlgmr.msra.gmra.mxu0 %vm1097_vm1, %v13753_v24  ;;  %11657 = vmatmul.mubr.msk.bf16.vlgmr.msra.gmra.mxu1 %vm1097_vm1, %v13753_v24 }
 0xb1c   : > { %11645 = vmatpush3.bf16.msra.mxu0 %v12208_v20  ;;  %11669 = vmatpush3.bf16.msra.mxu1 %v12209_v47 }
 0xb1d   : > { %11646 = vmatprep.subr.bf16.mxu0 %v12453_v1  ;;  %11670 = vmatprep.subr.bf16.mxu1 %v12453_v1 }
 0xb1e   : > { %11648 = vmatprep.mubr.msk.bf16.mxu0 %vm12454_vm0, %v12453_v1  ;;  %11672 = vmatprep.mubr.msk.bf16.mxu1 %vm12454_vm0, %v12453_v1 }
 0xb20   : > { %11647 = vmatpush3.bf16.msra.mxu0 %v12210_v46  ;;  %11671 = vmatpush3.bf16.msra.mxu1 %v12211_v49 }
 0xb21   : > { %11660 = vmatprep.subr.bf16.mxu0 %v12453_v1  ;;  %11684 = vmatprep.subr.bf16.mxu1 %v12453_v1 }
 0xb23   : > { %11649 = vmatmul.mubr.msk.bf16.vlgmr.msra.gmra.mxu0 %vm1097_vm1, %v13753_v24  ;;  %11673 = vmatmul.mubr.msk.bf16.vlgmr.msra.gmra.mxu1 %vm1097_vm1, %v13753_v24 }
 0xb24   : > { %11661 = vmatpush3.bf16.msra.mxu0 %v12212_v50  ;;  %11685 = vmatpush3.bf16.msra.mxu1 %v12213_v51 }
 0xb25   : > { %11662 = vmatprep.subr.bf16.mxu0 %v12453_v1  ;;  %11686 = vmatprep.subr.bf16.mxu1 %v12453_v1 }
 0xb26   : > { %11664 = vmatprep.mubr.msk.bf16.mxu0 %vm12454_vm0, %v12453_v1  ;;  %11688 = vmatprep.mubr.msk.bf16.mxu1 %vm12454_vm0, %v12453_v1 }
 0xb28   : > { %11663 = vmatpush3.bf16.msra.mxu0 %v12214_v14  ;;  %11687 = vmatpush3.bf16.msra.mxu1 %v12215_v55 }
 0xb29   : > { %11676 = vmatprep.subr.bf16.mxu0 %v12453_v1  ;;  %11700 = vmatprep.subr.bf16.mxu1 %v12453_v1 }
 0xb2b   : > { %11665 = vmatmul.mubr.msk.bf16.vlgmr.msra.gmra.mxu0 %vm1097_vm1, %v13753_v24  ;;  %11689 = vmatmul.mubr.msk.bf16.vlgmr.msra.gmra.mxu1 %vm1097_vm1, %v13753_v24 }
 0xb2c   : > { %11677 = vmatpush3.bf16.msra.mxu0 %v12216_v48  ;;  %11701 = vmatpush3.bf16.msra.mxu1 %v12217_v25 }
 0xb2d   : > { %11678 = vmatprep.subr.bf16.mxu0 %v12453_v1  ;;  %11702 = vmatprep.subr.bf16.mxu1 %v12453_v1 }
 0xb2e   : > { %11680 = vmatprep.mubr.msk.bf16.mxu0 %vm12454_vm0, %v12453_v1  ;;  %11704 = vmatprep.mubr.msk.bf16.mxu1 %vm12454_vm0, %v12453_v1 }
 0xb30   : > { %11679 = vmatpush3.bf16.msra.mxu0 %v12218_v26  ;;  %11703 = vmatpush3.bf16.msra.mxu1 %v12219_v22  ;;  %v10327_v26 = vld [vmem:[%s14968_s1 + $0x30] ss:$0 sm:$0xff] }
 0xb31   : > { %11692 = vmatprep.subr.bf16.mxu0 %v12453_v1  ;;  %11716 = vmatprep.subr.bf16.mxu1 %v12453_v1 }
 0xb33   : > { %11681 = vmatmul.mubr.msk.bf16.vlgmr.msra.gmra.mxu0 %vm1097_vm1, %v13753_v24  ;;  %11705 = vmatmul.mubr.msk.bf16.vlgmr.msra.gmra.mxu1 %vm1097_vm1, %v13753_v24 }
 0xb34   : > { %11693 = vmatpush3.bf16.msra.mxu0 %v12220_v59  ;;  %11717 = vmatpush3.bf16.msra.mxu1 %v12221_v60 }
 0xb35   : > { %11694 = vmatprep.subr.bf16.mxu0 %v12453_v1  ;;  %11718 = vmatprep.subr.bf16.mxu1 %v12453_v1 }
 0xb36   : > { %11696 = vmatprep.mubr.msk.bf16.mxu0 %vm12454_vm0, %v12453_v1  ;;  %11720 = vmatprep.mubr.msk.bf16.mxu1 %vm12454_vm0, %v12453_v1 }
 0xb38   : > { %11695 = vmatpush3.bf16.msra.mxu0 %v12222_v61  ;;  %11719 = vmatpush3.bf16.msra.mxu1 %v12223_v0 }
 0xb39   : > { %11708 = vmatprep.subr.bf16.mxu0 %v12453_v1  ;;  %11732 = vmatprep.subr.bf16.mxu1 %v12453_v1 }
 0xb3b   : > { %11697 = vmatmul.mubr.msk.bf16.vlgmr.msra.gmra.mxu0 %vm1097_vm1, %v13753_v24  ;;  %11721 = vmatmul.mubr.msk.bf16.vlgmr.msra.gmra.mxu1 %vm1097_vm1, %v13753_v24 }
 0xb3c   : > { %11709 = vmatpush3.bf16.msra.mxu0 %v12224_v2  ;;  %11733 = vmatpush3.bf16.msra.mxu1 %v12225_v57  ;;  %v10315_v57 = vld [vmem:[%s14968_s1 + $0x24] ss:$0 sm:$0xff] }
 0xb3d   : > { %11710 = vmatprep.subr.bf16.mxu0 %v12453_v1  ;;  %11734 = vmatprep.subr.bf16.mxu1 %v12453_v1 }
 0xb3e   : > { %11712 = vmatprep.mubr.msk.bf16.mxu0 %vm12454_vm0, %v12453_v1  ;;  %11736 = vmatprep.mubr.msk.bf16.mxu1 %vm12454_vm0, %v12453_v1 }
 0xb40   : > { %11711 = vmatpush3.bf16.msra.mxu0 %v12226_v3  ;;  %11735 = vmatpush3.bf16.msra.mxu1 %v12227_v4 }
 0xb41   : > { %11724 = vmatprep.subr.bf16.mxu0 %v12453_v1  ;;  %11748 = vmatprep.subr.bf16.mxu1 %v12453_v1 }
 0xb43   : > { %11713 = vmatmul.mubr.msk.bf16.vlgmr.msra.gmra.mxu0 %vm1097_vm1, %v13753_v24  ;;  %11737 = vmatmul.mubr.msk.bf16.vlgmr.msra.gmra.mxu1 %vm1097_vm1, %v13753_v24 }
 0xb44   : > { %11725 = vmatpush3.bf16.msra.mxu0 %v12228_v5  ;;  %11749 = vmatpush3.bf16.msra.mxu1 %v12229_v11 }
 0xb45   : > { %11726 = vmatprep.subr.bf16.mxu0 %v12453_v1  ;;  %11750 = vmatprep.subr.bf16.mxu1 %v12453_v1 }
 0xb46   : > { %11728 = vmatprep.mubr.msk.bf16.mxu0 %vm12454_vm0, %v12453_v1  ;;  %11752 = vmatprep.mubr.msk.bf16.mxu1 %vm12454_vm0, %v12453_v1 }
 0xb48   : > { %11727 = vmatpush3.bf16.msra.mxu0 %v12230_v6  ;;  %11751 = vmatpush3.bf16.msra.mxu1 %v12231_v16  ;;  %v10329_v16 = vld [vmem:[%s14968_s1 + $0x32] ss:$0 sm:$0xff] }
 0xb49   : > { %11740 = vmatprep.subr.bf16.mxu0 %v12453_v1  ;;  %11764 = vmatprep.subr.bf16.mxu1 %v12453_v1 }
 0xb4b   : > { %11729 = vmatmul.mubr.msk.bf16.vlgmr.msra.gmra.mxu0 %vm1097_vm1, %v13753_v24  ;;  %11753 = vmatmul.mubr.msk.bf16.vlgmr.msra.gmra.mxu1 %vm1097_vm1, %v13753_v24 }
 0xb4c   : > { %11741 = vmatpush3.bf16.msra.mxu0 %v12232_v21  ;;  %11765 = vmatpush3.bf16.msra.mxu1 %v12233_v37 }
 0xb4d   : > { %11742 = vmatprep.subr.bf16.mxu0 %v12453_v1  ;;  %11766 = vmatprep.subr.bf16.mxu1 %v12453_v1 }
 0xb4e   : > { %11744 = vmatprep.mubr.msk.bf16.mxu0 %vm12454_vm0, %v12453_v1  ;;  %11768 = vmatprep.mubr.msk.bf16.mxu1 %vm12454_vm0, %v12453_v1 }
 0xb50   : > { %11743 = vmatpush3.bf16.msra.mxu0 %v12234_v9  ;;  %11767 = vmatpush3.bf16.msra.mxu1 %v12235_v27 }
 0xb51   : > { %11756 = vmatprep.subr.bf16.mxu0 %v12453_v1  ;;  %11780 = vmatprep.subr.bf16.mxu1 %v12453_v1 }
 0xb53   : > { %11745 = vmatmul.mubr.msk.bf16.vlgmr.msra.gmra.mxu0 %vm1097_vm1, %v13753_v24  ;;  %11769 = vmatmul.mubr.msk.bf16.vlgmr.msra.gmra.mxu1 %vm1097_vm1, %v13753_v24 }
 0xb54   : > { %11757 = vmatpush3.bf16.msra.mxu0 %v12236_v12  ;;  %11760 = vmatprep.mubr.msk.bf16.mxu0 %vm12454_vm0, %v12453_v1 }
 0xb55   : > { %11758 = vmatprep.subr.bf16.mxu0 %v12453_v1  ;;  %11782 = vmatprep.mubr.msk.bf16.mxu1 %vm12454_vm0, %v12453_v1 }
 0xb58   : > { %11759 = vmatpush3.bf16.msra.mxu0 %v12237_v31 }
 0xb59   : > { %11772 = vmatprep.subr.bf16.mxu0 %v12453_v1 }
 0xb5b   : > { %11761 = vmatmul.mubr.msk.bf16.vlgmr.msra.gmra.mxu0 %vm1097_vm1, %v13753_v24 }
 0xb5c   : > { %11773 = vmatpush3.bf16.msra.mxu0 %v12238_v42  ;;  %11776 = vmatprep.mubr.msk.bf16.mxu0 %vm12454_vm0, %v12453_v1 }
 0xb5d   : > { %11774 = vmatprep.subr.bf16.mxu0 %v12453_v1 }
 0xb60   : > { %11775 = vmatpush3.bf16.msra.mxu0 %v12239_v44 }
 0xb61   : > { %11786 = vmatprep.subr.bf16.mxu0 %v12453_v1 }
 0xb63   : > { %11777 = vmatmul.mubr.msk.bf16.vlgmr.msra.gmra.mxu0 %vm1097_vm1, %v13753_v24 }
 0xb64   : > { %11788 = vmatprep.mubr.msk.bf16.mxu0 %vm12454_vm0, %v12453_v1 }
 0xb93   : > { %v5655_v32 = vpop.f32.mrf.mxu0  ;;  %v14165_v43 = vpop.f32.mrf.mxu1 }
 0xb94   : > { %v5656_v21 = vadd.f32 %v10315_v57, %v5655_v32 }
 0xb95   : > { %v11498_v7 = vpop.f32.mrf.mxu0  ;;  %v11514_v15 = vpop.f32.mrf.mxu1 }
 0xb96   : > { %v7481_v42 = vpack.c.bf16 %v5656_v21, %v5656_v21  ;;  %v10317_v7 = vld [vmem:[%s14968_s1 + $0x26] ss:$0 sm:$0xff] }
 0xb97   : > { %v5658_v29 = vpop.f32.mrf.mxu0  ;;  %v5762_v63 = vpop.f32.mrf.mxu1 }
 0xb99   : > { %v11499_v54 = vpop.f32.mrf.mxu0  ;;  %v11515_v13 = vpop.f32.mrf.mxu1 }
 0xb9a   : > { %v10328_v13 = vld [vmem:[%s14968_s1 + $0x31] ss:$0 sm:$0xff] }
 0xb9b   : > { %v14167_v19 = vpop.f32.mrf.mxu0  ;;  %v14169_v52 = vpop.f32.mrf.mxu1 }
 0xb9d   : > { %v11506_v39 = vpop.f32.mrf.mxu0  ;;  %v11530_v53 = vpop.f32.mrf.mxu1 }
 0xb9e   : > { %v10331_v39 = vld [vmem:[%s14968_s1 + $0x34] ss:$0 sm:$0xff]  ;;  %v5760_v53 = vadd.f32 %v10317_v7, %v14165_v43 }
 0xb9f   : > { %v5710_v10 = vpop.f32.mrf.mxu0  ;;  %v5866_v24 = vpop.f32.mrf.mxu1 }
 0xba1   : > { %v11507_v8 = vpop.f32.mrf.mxu0  ;;  %v11531_v45 = vpop.f32.mrf.mxu1 }
 0xba3   : > { %v14171_v56 = vpop.f32.mrf.mxu0  ;;  %v14173_v58 = vpop.f32.mrf.mxu1 }
 0xba5   : > { %v11522_v62 = vpop.f32.mrf.mxu0  ;;  %v11546_v23 = vpop.f32.mrf.mxu1 }
 0xba7   : > { %v5814_v30 = vpop.f32.mrf.mxu0  ;;  %v5970_v40 = vpop.f32.mrf.mxu1 }
 0xba8   : > { %v7483_v30 = vpack.c.bf16 %v5760_v53, %v5760_v53 }
 0xba9   : > { %v11523_v17 = vpop.f32.mrf.mxu0  ;;  %v11547_v33 = vpop.f32.mrf.mxu1 }
 0xbaa   : > { %v10316_v33 = vld [vmem:[%s14968_s1 + $0x25] ss:$0 sm:$0xff] }
 0xbab   : > { %v14175_v34 = vpop.f32.mrf.mxu0  ;;  %v14177_v35 = vpop.f32.mrf.mxu1 }
 0xbad   : > { %v11538_v38 = vpop.f32.mrf.mxu0  ;;  %v11562_v18 = vpop.f32.mrf.mxu1 }
 0xbae   : > { %v10319_v38 = vld [vmem:[%s14968_s1 + $0x28] ss:$0 sm:$0xff] }
 0xbaf   : > { %v5918_v28 = vpop.f32.mrf.mxu0  ;;  %v6074_v36 = vpop.f32.mrf.mxu1 }
 0xbb1   : > { %v11539_v20 = vpop.f32.mrf.mxu0  ;;  %v11563_v47 = vpop.f32.mrf.mxu1 }
 0xbb3   : > { %v14179_v46 = vpop.f32.mrf.mxu0  ;;  %v14181_v49 = vpop.f32.mrf.mxu1 }
 0xbb5   : > { %v11554_v50 = vpop.f32.mrf.mxu0  ;;  %v11578_v51 = vpop.f32.mrf.mxu1 }
 0xbb6   : > { %v10330_v50 = vld [vmem:[%s14968_s1 + $0x33] ss:$0 sm:$0xff]  ;;  %v10333_v51 = vld [vmem:[%s14968_s1 + $0x36] ss:$0 sm:$0xff] }
 0xbb7   : > { %v6022_v14 = vpop.f32.mrf.mxu0  ;;  %v6178_v55 = vpop.f32.mrf.mxu1 }
 0xbb8   : > { %v5708_v14 = vadd.f32 %v10316_v33, %v14167_v19  ;;  %v5864_v55 = vadd.f32 %v10319_v38, %v14169_v52  ;;  %v10318_v19 = vld [vmem:[%s14968_s1 + $0x27] ss:$0 sm:$0xff]  ;;  %v10321_v52 = vld [vmem:[%s14968_s1 + $0x2a] ss:$0 sm:$0xff] }
 0xbb9   : > { %v11555_v48 = vpop.f32.mrf.mxu0  ;;  %v11579_v25 = vpop.f32.mrf.mxu1 }
 0xbbb   : > { %v14186_v22 = vpop.f32.mrf.mxu0  ;;  %v6279_v59 = vpop.f32.mrf.mxu1 }
 0xbbc   : > { %v6280_v60 = vadd.f32 %v10327_v26, %v6279_v59 }
 0xbbd   : > { %v11570_v61 = vpop.f32.mrf.mxu0  ;;  %v11594_v0 = vpop.f32.mrf.mxu1 }
 0xbbe   : > { %v7493_v2 = vpack.c.bf16 %v6280_v60, %v6280_v60  ;;  %v7482_v0 = vpack.c.bf16 %v5708_v14, %v5708_v14 }
 0xbbf   : > { %v6126_v3 = vpop.f32.mrf.mxu0  ;;  %v6282_v4 = vpop.f32.mrf.mxu1 }
 0xbc0   : > { %v7521_v5 = vsel %vm2997_vm2, %v7493_v2, 0  ;;  %v7485_v2 = vpack.c.bf16 %v5864_v55, %v5864_v55 }
 0xbc1   : > { %v11571_v11 = vpop.f32.mrf.mxu0  ;;  %v11595_v6 = vpop.f32.mrf.mxu1  ;;  %11781 = vmatpush3.bf16.xpose.msra.mxu1 %v7521_v5 }
 0xbc2   : > { %11792 = vmatprep.subr.bf16.mxu1 %v12453_v1 }
 0xbc3   : > { %v14196_v37 = vpop.f32.mrf.mxu0  ;;  %v6383_v9 = vpop.f32.mrf.mxu1 }
 0xbc4   : > { %v6384_v27 = vadd.f32 %v10329_v16, %v6383_v9  ;;  %v10332_v9 = vld [vmem:[%s14968_s1 + $0x35] ss:$0 sm:$0xff] }
 0xbc5   : > { %v11586_v12 = vpop.f32.mrf.mxu0  ;;  %v11610_v31 = vpop.f32.mrf.mxu1 }
 0xbc6   : > { %v7495_v44 = vpack.c.bf16 %v6384_v27, %v6384_v27  ;;  %v10335_v27 = vld [vmem:[%s14968_s1 + $0x38] ss:$0 sm:$0xff]  ;;  %v5812_v12 = vadd.f32 %v10318_v19, %v14171_v56  ;;  %v5968_v31 = vadd.f32 %v10321_v52, %v14173_v58 }
 0xbc7   : > { %v6230_v15 = vpop.f32.mrf.mxu0  ;;  %v6386_v29 = vpop.f32.mrf.mxu1 }
 0xbc8   : > { %v7613_v63 = vsel %vm2997_vm2, %v7495_v44, 0  ;;  %11783 = vmatmul.mubr.msk.bf16.vlgmr.msra.gmra.mxu1 %vm2997_vm2, %v7481_v42  ;;  %v7487_v56 = vpack.c.bf16 %v5968_v31, %v5968_v31 }
 0xbc9   : > { %v11587_v32 = vpop.f32.mrf.mxu0  ;;  %v11611_v54 = vpop.f32.mrf.mxu1  ;;  %11793 = vmatpush3.bf16.xpose.msra.mxu1 %v7613_v63  ;;  %11794 = vmatprep.mubr.msk.bf16.mxu1 %vm12454_vm0, %v12453_v1 }
 0xbca   : > { %11804 = vmatprep.subr.bf16.mxu1 %v12453_v1  ;;  %v7484_v32 = vpack.c.bf16 %v5812_v12, %v5812_v12 }
 0xbcb   : > { %v6331_v10 = vpop.f32.mrf.mxu0  ;;  %v6487_v24 = vpop.f32.mrf.mxu1 }
 0xbcc   : > { %v6332_v8 = vadd.f32 %v10328_v13, %v6331_v10  ;;  %v6488_v45 = vadd.f32 %v10331_v39, %v6487_v24  ;;  %v10320_v13 = vld [vmem:[%s14968_s1 + $0x29] ss:$0 sm:$0xff]  ;;  %v10323_v39 = vld [vmem:[%s14968_s1 + $0x2c] ss:$0 sm:$0xff] }
 0xbcd   : > { %v11602_v62 = vpop.f32.mrf.mxu0  ;;  %v11626_v23 = vpop.f32.mrf.mxu1 }
 0xbce   : > { %v7494_v40 = vpack.c.bf16 %v6332_v8, %v6332_v8  ;;  %v7497_v17 = vpack.c.bf16 %v6488_v45, %v6488_v45  ;;  %v10334_v23 = vld [vmem:[%s14968_s1 + $0x37] ss:$0 sm:$0xff] }
 0xbcf   : > { %v6334_v43 = vpop.f32.mrf.mxu0  ;;  %v6490_v18 = vpop.f32.mrf.mxu1 }
 0xbd0   : > { %v7567_v28 = vsel %vm2997_vm2, %v7494_v40, 0  ;;  %v7705_v36 = vsel %vm2997_vm2, %v7497_v17, 0  ;;  %11795 = vmatmul.mubr.msk.bf16.vlgmr.msra.gmra.mxu1 %vm2997_vm2, %v7483_v30  ;;  %v10337_v30 = vld [vmem:[%s14968_s1 + $0x3a] ss:$0 sm:$0xff]  ;;  %v5916_v40 = vadd.f32 %v10320_v13, %v14175_v34  ;;  %v6072_v17 = vadd.f32 %v10323_v39, %v14177_v35 }
 0xbd1   : > { %v11603_v20 = vpop.f32.mrf.mxu0  ;;  %v11627_v47 = vpop.f32.mrf.mxu1  ;;  %11787 = vmatpush3.bf16.xpose.msra.mxu0 %v7567_v28  ;;  %11805 = vmatpush3.bf16.xpose.msra.mxu1 %v7705_v36 }
 0xbd2   : > { %11806 = vmatprep.mubr.msk.bf16.mxu1 %vm12454_vm0, %v12453_v1  ;;  %11798 = vmatprep.subr.bf16.mxu0 %v12453_v1  ;;  %v7486_v20 = vpack.c.bf16 %v5916_v40, %v5916_v40  ;;  %v7489_v34 = vpack.c.bf16 %v6072_v17, %v6072_v17 }
 0xbd3   : > { %v6435_v48 = vpop.f32.mrf.mxu0  ;;  %v6591_v25 = vpop.f32.mrf.mxu1  ;;  %11816 = vmatprep.subr.bf16.mxu1 %v12453_v1 }
 0xbd4   : > { %v6436_v26 = vadd.f32 %v10330_v50, %v6435_v48  ;;  %v6592_v59 = vadd.f32 %v10333_v51, %v6591_v25  ;;  %v10322_v50 = vld [vmem:[%s14968_s1 + $0x2b] ss:$0 sm:$0xff]  ;;  %v10325_v51 = vld [vmem:[%s14968_s1 + $0x2e] ss:$0 sm:$0xff] }
 0xbd5   : > { %v11618_v60 = vpop.f32.mrf.mxu0  ;;  %v11642_v61 = vpop.f32.mrf.mxu1 }
 0xbd6   : > { %v7496_v57 = vpack.c.bf16 %v6436_v26, %v6436_v26  ;;  %v7499_v3 = vpack.c.bf16 %v6592_v59, %v6592_v59  ;;  %v10336_v60 = vld [vmem:[%s14968_s1 + $0x39] ss:$0 sm:$0xff]  ;;  %v10339_v61 = vld [vmem:[%s14968_s1 + $0x3c] ss:$0 sm:$0xff] }
 0xbd7   : > { %v6438_v4 = vpop.f32.mrf.mxu0  ;;  %v6594_v5 = vpop.f32.mrf.mxu1 }
 0xbd8   : > { %v7659_v11 = vsel %vm2997_vm2, %v7496_v57, 0  ;;  %v7797_v6 = vsel %vm2997_vm2, %v7499_v3, 0  ;;  %11789 = vmatmul.mubr.msk.bf16.vlgmr.msra.gmra.mxu0 %vm2997_vm2, %v7482_v0  ;;  %11807 = vmatmul.mubr.msk.bf16.vlgmr.msra.gmra.mxu1 %vm2997_vm2, %v7485_v2  ;;  %v6020_v0 = vadd.f32 %v10322_v50, %v14179_v46  ;;  %v6176_v2 = vadd.f32 %v10325_v51, %v14181_v49 }
 0xbd9   : > { %v11619_v16 = vpop.f32.mrf.mxu0  ;;  %v11643_v21 = vpop.f32.mrf.mxu1  ;;  %11799 = vmatpush3.bf16.xpose.msra.mxu0 %v7659_v11  ;;  %11817 = vmatpush3.bf16.xpose.msra.mxu1 %v7797_v6 }
 0xbda   : > { %11800 = vmatprep.mubr.msk.bf16.mxu0 %vm12454_vm0, %v12453_v1  ;;  %11818 = vmatprep.mubr.msk.bf16.mxu1 %vm12454_vm0, %v12453_v1  ;;  %v7488_v11 = vpack.c.bf16 %v6020_v0, %v6020_v0  ;;  %v7491_v46 = vpack.c.bf16 %v6176_v2, %v6176_v2  ;;  %v10324_v16 = vld [vmem:[%s14968_s1 + $0x2d] ss:$0 sm:$0xff] }
 0xbdb   : > { %v6539_v42 = vpop.f32.mrf.mxu0  ;;  %v6695_v44 = vpop.f32.mrf.mxu1  ;;  %11810 = vmatprep.subr.bf16.mxu0 %v12453_v1  ;;  %11828 = vmatprep.subr.bf16.mxu1 %v12453_v1 }
 0xbdc   : > { %v6540_v7 = vadd.f32 %v10332_v9, %v6539_v42  ;;  %v6696_v15 = vadd.f32 %v10335_v27, %v6695_v44  ;;  %v10338_v44 = vld [vmem:[%s14968_s1 + $0x3b] ss:$0 sm:$0xff] }
 0xbdd   : > { %v11634_v29 = vpop.f32.mrf.mxu0  ;;  %v11658_v63 = vpop.f32.mrf.mxu1 }
 0xbde   : > { %v7498_v54 = vpack.c.bf16 %v6540_v7, %v6540_v7  ;;  %v7501_v58 = vpack.c.bf16 %v6696_v15, %v6696_v15  ;;  %v6124_v7 = vadd.f32 %v10324_v16, %v14186_v22  ;;  %v10326_v22 = vld [vmem:[%s14968_s1 + $0x2f] ss:$0 sm:$0xff] }
 0xbdf   : > { %v6542_v53 = vpop.f32.mrf.mxu0  ;;  %v6698_v10 = vpop.f32.mrf.mxu1 }
 0xbe0   : > { %v7751_v24 = vsel %vm2997_vm2, %v7498_v54, 0  ;;  %v7889_v8 = vsel %vm2997_vm2, %v7501_v58, 0  ;;  %11801 = vmatmul.mubr.msk.bf16.vlgmr.msra.gmra.mxu0 %vm2997_vm2, %v7484_v32  ;;  %11819 = vmatmul.mubr.msk.bf16.vlgmr.msra.gmra.mxu1 %vm2997_vm2, %v7487_v56  ;;  %v7490_v54 = vpack.c.bf16 %v6124_v7, %v6124_v7 }
 0xbe1   : > { %v11635_v45 = vpop.f32.mrf.mxu0  ;;  %v11659_v62 = vpop.f32.mrf.mxu1  ;;  %11811 = vmatpush3.bf16.xpose.msra.mxu0 %v7751_v24  ;;  %11829 = vmatpush3.bf16.xpose.msra.mxu1 %v7889_v8  ;;  %v10340_v8 = vld [vmem:[%s14968_s1 + $0x3d] ss:$0 sm:$0xff] }
 0xbe2   : > { %11812 = vmatprep.mubr.msk.bf16.mxu0 %vm12454_vm0, %v12453_v1  ;;  %11830 = vmatprep.mubr.msk.bf16.mxu1 %vm12454_vm0, %v12453_v1  ;;  %v6228_v45 = vadd.f32 %v10326_v22, %v14196_v37 }
 0xbe3   : > { %v6643_v33 = vpop.f32.mrf.mxu0  ;;  %v6799_v38 = vpop.f32.mrf.mxu1  ;;  %11822 = vmatprep.subr.bf16.mxu0 %v12453_v1  ;;  %11840 = vmatprep.subr.bf16.mxu1 %v12453_v1 }
 0xbe4   : > { %v6644_v43 = vadd.f32 %v10334_v23, %v6643_v33  ;;  %v6800_v18 = vadd.f32 %v10337_v30, %v6799_v38  ;;  %v7492_v33 = vpack.c.bf16 %v6228_v45, %v6228_v45 }
 0xbe5   : > { %v11650_v28 = vpop.f32.mrf.mxu0  ;;  %v11674_v36 = vpop.f32.mrf.mxu1 }
 0xbe6   : > { %v7500_v47 = vpack.c.bf16 %v6644_v43, %v6644_v43  ;;  %v7503_v35 = vpack.c.bf16 %v6800_v18, %v6800_v18 }
 0xbe7   : > { %v6646_v14 = vpop.f32.mrf.mxu0  ;;  %v6802_v55 = vpop.f32.mrf.mxu1 }
 0xbe8   : > { %v7843_v48 = vsel %vm2997_vm2, %v7500_v47, 0  ;;  %v7981_v25 = vsel %vm2997_vm2, %v7503_v35, 0  ;;  %11813 = vmatmul.mubr.msk.bf16.vlgmr.msra.gmra.mxu0 %vm2997_vm2, %v7486_v20  ;;  %11831 = vmatmul.mubr.msk.bf16.vlgmr.msra.gmra.mxu1 %vm2997_vm2, %v7489_v34 }
 0xbe9   : > { %v11651_v26 = vpop.f32.mrf.mxu0  ;;  %v11675_v59 = vpop.f32.mrf.mxu1  ;;  %11823 = vmatpush3.bf16.xpose.msra.mxu0 %v7843_v48  ;;  %11841 = vmatpush3.bf16.xpose.msra.mxu1 %v7981_v25 }
 0xbea   : > { %11824 = vmatprep.mubr.msk.bf16.mxu0 %vm12454_vm0, %v12453_v1  ;;  %11842 = vmatprep.mubr.msk.bf16.mxu1 %vm12454_vm0, %v12453_v1 }
 0xbeb   : > { %v6747_v57 = vpop.f32.mrf.mxu0  ;;  %v6903_v3 = vpop.f32.mrf.mxu1  ;;  %11834 = vmatprep.subr.bf16.mxu0 %v12453_v1  ;;  %11852 = vmatprep.subr.bf16.mxu1 %v12453_v1 }
 0xbec   : > { %v6748_v19 = vadd.f32 %v10336_v60, %v6747_v57  ;;  %v6904_v52 = vadd.f32 %v10339_v61, %v6903_v3 }
 0xbed   : > { %v11666_v4 = vpop.f32.mrf.mxu0  ;;  %v11690_v5 = vpop.f32.mrf.mxu1 }
 0xbee   : > { %v7502_v6 = vpack.c.bf16 %v6748_v19, %v6748_v19  ;;  %v7505_v49 = vpack.c.bf16 %v6904_v52, %v6904_v52 }
 0xbef   : > { %v6750_v21 = vpop.f32.mrf.mxu0  ;;  %v6906_v9 = vpop.f32.mrf.mxu1 }
 0xbf0   : > { %v7935_v27 = vsel %vm2997_vm2, %v7502_v6, 0  ;;  %v8242_v12 = vsel %vm3721_vm3, %v7505_v49, 0  ;;  %11825 = vmatmul.mubr.msk.bf16.vlgmr.msra.gmra.mxu0 %vm2997_vm2, %v7488_v11  ;;  %11843 = vmatmul.mubr.msk.bf16.vlgmr.msra.gmra.mxu1 %vm2997_vm2, %v7491_v46 }
 0xbf1   : > { %v11667_v31 = vpop.f32.mrf.mxu0  ;;  %v11691_v42 = vpop.f32.mrf.mxu1  ;;  %11835 = vmatpush3.bf16.xpose.msra.mxu0 %v7935_v27  ;;  %11853 = vmatpush3.bf16.msra.mxu1 %v8242_v12 }
 0xbf2   : > { %11836 = vmatprep.mubr.msk.bf16.mxu0 %vm12454_vm0, %v12453_v1  ;;  %11846 = vmatprep.subr.bf16.mxu0 %v12453_v1  ;;  %v10303_v42 = vld [vmem:[%s14969_s30 + $0x60] sm:$0xff] }
 0xbf3   : > { %v6851_v15 = vpop.f32.mrf.mxu0  ;;  %v14320_v29 = vpop.f32.mrf.mxu1  ;;  %11854 = vmatprep.mubr.msk.bf16.mxu1 %vm12454_vm0, %v12453_v1  ;;  %11864 = vmatprep.subr.bf16.mxu1 %v12453_v1 }
 0xbf4   : > { %v6852_v63 = vadd.f32 %v10338_v44, %v6851_v15 }
 0xbf5   : > { %v11682_v32 = vpop.f32.mrf.mxu0  ;;  %v11706_v56 = vpop.f32.mrf.mxu1 }
 0xbf6   : > { %v7504_v58 = vpack.c.bf16 %v6852_v63, %v6852_v63 }
 0xbf7   : > { %v6854_v13 = vpop.f32.mrf.mxu0  ;;  %v7010_v39 = vpop.f32.mrf.mxu1 }
 0xbf8   : > { %v8027_v53 = vsel %vm2997_vm2, %v7504_v58, 0  ;;  %11837 = vmatmul.mubr.msk.bf16.vlgmr.msra.gmra.mxu0 %vm2997_vm2, %v7490_v54  ;;  %v10305_v54 = vld [vmem:[%s14969_s30 + $0x70] sm:$0xff] }
 0xbf9   : > { %v11683_v10 = vpop.f32.mrf.mxu0  ;;  %v11707_v24 = vpop.f32.mrf.mxu1  ;;  %11847 = vmatpush3.bf16.xpose.msra.mxu0 %v8027_v53  ;;  %11848 = vmatprep.mubr.msk.bf16.mxu0 %vm12454_vm0, %v12453_v1 }
 0xbfa   : > { %11858 = vmatprep.subr.bf16.mxu0 %v12453_v1  ;;  %v10304_v24 = vld [vmem:[%s14969_s30 + $0x68] sm:$0xff] }
 0xbfb   : > { %v6955_v62 = vpop.f32.mrf.mxu0  ;;  %v14337_v23 = vpop.f32.mrf.mxu1 }
 0xbfc   : > { %v6956_v30 = vadd.f32 %v10340_v8, %v6955_v62  ;;  %v10307_v8 = vld [vmem:[%s14969_s30 + $0x80] sm:$0xff] }
 0xbfd   : > { %v11698_v40 = vpop.f32.mrf.mxu0  ;;  %v11722_v17 = vpop.f32.mrf.mxu1 }
 0xbfe   : > { %v7506_v38 = vpack.c.bf16 %v6956_v30, %v6956_v30 }
 0xbff   : > { %v6958_v43 = vpop.f32.mrf.mxu0  ;;  %v7114_v18 = vpop.f32.mrf.mxu1 }
 0xc00   : > { %v8288_v28 = vsel %vm3721_vm3, %v7506_v38, 0  ;;  %11849 = vmatmul.mubr.msk.bf16.vlgmr.msra.gmra.mxu0 %vm2997_vm2, %v7492_v33 }
 0xc01   : > { %v11699_v36 = vpop.f32.mrf.mxu0  ;;  %v11723_v20 = vpop.f32.mrf.mxu1  ;;  %11859 = vmatpush3.bf16.msra.mxu0 %v8288_v28  ;;  %11860 = vmatprep.mubr.msk.bf16.mxu0 %vm12454_vm0, %v12453_v1 }
 0xc02   : > { %11870 = vmatprep.subr.bf16.mxu0 %v12453_v1 }
 0xc03   : > { %v14344_v37 = vpop.f32.mrf.mxu0  ;;  %v14346_v34 = vpop.f32.mrf.mxu1 }
 0xc05   : > { %v11714_v47 = vpop.f32.mrf.mxu0  ;;  %v11738_v35 = vpop.f32.mrf.mxu1 }
 0xc06   : > { %v10306_v47 = vld [vmem:[%s14969_s30 + $0x78] sm:$0xff]  ;;  %v10309_v35 = vld [vmem:[%s14969_s30 + $0x90] sm:$0xff] }
 0xc07   : > { %v7062_v50 = vpop.f32.mrf.mxu0  ;;  %v7218_v51 = vpop.f32.mrf.mxu1 }
 0xc09   : > { %v11715_v14 = vpop.f32.mrf.mxu0  ;;  %v11739_v55 = vpop.f32.mrf.mxu1 }
 0xc0b   : > { %v14348_v48 = vpop.f32.mrf.mxu0  ;;  %v14350_v25 = vpop.f32.mrf.mxu1 }
 0xc0d   : > { %v11730_v26 = vpop.f32.mrf.mxu0  ;;  %v11754_v59 = vpop.f32.mrf.mxu1 }
 0xc0f   : > { %v7166_v60 = vpop.f32.mrf.mxu0  ;;  %v7322_v61 = vpop.f32.mrf.mxu1 }
 0xc11   : > { %v11731_v0 = vpop.f32.mrf.mxu0  ;;  %v11755_v2 = vpop.f32.mrf.mxu1 }
 0xc13   : > { %v14352_v57 = vpop.f32.mrf.mxu0  ;;  %v14354_v3 = vpop.f32.mrf.mxu1 }
 0xc15   : > { %v11746_v19 = vpop.f32.mrf.mxu0  ;;  %v11770_v52 = vpop.f32.mrf.mxu1 }
 0xc17   : > { %v7270_v4 = vpop.f32.mrf.mxu0  ;;  %v7426_v5 = vpop.f32.mrf.mxu1 }
 0xc18   : > { %v10308_v4 = vld [vmem:[%s14969_s30 + $0x88] sm:$0xff]  ;;  %v10311_v5 = vld [vmem:[%s14969_s30 + $0xa0] sm:$0xff] }
 0xc19   : > { %v11747_v11 = vpop.f32.mrf.mxu0  ;;  %v11771_v46 = vpop.f32.mrf.mxu1 }
 0xc1b   : > { %v14356_v6 = vpop.f32.mrf.mxu0 }
 0xc1d   : > { %v11762_v49 = vpop.f32.mrf.mxu0 }
 0xc1f   : > { %v7374_v16 = vpop.f32.mrf.mxu0 }
 0xc21   : > { %v11763_v21 = vpop.f32.mrf.mxu0 }
 0xc23   : > { %v14358_v9 = vpop.f32.mrf.mxu0 }
 0xc25   : > { %v11778_v27 = vpop.f32.mrf.mxu0 }
 0xc27   : > { %v7478_v12 = vpop.f32.mrf.mxu0 }
 0xc29   : > { %v11779_v31 = vpop.f32.mrf.mxu0 }
 0xc88   : > { %v7557_v44 = vpop.f32.mrf.mxu1 }
 0xc89   : > { %v14363_v7 = vmul.f32 %v10303_v42, %v7557_v44 }
 0xc8a   : > { %v11784_v15 = vpop.f32.mrf.mxu1 }
 0xc8b   : > { %v8081_v63 = vsel %vm2997_vm2, %v14363_v7, -inf }
 0xc8c   : > { %8082 = vmax.xlane.f32.xlu0 %v8081_v63  ;;  %v7560_v32 = vpop.f32.mrf.mxu1 }
 0xc8d   : > { %v10310_v32 = vld [vmem:[%s14969_s30 + $0x98] sm:$0xff] }
 0xc8e   : > { %v11785_v56 = vpop.f32.mrf.mxu1 }
 0xc8f   : > { %v10313_v56 = vld [vmem:[%s14969_s30 + $0xb0] sm:$0xff] }
 0xc90   : > { %v7649_v58 = vpop.f32.mrf.mxu1 }
 0xc91   : > { %v14370_v22 = vmul.f32 %v10305_v54, %v7649_v58 }
 0xc92   : > { %v11796_v13 = vpop.f32.mrf.mxu1 }
 0xc93   : > { %v8087_v39 = vsel %vm2997_vm2, %v14370_v22, -inf }
 0xc94   : > { %8088 = vmax.xlane.f32.xlu0 %v8087_v39  ;;  %v7652_v53 = vpop.f32.mrf.mxu1 }
 0xc96   : > { %v11797_v10 = vpop.f32.mrf.mxu1 }
 0xc98   : > { %v7603_v45 = vpop.f32.mrf.mxu0  ;;  %v7741_v62 = vpop.f32.mrf.mxu1 }
 0xc99   : > { %v14380_v30 = vmul.f32 %v10304_v24, %v7603_v45  ;;  %v14382_v40 = vmul.f32 %v10307_v8, %v7741_v62 }
 0xc9a   : > { %v11790_v17 = vpop.f32.mrf.mxu0  ;;  %v11808_v33 = vpop.f32.mrf.mxu1 }
 0xc9b   : > { %v8093_v38 = vsel %vm2997_vm2, %v14382_v40, -inf  ;;  %v8084_v43 = vsel %vm2997_vm2, %v14380_v30, -inf }
 0xc9c   : > { %8094 = vmax.xlane.f32.xlu0 %v8093_v38  ;;  %v7744_v18 = vpop.f32.mrf.mxu1  ;;  %8085 = vmax.xlane.f32.xlu1 %v8084_v43  ;;  %v7606_v28 = vpop.f32.mrf.mxu0  ;;  %v10312_v38 = vld [vmem:[%s14969_s30 + $0xa8] sm:$0xff] }
 0xc9e   : > { %v11791_v36 = vpop.f32.mrf.mxu0  ;;  %v11809_v20 = vpop.f32.mrf.mxu1 }
 0xca0   : > { %v7695_v50 = vpop.f32.mrf.mxu0  ;;  %v7833_v51 = vpop.f32.mrf.mxu1 }
 0xca1   : > { %v14394_v14 = vmul.f32 %v10306_v47, %v7695_v50  ;;  %v14396_v55 = vmul.f32 %v10309_v35, %v7833_v51  ;;  %v10314_v35 = vld [vmem:[%s14969_s30 + $0xb8] sm:$0xff] }
 0xca2   : > { %v11802_v26 = vpop.f32.mrf.mxu0  ;;  %v11820_v59 = vpop.f32.mrf.mxu1 }
 0xca3   : > { %v8099_v60 = vsel %vm2997_vm2, %v14396_v55, -inf  ;;  %v8090_v61 = vsel %vm2997_vm2, %v14394_v14, -inf }
 0xca4   : > { %8100 = vmax.xlane.f32.xlu0 %v8099_v60  ;;  %v7836_v0 = vpop.f32.mrf.mxu1  ;;  %8091 = vmax.xlane.f32.xlu1 %v8090_v61  ;;  %v7698_v2 = vpop.f32.mrf.mxu0 }
 0xca6   : > { %v11803_v19 = vpop.f32.mrf.mxu0  ;;  %v11821_v52 = vpop.f32.mrf.mxu1 }
 0xca8   : > { %v7787_v11 = vpop.f32.mrf.mxu0  ;;  %v7925_v46 = vpop.f32.mrf.mxu1 }
 0xca9   : > { %v14408_v49 = vmul.f32 %v10308_v4, %v7787_v11  ;;  %v14410_v16 = vmul.f32 %v10311_v5, %v7925_v46 }
 0xcaa   : > { %v11814_v21 = vpop.f32.mrf.mxu0  ;;  %v11832_v27 = vpop.f32.mrf.mxu1 }
 0xcab   : > { %v8105_v12 = vsel %vm2997_vm2, %v14410_v16, -inf  ;;  %v8096_v31 = vsel %vm2997_vm2, %v14408_v49, -inf }
 0xcac   : > { %8106 = vmax.xlane.f32.xlu0 %v8105_v12  ;;  %v7928_v42 = vpop.f32.mrf.mxu1  ;;  %8097 = vmax.xlane.f32.xlu1 %v8096_v31  ;;  %v7790_v44 = vpop.f32.mrf.mxu0 }
 0xcae   : > { %v11815_v15 = vpop.f32.mrf.mxu0  ;;  %v11833_v63 = vpop.f32.mrf.mxu1 }
 0xcb0   : > { %v7879_v54 = vpop.f32.mrf.mxu0  ;;  %v8017_v58 = vpop.f32.mrf.mxu1 }
 0xcb1   : > { %v14422_v13 = vmul.f32 %v10310_v32, %v7879_v54  ;;  %v14424_v39 = vmul.f32 %v10313_v56, %v8017_v58 }
 0xcb2   : > { %v11826_v53 = vpop.f32.mrf.mxu0  ;;  %v11844_v10 = vpop.f32.mrf.mxu1 }
 0xcb3   : > { %v8111_v24 = vsel %vm2997_vm2, %v14424_v39, -inf  ;;  %v8102_v8 = vsel %vm2997_vm2, %v14422_v13, -inf }
 0xcb4   : > { %8112 = vmax.xlane.f32.xlu0 %v8111_v24  ;;  %v8020_v45 = vpop.f32.mrf.mxu1  ;;  %8103 = vmax.xlane.f32.xlu1 %v8102_v8  ;;  %v7882_v62 = vpop.f32.mrf.mxu0 }
 0xcb6   : > { %v11827_v17 = vpop.f32.mrf.mxu0  ;;  %v11845_v33 = vpop.f32.mrf.mxu1 }
 0xcb8   : > { %v7971_v43 = vpop.f32.mrf.mxu0 }
 0xcb9   : > { %v14433_v18 = vmul.f32 %v10312_v38, %v7971_v43 }
 0xcba   : > { %v11838_v28 = vpop.f32.mrf.mxu0 }
 0xcbb   : > { %v8108_v36 = vsel %vm2997_vm2, %v14433_v18, -inf }
 0xcbc   : > { %8109 = vmax.xlane.f32.xlu1 %v8108_v36  ;;  %v7974_v20 = vpop.f32.mrf.mxu0 }
 0xcbe   : > { %v11839_v47 = vpop.f32.mrf.mxu0 }
 0xcc0   : > { %v8063_v50 = vpop.f32.mrf.mxu0 }
 0xcc1   : > { %v14440_v51 = vmul.f32 %v10314_v35, %v8063_v50 }
 0xcc2   : > { %v11850_v26 = vpop.f32.mrf.mxu0 }
 0xcc3   : > { %v8114_v59 = vsel %vm2997_vm2, %v14440_v51, -inf }
 0xcc4   : > { %8115 = vmax.xlane.f32.xlu1 %v8114_v59  ;;  %v8066_v60 = vpop.f32.mrf.mxu0 }
 0xcc6   : > { %v11851_v61 = vpop.f32.mrf.mxu0 }
 0xd15   : > { %v8083_v0 = vpop.xlane.xlu0 %8082 }
 0xd16   : > { %v8117_v2 = vsub.f32 %v14363_v7, %v8083_v0 }
 0xd18   : > { %v8129_v19 = vmul.f32 1.442695, %v8117_v2 }
 0xd1a   : > { %12306 = vpow2.f32 %v8129_v19 }
 0xd1d   : > { %v8089_v52 = vpop.xlane.xlu0 %8088 }
 0xd1e   : > { %v8119_v4 = vsub.f32 %v14370_v22, %v8089_v52 }
 0xd20   : > { %v8133_v5 = vmul.f32 1.442695, %v8119_v4 }
 0xd22   : > { %12308 = vpow2.f32 %v8133_v5 }
 0xd25   : > { %v8095_v11 = vpop.xlane.xlu0 %8094  ;;  %v8086_v46 = vpop.xlane.xlu1 %8085 }
 0xd26   : > { %v8121_v21 = vsub.f32 %v14382_v40, %v8095_v11  ;;  %v8118_v27 = vsub.f32 %v14380_v30, %v8086_v46 }
 0xd27   : > { %v14448_v12 = vpop.eup %12306 }
 0xd28   : > { %v8137_v31 = vmul.f32 1.442695, %v8121_v21  ;;  %v8131_v42 = vmul.f32 1.442695, %v8118_v27  ;;  %v8153_v7 = vsel %vm2997_vm2, %v14448_v12, 0.0 }
 0xd29   : > { %8154 = vadd.xlane.f32.xlu0 %v8153_v7  ;;  %v10341_v27 = vld [vmem:[%s14968_s1 + $0x3e] ss:$0 sm:$0xff] }
 0xd2a   : > { %12310 = vpow2.f32 %v8137_v31 }
 0xd2b   : > { %12312 = vpow2.f32 %v8131_v42  ;;  %v7008_v42 = vadd.f32 %v10341_v27, %v14320_v29 }
 0xd2d   : > { %v8101_v44 = vpop.xlane.xlu0 %8100  ;;  %v8092_v22 = vpop.xlane.xlu1 %8091 }
 0xd2e   : > { %v8123_v15 = vsub.f32 %v14396_v55, %v8101_v44  ;;  %v8120_v63 = vsub.f32 %v14394_v14, %v8092_v22  ;;  %v7507_v44 = vpack.c.bf16 %v7008_v42, %v7008_v42 }
 0xd2f   : > { %v14454_v32 = vpop.eup %12308 }
 0xd30   : > { %v8141_v40 = vmul.f32 1.442695, %v8123_v15  ;;  %v8135_v30 = vmul.f32 1.442695, %v8120_v63  ;;  %v8159_v56 = vsel %vm2997_vm2, %v14454_v32, 0.0 }
 0xd31   : > { %8160 = vadd.xlane.f32.xlu0 %v8159_v56  ;;  %v10343_v15 = vld [vmem:[%s14968_s1 + $0x40] ss:$0 sm:$0xff]  ;;  %v8334_v56 = vsel %vm3721_vm3, %v7507_v44, 0 }
 0xd32   : > { %12314 = vpow2.f32 %v8141_v40  ;;  %v7112_v29 = vadd.f32 %v10343_v15, %v14337_v23  ;;  %v10342_v23 = vld [vmem:[%s14968_s1 + $0x3f] ss:$0 sm:$0xff] }
 0xd33   : > { %12316 = vpow2.f32 %v8135_v30 }
 0xd35   : > { %v8107_v54 = vpop.xlane.xlu0 %8106  ;;  %v8098_v58 = vpop.xlane.xlu1 %8097 }
 0xd36   : > { %v8125_v53 = vsub.f32 %v14410_v16, %v8107_v54  ;;  %v8122_v10 = vsub.f32 %v14408_v49, %v8098_v58  ;;  %v7509_v54 = vpack.c.bf16 %v7112_v29, %v7112_v29 }
 0xd37   : > { %v14460_v24 = vpop.eup %12310 }
 0xd38   : > { %v14462_v55 = vpop.eup %12312  ;;  %v8145_v14 = vmul.f32 1.442695, %v8125_v53  ;;  %v8139_v8 = vmul.f32 1.442695, %v8122_v10  ;;  %v8165_v45 = vsel %vm2997_vm2, %v14460_v24, 0.0 }
 0xd39   : > { %8166 = vadd.xlane.f32.xlu0 %v8165_v45  ;;  %v8156_v62 = vsel %vm2997_vm2, %v14462_v55, 0.0  ;;  %v10345_v53 = vld [vmem:[%s14968_s1 + $0x42] ss:$0 sm:$0xff]  ;;  %v8426_v45 = vsel %vm3721_vm3, %v7509_v54, 0 }
 0xd3a   : > { %12318 = vpow2.f32 %v8145_v14  ;;  %8157 = vadd.xlane.f32.xlu1 %v8156_v62  ;;  %v7216_v62 = vadd.f32 %v10345_v53, %v14346_v34  ;;  %v10347_v34 = vld [vmem:[%s14968_s1 + $0x44] ss:$0 sm:$0xff] }
 0xd3b   : > { %12320 = vpow2.f32 %v8139_v8 }
 0xd3d   : > { %v8113_v17 = vpop.xlane.xlu0 %8112  ;;  %v8104_v16 = vpop.xlane.xlu1 %8103 }
 0xd3e   : > { %v8127_v49 = vsub.f32 %v14424_v39, %v8113_v17  ;;  %v8124_v33 = vsub.f32 %v14422_v13, %v8104_v16 }
 0xd3f   : > { %v14470_v38 = vpop.eup %12314 }
 0xd40   : > { %v14472_v43 = vpop.eup %12316  ;;  %v8149_v28 = vmul.f32 1.442695, %v8127_v49  ;;  %v8143_v36 = vmul.f32 1.442695, %v8124_v33  ;;  %v8171_v20 = vsel %vm2997_vm2, %v14470_v38, 0.0  ;;  %v7511_v49 = vpack.c.bf16 %v7216_v62, %v7216_v62 }
 0xd41   : > { %8172 = vadd.xlane.f32.xlu0 %v8171_v20  ;;  %v8162_v47 = vsel %vm2997_vm2, %v14472_v43, 0.0  ;;  %v10344_v20 = vld [vmem:[%s14968_s1 + $0x41] ss:$0 sm:$0xff] }
 0xd42   : > { %12322 = vpow2.f32 %v8149_v28  ;;  %8163 = vadd.xlane.f32.xlu1 %v8162_v47 }
 0xd43   : > { %12324 = vpow2.f32 %v8143_v36 }
 0xd45   : > { %v8110_v35 = vpop.xlane.xlu1 %8109 }
 0xd46   : > { %v8126_v39 = vsub.f32 %v14433_v18, %v8110_v35 }
 0xd47   : > { %v14479_v13 = vpop.eup %12318 }
 0xd48   : > { %v14481_v50 = vpop.eup %12320  ;;  %v8147_v26 = vmul.f32 1.442695, %v8126_v39  ;;  %v8177_v59 = vsel %vm2997_vm2, %v14479_v13, 0.0 }
 0xd49   : > { %8178 = vadd.xlane.f32.xlu0 %v8177_v59  ;;  %v8168_v60 = vsel %vm2997_vm2, %v14481_v50, 0.0  ;;  %v7164_v59 = vadd.f32 %v10344_v20, %v14348_v48 }
 0xd4a   : > { %12326 = vpow2.f32 %v8147_v26  ;;  %8169 = vadd.xlane.f32.xlu1 %v8168_v60  ;;  %v7320_v26 = vadd.f32 %v10347_v34, %v14350_v25 }
 0xd4b   : > { %v7510_v48 = vpack.c.bf16 %v7164_v59, %v7164_v59 }
 0xd4d   : > { %v8116_v61 = vpop.xlane.xlu1 %8115 }
 0xd4e   : > { %v8128_v0 = vsub.f32 %v14440_v51, %v8116_v61  ;;  %v7513_v61 = vpack.c.bf16 %v7320_v26, %v7320_v26  ;;  %v10295_v26 = vld [vmem:[%s14970_s28 + $0x40] sm:$0xf] }
 0xd4f   : > { %v14488_v2 = vpop.eup %12322 }
 0xd50   : > { %v14490_v18 = vpop.eup %12324  ;;  %v8151_v19 = vmul.f32 1.442695, %v8128_v0  ;;  %v8183_v52 = vsel %vm2997_vm2, %v14488_v2, 0.0  ;;  %v8610_v27 = vsel %vm3721_vm3, %v7513_v61, 0 }
 0xd51   : > { %8184 = vadd.xlane.f32.xlu0 %v8183_v52  ;;  %v8174_v4 = vsel %vm2997_vm2, %v14490_v18, 0.0 }
 0xd52   : > { %12328 = vpow2.f32 %v8151_v19  ;;  %8175 = vadd.xlane.f32.xlu1 %v8174_v4  ;;  %v10349_v19 = vld [vmem:[%s14968_s1 + $0x46] ss:$0 sm:$0xff] }
 0xd57   : > { %v14496_v5 = vpop.eup %12326 }
 0xd58   : > { %v8180_v11 = vsel %vm2997_vm2, %v14496_v5, 0.0 }
 0xd59   : > { %8181 = vadd.xlane.f32.xlu1 %v8180_v11  ;;  %v10346_v11 = vld [vmem:[%s14968_s1 + $0x43] ss:$0 sm:$0xff] }
 0xd5a   : > { %v7268_v42 = vadd.f32 %v10346_v11, %v14352_v57 }
 0xd5c   : > { %v7512_v57 = vpack.c.bf16 %v7268_v42, %v7268_v42 }
 0xd5f   : > { %v14500_v51 = vpop.eup %12328 }
 0xd60   : > { %v8186_v46 = vsel %vm2997_vm2, %v14500_v51, 0.0 }
 0xd61   : > { %8187 = vadd.xlane.f32.xlu1 %v8186_v46 }
 0xdb2   : > { %v8155_v21 = vpop.xlane.xlu0 %8154 }
 0xdb3   : > { %12330 = vrcp.f32 %v8155_v21 }
 0xdba   : > { %v8161_v31 = vpop.xlane.xlu0 %8160 }
 0xdbb   : > { %12332 = vrcp.f32 %v8161_v31  ;;  %v7424_v31 = vadd.f32 %v10349_v19, %v14354_v3  ;;  %v10294_v19 = vld [vmem:[%s14970_s28 + $0x3c] sm:$0xf] }
 0xdbd   : > { %v7515_v44 = vpack.c.bf16 %v7424_v31, %v7424_v31 }
 0xdbf   : > { %v8702_v29 = vsel %vm3721_vm3, %v7515_v44, 0 }
 0xdc0   : > { %v12331_v7 = vpop.eup %12330 }
 0xdc1   : > { %v8201_v22 = vmul.f32 %v12331_v7, %v14448_v12 }
 0xdc2   : > { %v8167_v63 = vpop.xlane.xlu0 %8166 }
 0xdc3   : > { %v8226_v40 = vpack.c.bf16 %v8201_v22, %v8201_v22  ;;  %12334 = vrcp.f32 %v8167_v63  ;;  %v8158_v30 = vpop.xlane.xlu1 %8157  ;;  %10471 = vst.msk [vmem:[%s13423_s26 + $0x60] sm:$0xff] %vm2997_vm2, %v8201_v22 }
 0xdc4   : > { %12336 = vrcp.f32 %v8158_v30 }
 0xdc5   : > { %11855 = vmatmul.mubr.msk.bf16.vlgmr.msra.gmra.mxu1 %vm2997_vm2, %v8226_v40  ;;  %v10348_v40 = vld [vmem:[%s14968_s1 + $0x45] ss:$0 sm:$0xff] }
 0xdc6   : > { %11865 = vmatpush3.bf16.msra.mxu1 %v8334_v56  ;;  %11866 = vmatprep.mubr.msk.bf16.mxu1 %vm12454_vm0, %v12453_v1 }
 0xdc7   : > { %11876 = vmatprep.subr.bf16.mxu1 %v12453_v1 }
 0xdc8   : > { %v12333_v12 = vpop.eup %12332 }
 0xdc9   : > { %v8203_v58 = vmul.f32 %v12333_v12, %v14454_v32  ;;  %v7060_v32 = vadd.f32 %v10342_v23, %v14344_v37  ;;  %v10350_v23 = vld [vmem:[%s14968_s1 + $0x47] ss:$0 sm:$0xff]  ;;  %s12455_s1 = smov [#allocation4]  }
 0xdca   : > { %v8173_v10 = vpop.xlane.xlu0 %8172 }
 0xdcb   : > { %v8228_v14 = vpack.c.bf16 %v8203_v58, %v8203_v58  ;;  %12338 = vrcp.f32 %v8173_v10  ;;  %v8164_v8 = vpop.xlane.xlu1 %8163  ;;  %10473 = vst.msk [vmem:[%s13423_s26 + $0x70] sm:$0xff] %vm2997_vm2, %v8203_v58  ;;  %v7508_v28 = vpack.c.bf16 %v7060_v32, %v7060_v32 }
 0xdcc   : > { %12340 = vrcp.f32 %v8164_v8 }
 0xdcd   : > { %11867 = vmatmul.mubr.msk.bf16.vlgmr.msra.gmra.mxu1 %vm2997_vm2, %v8228_v14 }
 0xdce   : > { %11877 = vmatpush3.bf16.msra.mxu1 %v8426_v45  ;;  %11878 = vmatprep.mubr.msk.bf16.mxu1 %vm12454_vm0, %v12453_v1  ;;  %v7476_v45 = vadd.f32 %v10350_v23, %v14358_v9 }
 0xdcf   : > { %11888 = vmatprep.subr.bf16.mxu1 %v12453_v1 }
 0xdd0   : > { %v12335_v17 = vpop.eup %12334  ;;  %v7516_v32 = vpack.c.bf16 %v7476_v45, %v7476_v45 }
 0xdd1   : > { %v12337_v16 = vpop.eup %12336  ;;  %v8205_v33 = vmul.f32 %v12335_v17, %v14460_v24  ;;  %v8518_v24 = vsel %vm3721_vm3, %v7511_v49, 0 }
 0xdd2   : > { %v8202_v37 = vmul.f32 %v12337_v16, %v14462_v55  ;;  %v8179_v36 = vpop.xlane.xlu0 %8178  ;;  %v8380_v55 = vsel %vm3721_vm3, %v7508_v28, 0  ;;  %v8748_v9 = vsel %vm3721_vm3, %v7516_v32, 0 }
 0xdd3   : > { %v8230_v47 = vpack.c.bf16 %v8205_v33, %v8205_v33  ;;  %12342 = vrcp.f32 %v8179_v36  ;;  %v8170_v35 = vpop.xlane.xlu1 %8169  ;;  %10475 = vst.msk [vmem:[%s13423_s26 + $0x80] sm:$0xff] %vm2997_vm2, %v8205_v33 }
 0xdd4   : > { %v8227_v39 = vpack.c.bf16 %v8202_v37, %v8202_v37  ;;  %12344 = vrcp.f32 %v8170_v35  ;;  %10472 = vst.msk [vmem:[%s13423_s26 + $0x68] sm:$0xff] %vm2997_vm2, %v8202_v37  ;;  %v10293_v37 = vld [vmem:[%s14970_s28 + $0x38] sm:$0xf] }
 0xdd5   : > { %11879 = vmatmul.mubr.msk.bf16.vlgmr.msra.gmra.mxu1 %vm2997_vm2, %v8230_v47  ;;  %v8898_v47 = vsel %vm3721_vm3, %v10293_v37, 0 }
 0xdd6   : > { %11861 = vmatmul.mubr.msk.bf16.vlgmr.msra.gmra.mxu0 %vm2997_vm2, %v8227_v39  ;;  %11889 = vmatpush3.bf16.msra.mxu1 %v8518_v24 }
 0xdd7   : > { %11871 = vmatpush3.bf16.msra.mxu0 %v8380_v55  ;;  %11872 = vmatprep.mubr.msk.bf16.mxu0 %vm12454_vm0, %v12453_v1 }
 0xdd8   : > { %v12339_v60 = vpop.eup %12338  ;;  %11882 = vmatprep.subr.bf16.mxu0 %v12453_v1  ;;  %11890 = vmatprep.mubr.msk.bf16.mxu1 %vm12454_vm0, %v12453_v1 }
 0xdd9   : > { %v12341_v25 = vpop.eup %12340  ;;  %v8207_v0 = vmul.f32 %v12339_v60, %v14470_v38  ;;  %11900 = vmatprep.subr.bf16.mxu1 %v12453_v1  ;;  %v8990_v60 = vsel %vm3721_vm3, %v10295_v26, 0 }
 0xdda   : > { %v8204_v52 = vmul.f32 %v12341_v25, %v14472_v43  ;;  %v8185_v4 = vpop.xlane.xlu0 %8184  ;;  %v8472_v43 = vsel %vm3721_vm3, %v7510_v48, 0  ;;  %v10297_v48 = vld [vmem:[%s14970_s28 + $0x48] sm:$0xf] }
 0xddb   : > { %v8232_v46 = vpack.c.bf16 %v8207_v0, %v8207_v0  ;;  %12346 = vrcp.f32 %v8185_v4  ;;  %v8176_v21 = vpop.xlane.xlu1 %8175  ;;  %10477 = vst.msk [vmem:[%s13423_s26 + $0x90] sm:$0xff] %vm2997_vm2, %v8207_v0 }
 0xddc   : > { %v8229_v38 = vpack.c.bf16 %v8204_v52, %v8204_v52  ;;  %12348 = vrcp.f32 %v8176_v21  ;;  %10474 = vst.msk [vmem:[%s13423_s26 + $0x78] sm:$0xff] %vm2997_vm2, %v8204_v52 }
 0xddd   : > { %11891 = vmatmul.mubr.msk.bf16.vlgmr.msra.gmra.mxu1 %vm2997_vm2, %v8232_v46  ;;  %v9082_v46 = vsel %vm3721_vm3, %v10297_v48, 0 }
 0xdde   : > { %11873 = vmatmul.mubr.msk.bf16.vlgmr.msra.gmra.mxu0 %vm2997_vm2, %v8229_v38  ;;  %11901 = vmatpush3.bf16.msra.mxu1 %v8610_v27  ;;  %v8944_v27 = vsel %vm3721_vm3, %v10294_v19, 0 }
 0xddf   : > { %11883 = vmatpush3.bf16.msra.mxu0 %v8472_v43  ;;  %11884 = vmatprep.mubr.msk.bf16.mxu0 %vm12454_vm0, %v12453_v1 }
 0xde0   : > { %v12343_v7 = vpop.eup %12342  ;;  %11894 = vmatprep.subr.bf16.mxu0 %v12453_v1  ;;  %11902 = vmatprep.mubr.msk.bf16.mxu1 %vm12454_vm0, %v12453_v1 }
 0xde1   : > { %v12345_v3 = vpop.eup %12344  ;;  %v8209_v22 = vmul.f32 %v12343_v7, %v14479_v13  ;;  %11912 = vmatprep.subr.bf16.mxu1 %v12453_v1  ;;  %v8564_v13 = vsel %vm3721_vm3, %v7512_v57, 0 }
 0xde2   : > { %v8206_v15 = vmul.f32 %v12345_v3, %v14481_v50  ;;  %v8182_v63 = vpop.xlane.xlu1 %8181  ;;  %v7372_v50 = vadd.f32 %v10348_v40, %v14356_v6  ;;  %v10299_v3 = vld [vmem:[%s14970_s28 + $0x50] sm:$0xf] }
 0xde3   : > { %v8234_v30 = vpack.c.bf16 %v8209_v22, %v8209_v22  ;;  %12350 = vrcp.f32 %v8182_v63  ;;  %10479 = vst.msk [vmem:[%s13423_s26 + $0xa0] sm:$0xff] %vm2997_vm2, %v8209_v22  ;;  %v10296_v22 = vld [vmem:[%s14970_s28 + $0x44] sm:$0xf]  ;;  %v9174_v40 = vsel %vm3721_vm3, %v10299_v3, 0 }
 0xde4   : > { %v8231_v56 = vpack.c.bf16 %v8206_v15, %v8206_v15  ;;  %10476 = vst.msk [vmem:[%s13423_s26 + $0x88] sm:$0xff] %vm2997_vm2, %v8206_v15  ;;  %v7514_v6 = vpack.c.bf16 %v7372_v50, %v7372_v50 }
 0xde5   : > { %11903 = vmatmul.mubr.msk.bf16.vlgmr.msra.gmra.mxu1 %vm2997_vm2, %v8234_v30 }
 0xde6   : > { %11885 = vmatmul.mubr.msk.bf16.vlgmr.msra.gmra.mxu0 %vm2997_vm2, %v8231_v56  ;;  %11913 = vmatpush3.bf16.msra.mxu1 %v8702_v29  ;;  %v9036_v29 = vsel %vm3721_vm3, %v10296_v22, 0 }
 0xde7   : > { %11895 = vmatpush3.bf16.msra.mxu0 %v8564_v13  ;;  %11896 = vmatprep.mubr.msk.bf16.mxu0 %vm12454_vm0, %v12453_v1 }
 0xde8   : > { %v12347_v12 = vpop.eup %12346  ;;  %11906 = vmatprep.subr.bf16.mxu0 %v12453_v1  ;;  %11914 = vmatprep.mubr.msk.bf16.mxu1 %vm12454_vm0, %v12453_v1 }
 0xde9   : > { %v12349_v54 = vpop.eup %12348  ;;  %v8211_v58 = vmul.f32 %v12347_v12, %v14488_v2  ;;  %11924 = vmatprep.subr.bf16.mxu1 %v12453_v1  ;;  %v8656_v2 = vsel %vm3721_vm3, %v7514_v6, 0 }
 0xdea   : > { %v8208_v53 = vmul.f32 %v12349_v54, %v14490_v18  ;;  %v8188_v10 = vpop.xlane.xlu1 %8187 }
 0xdeb   : > { %v8236_v14 = vpack.c.bf16 %v8211_v58, %v8211_v58  ;;  %12352 = vrcp.f32 %v8188_v10  ;;  %10481 = vst.msk [vmem:[%s13423_s26 + $0xb0] sm:$0xff] %vm2997_vm2, %v8211_v58  ;;  %v10301_v58 = vld [vmem:[%s14970_s28 + $0x58] sm:$0xf] }
 0xdec   : > { %v8233_v8 = vpack.c.bf16 %v8208_v53, %v8208_v53  ;;  %10478 = vst.msk [vmem:[%s13423_s26 + $0x98] sm:$0xff] %vm2997_vm2, %v8208_v53  ;;  %v10298_v53 = vld [vmem:[%s14970_s28 + $0x4c] sm:$0xf] }
 0xded   : > { %11915 = vmatmul.mubr.msk.bf16.vlgmr.msra.gmra.mxu1 %vm2997_vm2, %v8236_v14 }
 0xdee   : > { %11897 = vmatmul.mubr.msk.bf16.vlgmr.msra.gmra.mxu0 %vm2997_vm2, %v8233_v8  ;;  %11926 = vmatprep.mubr.msk.bf16.mxu1 %vm12454_vm0, %v12453_v1  ;;  %v9266_v8 = vsel %vm3721_vm3, %v10301_v58, 0 }
 0xdef   : > { %11907 = vmatpush3.bf16.msra.mxu0 %v8656_v2  ;;  %11908 = vmatprep.mubr.msk.bf16.mxu0 %vm12454_vm0, %v12453_v1 }
 0xdf0   : > { %v12351_v18 = vpop.eup %12350  ;;  %11918 = vmatprep.subr.bf16.mxu0 %v12453_v1 }
 0xdf1   : > { %v8210_v62 = vmul.f32 %v12351_v18, %v14496_v5  ;;  %v10291_v5 = vld [vmem:[%s14970_s28 + $0x30] sm:$0xf]  ;;  %v9128_v18 = vsel %vm3721_vm3, %v10298_v53, 0 }
 0xdf2   : > { %v8806_v28 = vsel %vm3721_vm3, %v10291_v5, 0 }
 0xdf3   : > { %v8235_v17 = vpack.c.bf16 %v8210_v62, %v8210_v62  ;;  %10480 = vst.msk [vmem:[%s13423_s26 + $0xa8] sm:$0xff] %vm2997_vm2, %v8210_v62  ;;  %11925 = vmatpush3.bf16.msra.mxu1 %v8806_v28 }
 0xdf4   : > { %11936 = vmatprep.subr.bf16.mxu1 %v12453_v1 }
 0xdf6   : > { %11909 = vmatmul.mubr.msk.bf16.vlgmr.msra.gmra.mxu0 %vm2997_vm2, %v8235_v17 }
 0xdf7   : > { %11919 = vmatpush3.bf16.msra.mxu0 %v8748_v9  ;;  %11920 = vmatprep.mubr.msk.bf16.mxu0 %vm12454_vm0, %v12453_v1 }
 0xdf8   : > { %v12353_v16 = vpop.eup %12352  ;;  %11930 = vmatprep.subr.bf16.mxu0 %v12453_v1 }
 0xdf9   : > { %v8212_v49 = vmul.f32 %v12353_v16, %v14500_v51  ;;  %v10292_v51 = vld [vmem:[%s14970_s28 + $0x34] sm:$0xf] }
 0xdfa   : > { %v8852_v34 = vsel %vm3721_vm3, %v10292_v51, 0 }
 0xdfb   : > { %v8237_v33 = vpack.c.bf16 %v8212_v49, %v8212_v49  ;;  %10482 = vst.msk [vmem:[%s13423_s26 + $0xb8] sm:$0xff] %vm2997_vm2, %v8212_v49  ;;  %v10300_v49 = vld [vmem:[%s14970_s28 + $0x54] sm:$0xf] }
 0xdfc   : > { %v9220_v37 = vsel %vm3721_vm3, %v10300_v49, 0 }
 0xdfe   : > { %11921 = vmatmul.mubr.msk.bf16.vlgmr.msra.gmra.mxu0 %vm2997_vm2, %v8237_v33 }
 0xdff   : > { %11932 = vmatprep.mubr.msk.bf16.mxu0 %vm12454_vm0, %v12453_v1  ;;  %11931 = vmatpush3.bf16.msra.mxu0 %v8852_v34 }
 0xe00   : > { %11942 = vmatprep.subr.bf16.mxu0 %v12453_v1 }
 0xe85   : > { %v8278_v36 = vpop.f32.mrf.mxu1 }
 0xe86   : > { %v8790_v20 = vpack.c.bf16 %v8278_v36, %v8278_v36 }
 0xe87   : > { %v11856_v35 = vpop.f32.mrf.mxu1 }
 0xe88   : > { %11927 = vmatmul.mubr.msk.bf16.vlgmr.msra.gmra.mxu1 %vm2997_vm2, %v8790_v20 }
 0xe89   : > { %v8281_v39 = vpop.f32.mrf.mxu1  ;;  %11937 = vmatpush3.bf16.msra.mxu1 %v8898_v47  ;;  %11938 = vmatprep.mubr.msk.bf16.mxu1 %vm12454_vm0, %v12453_v1 }
 0xe8a   : > { %11948 = vmatprep.subr.bf16.mxu1 %v12453_v1 }
 0xe8b   : > { %v11857_v24 = vpop.f32.mrf.mxu1 }
 0xe8c   : > { %v10302_v24 = vld [vmem:[%s14970_s28 + $0x5c] sm:$0xf] }
 0xe8d   : > { %v8370_v55 = vpop.f32.mrf.mxu1 }
 0xe8e   : > { %v8792_v59 = vpack.c.bf16 %v8370_v55, %v8370_v55 }
 0xe8f   : > { %v11868_v25 = vpop.f32.mrf.mxu1 }
 0xe90   : > { %11939 = vmatmul.mubr.msk.bf16.vlgmr.msra.gmra.mxu1 %vm2997_vm2, %v8792_v59  ;;  %v9312_v59 = vsel %vm3721_vm3, %v10302_v24, 0 }
 0xe91   : > { %v8373_v61 = vpop.f32.mrf.mxu1  ;;  %11949 = vmatpush3.bf16.msra.mxu1 %v8990_v60  ;;  %11950 = vmatprep.mubr.msk.bf16.mxu1 %vm12454_vm0, %v12453_v1 }
 0xe92   : > { %11960 = vmatprep.subr.bf16.mxu1 %v12453_v1 }
 0xe93   : > { %v11869_v0 = vpop.f32.mrf.mxu1 }
 0xe95   : > { %v8462_v52 = vpop.f32.mrf.mxu1 }
 0xe96   : > { %v8324_v4 = vpop.f32.mrf.mxu0  ;;  %v8794_v11 = vpack.c.bf16 %v8462_v52, %v8462_v52 }
 0xe97   : > { %v8791_v21 = vpack.c.bf16 %v8324_v4, %v8324_v4  ;;  %v11880_v38 = vpop.f32.mrf.mxu1 }
 0xe98   : > { %v11862_v31 = vpop.f32.mrf.mxu0  ;;  %11951 = vmatmul.mubr.msk.bf16.vlgmr.msra.gmra.mxu1 %vm2997_vm2, %v8794_v11 }
 0xe99   : > { %11933 = vmatmul.mubr.msk.bf16.vlgmr.msra.gmra.mxu0 %vm2997_vm2, %v8791_v21  ;;  %v8465_v43 = vpop.f32.mrf.mxu1  ;;  %11961 = vmatpush3.bf16.msra.mxu1 %v9082_v46 }
 0xe9a   : > { %v8327_v42 = vpop.f32.mrf.mxu0  ;;  %11943 = vmatpush3.bf16.msra.mxu0 %v8944_v27  ;;  %11944 = vmatprep.mubr.msk.bf16.mxu0 %vm12454_vm0, %v12453_v1 }
 0xe9b   : > { %v11881_v7 = vpop.f32.mrf.mxu1  ;;  %11962 = vmatprep.mubr.msk.bf16.mxu1 %vm12454_vm0, %v12453_v1  ;;  %11954 = vmatprep.subr.bf16.mxu0 %v12453_v1 }
 0xe9c   : > { %v11863_v44 = vpop.f32.mrf.mxu0  ;;  %11972 = vmatprep.subr.bf16.mxu1 %v12453_v1 }
 0xe9d   : > { %v8554_v57 = vpop.f32.mrf.mxu1 }
 0xe9e   : > { %v8416_v15 = vpop.f32.mrf.mxu0  ;;  %v8796_v63 = vpack.c.bf16 %v8554_v57, %v8554_v57 }
 0xe9f   : > { %v8793_v30 = vpack.c.bf16 %v8416_v15, %v8416_v15  ;;  %v11892_v56 = vpop.f32.mrf.mxu1 }
 0xea0   : > { %v11874_v13 = vpop.f32.mrf.mxu0  ;;  %11963 = vmatmul.mubr.msk.bf16.vlgmr.msra.gmra.mxu1 %vm2997_vm2, %v8796_v63 }
 0xea1   : > { %11945 = vmatmul.mubr.msk.bf16.vlgmr.msra.gmra.mxu0 %vm2997_vm2, %v8793_v30  ;;  %v8557_v50 = vpop.f32.mrf.mxu1  ;;  %11973 = vmatpush3.bf16.msra.mxu1 %v9174_v40 }
 0xea2   : > { %v8419_v12 = vpop.f32.mrf.mxu0  ;;  %11955 = vmatpush3.bf16.msra.mxu0 %v9036_v29  ;;  %11956 = vmatprep.mubr.msk.bf16.mxu0 %vm12454_vm0, %v12453_v1 }
 0xea3   : > { %v11893_v54 = vpop.f32.mrf.mxu1  ;;  %11974 = vmatprep.mubr.msk.bf16.mxu1 %vm12454_vm0, %v12453_v1  ;;  %11966 = vmatprep.subr.bf16.mxu0 %v12453_v1 }
 0xea4   : > { %v11875_v6 = vpop.f32.mrf.mxu0  ;;  %11984 = vmatprep.subr.bf16.mxu1 %v12453_v1 }
 0xea5   : > { %v8646_v10 = vpop.f32.mrf.mxu1 }
 0xea6   : > { %v8508_v23 = vpop.f32.mrf.mxu0  ;;  %v8798_v14 = vpack.c.bf16 %v8646_v10, %v8646_v10 }
 0xea7   : > { %v8795_v2 = vpack.c.bf16 %v8508_v23, %v8508_v23  ;;  %v11904_v45 = vpop.f32.mrf.mxu1 }
 0xea8   : > { %v11886_v62 = vpop.f32.mrf.mxu0  ;;  %11975 = vmatmul.mubr.msk.bf16.vlgmr.msra.gmra.mxu1 %vm2997_vm2, %v8798_v14 }
 0xea9   : > { %11957 = vmatmul.mubr.msk.bf16.vlgmr.msra.gmra.mxu0 %vm2997_vm2, %v8795_v2  ;;  %v8649_v32 = vpop.f32.mrf.mxu1  ;;  %11985 = vmatpush3.bf16.msra.mxu1 %v9266_v8 }
 0xeaa   : > { %v8511_v17 = vpop.f32.mrf.mxu0  ;;  %11967 = vmatpush3.bf16.msra.mxu0 %v9128_v18  ;;  %11968 = vmatprep.mubr.msk.bf16.mxu0 %vm12454_vm0, %v12453_v1 }
 0xeab   : > { %v11905_v9 = vpop.f32.mrf.mxu1  ;;  %11986 = vmatprep.mubr.msk.bf16.mxu1 %vm12454_vm0, %v12453_v1  ;;  %11978 = vmatprep.subr.bf16.mxu0 %v12453_v1 }
 0xeac   : > { %v11887_v16 = vpop.f32.mrf.mxu0  ;;  %11996 = vmatprep.subr.bf16.mxu1 %v12453_v1 }
 0xead   : > { %v8738_v33 = vpop.f32.mrf.mxu1 }
 0xeae   : > { %v8600_v5 = vpop.f32.mrf.mxu0  ;;  %v8800_v28 = vpack.c.bf16 %v8738_v33, %v8738_v33 }
 0xeaf   : > { %v8797_v51 = vpack.c.bf16 %v8600_v5, %v8600_v5  ;;  %v11916_v34 = vpop.f32.mrf.mxu1 }
 0xeb0   : > { %v11898_v36 = vpop.f32.mrf.mxu0  ;;  %11987 = vmatmul.mubr.msk.bf16.vlgmr.msra.gmra.mxu1 %vm2997_vm2, %v8800_v28 }
 0xeb1   : > { %11969 = vmatmul.mubr.msk.bf16.vlgmr.msra.gmra.mxu0 %vm2997_vm2, %v8797_v51  ;;  %v8741_v20 = vpop.f32.mrf.mxu1  ;;  %12004 = vmatprep.mubr.msk.bf16.mxu1 %vm12454_vm0, %v12453_v1 }
 0xeb2   : > { %v8603_v47 = vpop.f32.mrf.mxu0  ;;  %11979 = vmatpush3.bf16.msra.mxu0 %v9220_v37  ;;  %11980 = vmatprep.mubr.msk.bf16.mxu0 %vm12454_vm0, %v12453_v1 }
 0xeb3   : > { %v11917_v35 = vpop.f32.mrf.mxu1  ;;  %11990 = vmatprep.subr.bf16.mxu0 %v12453_v1 }
 0xeb4   : > { %v11899_v39 = vpop.f32.mrf.mxu0 }
 0xeb6   : > { %v8692_v26 = vpop.f32.mrf.mxu0 }
 0xeb7   : > { %v8799_v55 = vpack.c.bf16 %v8692_v26, %v8692_v26 }
 0xeb8   : > { %v11910_v60 = vpop.f32.mrf.mxu0 }
 0xeb9   : > { %11981 = vmatmul.mubr.msk.bf16.vlgmr.msra.gmra.mxu0 %vm2997_vm2, %v8799_v55 }
 0xeba   : > { %v8695_v25 = vpop.f32.mrf.mxu0  ;;  %11991 = vmatpush3.bf16.msra.mxu0 %v9312_v59  ;;  %11992 = vmatprep.mubr.msk.bf16.mxu0 %vm12454_vm0, %v12453_v1 }
 0xebb   : > { %12008 = vmatprep.subr.bf16.mxu0 %v12453_v1  ;;  %v10508_v25 = vld [vmem:[%s14971_s29 + $0x1] ss:$0 sm:$0xff] }
 0xebc   : > { %v11911_v61 = vpop.f32.mrf.mxu0 }
 0xebe   : > { %v8784_v0 = vpop.f32.mrf.mxu0 }
 0xebf   : > { %v8801_v48 = vpack.c.bf16 %v8784_v0, %v8784_v0 }
 0xec0   : > { %v11922_v19 = vpop.f32.mrf.mxu0 }
 0xec1   : > { %11993 = vmatmul.mubr.msk.bf16.vlgmr.msra.gmra.mxu0 %vm2997_vm2, %v8801_v48 }
 0xec2   : > { %v8787_v52 = vpop.f32.mrf.mxu0  ;;  %12012 = vmatprep.mubr.msk.bf16.mxu0 %vm12454_vm0, %v12453_v1 }
 0xec4   : > { %v11923_v4 = vpop.f32.mrf.mxu0 }
 0xf48   : > { %v8842_v11 = vpop.f32.mrf.mxu1 }
 0xf4a   : > { %v11928_v46 = vpop.f32.mrf.mxu1 }
 0xf4c   : > { %v8845_v21 = vpop.f32.mrf.mxu1 }
 0xf4e   : > { %v11929_v38 = vpop.f32.mrf.mxu1 }
 0xf50   : > { %v8934_v27 = vpop.f32.mrf.mxu1 }
 0xf52   : > { %v11940_v31 = vpop.f32.mrf.mxu1 }
 0xf53   : > { %v12240_v31 = vld [vmem:[%s14972_s8 + $0x38] sm:$0xff]  }
 0xf54   : > { %v8937_v43 = vpop.f32.mrf.mxu1  ;;  %11997 = vmatpush3.bf16.msra.mxu1 %v12240_v31 }
 0xf55   : > { %11998 = vmatprep.subr.bf16.mxu1 %v12453_v1  ;;  %v12241_v43 = vld [vmem:[%s14972_s8 + $0x30] sm:$0xff]  }
 0xf56   : > { %v11941_v42 = vpop.f32.mrf.mxu1 }
 0xf57   : > { %v12242_v42 = vld [vmem:[%s14972_s8 + $0x28] sm:$0xff]  }
 0xf58   : > { %v9026_v7 = vpop.f32.mrf.mxu1  ;;  %11999 = vmatpush3.bf16.msra.mxu1 %v12241_v43 }
 0xf59   : > { %v8888_v3 = vpop.f32.mrf.mxu0  ;;  %12000 = vmatprep.subr.bf16.mxu1 %v12453_v1 }
 0xf5a   : > { %v11952_v44 = vpop.f32.mrf.mxu1  ;;  %v9354_v50 = vadd.f32 %v8888_v3, %v8842_v11 }
 0xf5b   : > { %v11934_v22 = vpop.f32.mrf.mxu0 }
 0xf5c   : > { %v9029_v57 = vpop.f32.mrf.mxu1  ;;  %v9355_v53 = vadd.f32 %v9354_v50, %v8934_v27  ;;  %12001 = vmatpush3.bf16.msra.mxu1 %v12242_v42  ;;  %v10522_v50 = vld [vmem:[%s14975_s9 + $0x1] ss:$0 sm:$0xff]  ;;  %v12250_v42 = vld [vmem:[%s14924_s18 + $0x8] sm:$0xff]  }
 0xf5d   : > { %v8891_v15 = vpop.f32.mrf.mxu0  ;;  %12002 = vmatprep.subr.bf16.mxu1 %v12453_v1 }
 0xf5e   : > { %v11953_v63 = vpop.f32.mrf.mxu1  ;;  %v10511_v15 = vld [vmem:[%s14973_s6 + $0x1] ss:$0 sm:$0xff]  ;;  %s12365_s6 = sshll.u32 %s12455_s1, 4  ;;  %s12366_s6 = int_to_ptr.vmem [resolvable:$false] %s12365_s6 }
 0xf5f   : > { %v11935_v40 = vpop.f32.mrf.mxu0  ;;  %s12367_s26 = scalar_lea.vmem %s12366_s6, 6144  ;;  %p12368_p0 = scmp.lt.s32.totalorder %s14831_s23, %s12366_s6 }
 0xf60   : > { %v9118_v30 = vpop.f32.mrf.mxu1  ;;  %v10512_v40 = vld [vmem:[%s14974_s7 + $0x1] ss:$0 sm:$0xff]  ;;  %p12369_p1 = scmp.lt.s32.totalorder %s12367_s26, %s12361_s19 }
 0xf61   : > { %v8980_v56 = vpop.f32.mrf.mxu0 }
 0xf62   : > { %v11964_v29 = vpop.f32.mrf.mxu1  ;;  %v9356_v14 = vadd.f32 %v9355_v53, %v8980_v56  ;;  %p12370_p2 = por %p12369_p1, %p12368_p0 }
 0xf63   : > { %v11946_v13 = vpop.f32.mrf.mxu0 }
 0xf64   : > { %v9121_v12 = vpop.f32.mrf.mxu1  ;;  %v9357_v62 = vadd.f32 %v9356_v14, %v9026_v7  ;;  %v12243_v7 = vld [vmem:[%s14972_s8 + $0x20] sm:$0xff]   ;;  %p12371_p3 = pnand %p12370_p2, %p12364_p13 }
 0xf65   : > { %v8983_v54 = vpop.f32.mrf.mxu0  ;;  %12003 = vmatpush3.bf16.msra.mxu1 %v12243_v7  ;;  %v12251_v7 = vld [vmem:[%s14924_s18] sm:$0xff]  }
 0xf66   : > { %v11965_v58 = vpop.f32.mrf.mxu1  ;;  %12028 = vmatprep.subr.bf16.mxu1 %v12453_v1 }
 0xf67   : > { %v11947_v6 = vpop.f32.mrf.mxu0 }
 0xf68   : > { %v9210_v10 = vpop.f32.mrf.mxu1 }
 0xf69   : > { %v9072_v23 = vpop.f32.mrf.mxu0 }
 0xf6a   : > { %v11976_v8 = vpop.f32.mrf.mxu1  ;;  %v9358_v9 = vadd.f32 %v9357_v62, %v9072_v23  ;;  %v12244_v62 = vld [vmem:[%s14918_s12 + $0x18] sm:$0xff]  }
 0xf6b   : > { %v11958_v2 = vpop.f32.mrf.mxu0  ;;  %12009 = vmatpush3.bf16.msra.mxu0 %v12244_v62 }
 0xf6c   : > { %v9213_v45 = vpop.f32.mrf.mxu1  ;;  %v9359_v28 = vadd.f32 %v9358_v9, %v9118_v30  ;;  %12010 = vmatprep.subr.bf16.mxu0 %v12453_v1 }
 0xf6d   : > { %v9075_v18 = vpop.f32.mrf.mxu0 }
 0xf6e   : > { %v11977_v32 = vpop.f32.mrf.mxu1 }
 0xf6f   : > { %v11959_v17 = vpop.f32.mrf.mxu0 }
 0xf70   : > { %v9302_v16 = vpop.f32.mrf.mxu1 }
 0xf71   : > { %v9164_v49 = vpop.f32.mrf.mxu0 }
 0xf72   : > { %v11988_v33 = vpop.f32.mrf.mxu1  ;;  %v9360_v37 = vadd.f32 %v9359_v28, %v9164_v49  ;;  %v10530_v49 = vld [vmem:[%s14976_s10 + $0x1] ss:$0 sm:$0xff] }
 0xf73   : > { %v11970_v5 = vpop.f32.mrf.mxu0 }
 0xf74   : > { %v9305_v51 = vpop.f32.mrf.mxu1  ;;  %v9361_v35 = vadd.f32 %v9360_v37, %v9210_v10  ;;  %v10531_v5 = vld [vmem:[%s14917_s11 + $0x1] ss:$0 sm:$0xff] }
 0xf75   : > { %v9167_v34 = vpop.f32.mrf.mxu0 }
 0xf76   : > { %v11989_v36 = vpop.f32.mrf.mxu1  ;;  %v12246_v34 = vld [vmem:[%s14920_s14 + $0x38] sm:$0xff]  }
 0xf77   : > { %v11971_v20 = vpop.f32.mrf.mxu0  ;;  %v12247_v36 = vld [vmem:[%s14920_s14 + $0x30] sm:$0xff]  }
 0xf78   : > { %v12248_v20 = vld [vmem:[%s14920_s14 + $0x28] sm:$0xff]  }
 0xf79   : > { %v9256_v47 = vpop.f32.mrf.mxu0 }
 0xf7a   : > { %v9362_v24 = vadd.f32 %v9361_v35, %v9256_v47  ;;  %v12249_v47 = vld [vmem:[%s14920_s14 + $0x20] sm:$0xff]  }
 0xf7b   : > { %v11982_v39 = vpop.f32.mrf.mxu0  ;;  %v10537_v35 = vld [vmem:[%s14919_s13 + $0x1] ss:$0 sm:$0xff] }
 0xf7c   : > { %v9363_v59 = vadd.f32 %v9362_v24, %v9302_v16 }
 0xf7d   : > { %v9259_v26 = vpop.f32.mrf.mxu0 }
 0xf7f   : > { %v11983_v55 = vpop.f32.mrf.mxu0 }
 0xf81   : > { %v9348_v60 = vpop.f32.mrf.mxu0 }
 0xf82   : > { %v9364_v61 = vadd.f32 %v9363_v59, %v9348_v60 }
 0xf83   : > { %v11994_v0 = vpop.f32.mrf.mxu0 }
 0xf84   : > { %v9373_v48 = vadd.f32 %v10508_v25, %v9364_v61  ;;  %v10550_v61 = vld [vmem:[%s14921_s15 + $0x1] ss:$0 sm:$0xff] }
 0xf85   : > { %v9351_v19 = vpop.f32.mrf.mxu0 }
 0xf86   : > { %v9378_v52 = vsel %vm4856_vm4, %v9373_v48, 0.0 }
 0xf87   : > { %9379 = vadd.xlane.f32.xlu0 %v9378_v52  ;;  %v11995_v4 = vpop.f32.mrf.mxu0 }
0x1010   : > { %v9380_v11 = vpop.xlane.xlu0 %9379 }
0x1011   : > { %v9381_v46 = vmul.f32 0.015625, %v9380_v11 }
0x1013   : > { %v9382_v21 = vsub.f32 %v9373_v48, %v9381_v46 }
0x1015   : > { %v9383_v38 = vmul.f32 %v9382_v21, %v9382_v21 }
0x1017   : > { %v9384_v27 = vsel %vm4856_vm4, %v9383_v38, 0.0 }
0x1018   : > { %9385 = vadd.xlane.f32.xlu1 %v9384_v27 }
0x10a1   : > { %v9386_v3 = vpop.xlane.xlu1 %9385 }
0x10a2   : > { %v9387_v44 = vmul.f32 0.015625, %v9386_v3 }
0x10a4   : > { %v9388_v22 = vadd.f32 1e-05, %v9387_v44 }
0x10a6   : > { %12354 = vrsqrt.f32 %v9388_v22 }
0x10b3   : > { %v12355_v57 = vpop.eup %12354 }
0x10b4   : > { %v9390_v63 = vmul.f32 %v12355_v57, %v9382_v21 }
0x10b6   : > { %v9397_v30 = vmul.f32 %v10511_v15, %v9390_v63  ;;  %v10558_v15 = vld [vmem:[%s14922_s16 + $0x1] ss:$0 sm:$0xff] }
0x10b8   : > { %v9404_v56 = vadd.f32 %v10512_v40, %v9397_v30  ;;  %v10559_v40 = vld [vmem:[%s14923_s17 + $0x1] ss:$0 sm:$0xff] }
0x10ba   : > { %v9405_v29 = vmax.f32 %v9404_v56, 0.0 }
0x10bc   : > { %v9406_v13 = vpack.c.bf16 %v9405_v29, %v9405_v29 }
0x10be   : > { %12005 = vmatmul.mubr.msk.bf16.vlgmr.msra.gmra.mxu1 %vm4856_vm4, %v9406_v13 }
0x10bf   : > { %12032 = vmatprep.mubr.msk.bf16.mxu1 %vm12454_vm0, %v12453_v1  ;;  %12029 = vmatpush3.bf16.msra.mxu1 %v12250_v42 }
0x10c0   : > { %12030 = vmatprep.subr.bf16.mxu1 %v12453_v1 }
0x10c3   : > { %12031 = vmatpush3.bf16.msra.mxu1 %v12251_v7 }
0x117e   : > { %v9485_v12 = vpop.f32.mrf.mxu1 }
0x117f   : > { %v9486_v54 = vadd.f32 %v10522_v50, %v9485_v12 }
0x1180   : > { %v12006_v58 = vpop.f32.mrf.mxu1 }
0x1181   : > { %v9491_v6 = vadd.f32 %v9486_v54, %v13743_v41  ;;  %v12245_v41 = vld [vmem:[%s14918_s12 + $0x10] sm:$0xff]  }
0x1182   : > { %v9488_v53 = vpop.f32.mrf.mxu1  ;;  %12011 = vmatpush3.bf16.msra.mxu0 %v12245_v41 }
0x1183   : > { %v9496_v10 = vsel %vm1097_vm1, %v9491_v6, 0.0  ;;  %12016 = vmatprep.subr.bf16.mxu0 %v12453_v1 }
0x1184   : > { %9497 = vadd.xlane.f32.xlu0 %v9496_v10  ;;  %v12007_v23 = vpop.f32.mrf.mxu1 }
0x120d   : > { %v9498_v14 = vpop.xlane.xlu0 %9497 }
0x120e   : > { %v9499_v8 = vmul.f32 0.03125, %v9498_v14 }
0x1210   : > { %v9500_v2 = vsub.f32 %v9491_v6, %v9499_v8 }
0x1212   : > { %v9501_v45 = vmul.f32 %v9500_v2, %v9500_v2 }
0x1214   : > { %v9502_v18 = vsel %vm1097_vm1, %v9501_v45, 0.0 }
0x1215   : > { %9503 = vadd.xlane.f32.xlu1 %v9502_v18 }
0x129e   : > { %v9504_v32 = vpop.xlane.xlu1 %9503 }
0x129f   : > { %v9505_v17 = vmul.f32 0.03125, %v9504_v32 }
0x12a1   : > { %v9506_v9 = vadd.f32 1e-05, %v9505_v17 }
0x12a3   : > { %12356 = vrsqrt.f32 %v9506_v9 }
0x12b0   : > { %v12357_v16 = vpop.eup %12356 }
0x12b1   : > { %v9508_v33 = vmul.f32 %v12357_v16, %v9500_v2 }
0x12b3   : > { %v9515_v28 = vmul.f32 %v10530_v49, %v9508_v33 }
0x12b5   : > { %v9522_v51 = vadd.f32 %v10531_v5, %v9515_v28 }
0x12b7   : > { %v9523_v37 = vpack.c.bf16 %v9522_v51, %v9522_v51 }
0x12b9   : > { %12013 = vmatmul.mubr.msk.bf16.vlgmr.msra.gmra.mxu0 %vm1097_vm1, %v9523_v37 }
0x12ba   : > { %12017 = vmatpush3.bf16.msra.mxu0 %v12246_v34  ;;  %12024 = vmatprep.mubr.msk.bf16.mxu0 %vm12454_vm0, %v12453_v1 }
0x12bb   : > { %12018 = vmatprep.subr.bf16.mxu0 %v12453_v1 }
0x12be   : > { %12019 = vmatpush3.bf16.msra.mxu0 %v12247_v36 }
0x12bf   : > { %12020 = vmatprep.subr.bf16.mxu0 %v12453_v1 }
0x12c2   : > { %12021 = vmatpush3.bf16.msra.mxu0 %v12248_v20 }
0x12c3   : > { %12022 = vmatprep.subr.bf16.mxu0 %v12453_v1 }
0x12c6   : > { %12023 = vmatpush3.bf16.msra.mxu0 %v12249_v47 }
0x1379   : > { %v9586_v39 = vpop.f32.mrf.mxu0 }
0x137a   : > { %v9587_v24 = vadd.f32 %v10537_v35, %v9586_v39 }
0x137b   : > { %v12014_v26 = vpop.f32.mrf.mxu0 }
0x137c   : > { %v9592_v55 = vmax.f32 %v9587_v24, 0.0 }
0x137d   : > { %v9589_v59 = vpop.f32.mrf.mxu0 }
0x137e   : > { %v9593_v60 = vpack.c.bf16 %v9592_v55, %v9592_v55 }
0x137f   : > { %v12015_v25 = vpop.f32.mrf.mxu0 }
0x1380   : > { %12025 = vmatmul.mubr.msk.bf16.vlgmr.msra.gmra.mxu0 %vm4856_vm4, %v9593_v60 }
0x1440   : > { %v9672_v0 = vpop.f32.mrf.mxu0 }
0x1441   : > { %v9673_v48 = vadd.f32 %v10550_v61, %v9672_v0 }
0x1442   : > { %v12026_v19 = vpop.f32.mrf.mxu0 }
0x1443   : > { %v9678_v52 = vadd.f32 %v9673_v48, %v9522_v51 }
0x1444   : > { %v9675_v4 = vpop.f32.mrf.mxu0 }
0x1445   : > { %v9683_v11 = vsel %vm1097_vm1, %v9678_v52, 0.0 }
0x1446   : > { %9684 = vadd.xlane.f32.xlu0 %v9683_v11  ;;  %v12027_v46 = vpop.f32.mrf.mxu0 }
0x14cf   : > { %v9685_v21 = vpop.xlane.xlu0 %9684 }
0x14d0   : > { %v9686_v38 = vmul.f32 0.03125, %v9685_v21 }
0x14d2   : > { %v9687_v27 = vsub.f32 %v9678_v52, %v9686_v38 }
0x14d4   : > { %v9688_v31 = vmul.f32 %v9687_v27, %v9687_v27 }
0x14d6   : > { %v9689_v43 = vsel %vm1097_vm1, %v9688_v31, 0.0 }
0x14d7   : > { %9690 = vadd.xlane.f32.xlu1 %v9689_v43 }
0x1560   : > { %v9691_v3 = vpop.xlane.xlu1 %9690 }
0x1561   : > { %v9692_v44 = vmul.f32 0.03125, %v9691_v3 }
0x1563   : > { %v9693_v22 = vadd.f32 1e-05, %v9692_v44 }
0x1565   : > { %12358 = vrsqrt.f32 %v9693_v22 }
0x1572   : > { %v12359_v57 = vpop.eup %12358 }
0x1573   : > { %v9695_v63 = vmul.f32 %v12359_v57, %v9687_v27 }
0x1575   : > { %v9702_v30 = vmul.f32 %v10558_v15, %v9695_v63 }
0x1577   : > { %v9709_v1 = vadd.f32 %v10559_v40, %v9702_v30 }
0x1579   : > { %v9710_v56 = vsel %vm1097_vm1, %v9709_v1, 0.0 }
0x157a   : > { %v9711_v29 = vrot.slane %v9710_v56, 4 }
0x157c   : > { %v9712_v13 = vadd.f32 %v9711_v29, %v9710_v56 }
0x157e   : > { %v9713_v50 = vrot.slane %v9712_v13, 2 }
0x1580   : > { %v9714_v12 = vadd.f32 %v9713_v50, %v9712_v13 }
0x1582   : > { %v9715_v54 = vrot.slane %v9714_v12, 1 }
0x1584   : > { %v9716_v58 = vadd.f32 %v9715_v54, %v9714_v12 }
0x1586   : > { %v9718_v6 = vmul.f32 0.125, %v9716_v58 }
0x1588   : > { %v9719_v53 = vpack.c.bf16 %v9718_v6, %v9718_v6 }
0x158a   : > { %12033 = vmatmul.mubr.msk.bf16.vlgmr.msra.gmra.mxu1 %vm1097_vm1, %v9719_v53 }
0x158b   : > { %12374 = shalt.err (!%p12371_p3)
}
0x158c   : > { %s12375_s21 = scalar_lea.hbm %s14829_s25, 3072  ;;  %s12379_s1 = scalar_lea.hbm %s14978_s20, 6144 }
0x158d   : > { %p12376_p4 = scmp.ne.s32.totalorder %s14829_s25, %s12375_s21  ;;  %p12380_p9 = scmp.lt.s32.totalorder %s14829_s25, %s14978_s20 }
0x158e   : > { %p12381_p10 = scmp.lt.s32.totalorder %s12379_s1, %s12375_s21 }
0x158f   : > { %p12377_p7 = pnand %p12376_p4, %p12607_p5 }
0x1590   : > { %p12382_p11 = por %p12381_p10, %p12380_p9 }
0x1591   : > { %p12378_p8 = pneg %p12377_p7 }
0x1593   : > { %p12383_p12 = pnand %p12382_p11, %p12378_p8 }
0x1595   : > { %12386 = shalt.err (!%p12383_p12)
}
0x1596   : > { %s12456_s6 = smov 128   ;;  %s12457_s19 = smov 8   ;;  %vm9780_vm5 = vcmask 24576  }
0x1597   : > { %s14979_s26 = scalar_lea.sflag [#allocation5], %s13408_s4  ;;  %s14980_s27 = sld [smem:[#allocation26_spill]] }
0x1598   : > { %12039 = dma.vmem_to_hbm [thread:$0]  (%p12607_p5), %s14831_s23, 3072, %s14829_s25, %s14979_s26, %s12456_s6, %s12456_s6, %s12457_s19  }
0x1599   : > { %s10563_s21 = sshll.u32 %s12590_s3, 4  ;;  %s650_s1 = scalar_lea.vmem [#allocation2], %s13408_s4 }
0x159a   : > { %s9800_s2 = sshll.u32 %s650_s1, 4  ;;  %s14981_s9 = sld [smem:[#allocation27_spill]]  ;;  %s14866_s2 = int_to_ptr.vmem [resolvable:$true] %s9800_s2 }
0x159b   : > { %s9783_s23 = scalar_lea.sflag [#allocation3], %s13408_s4  ;;  %s12387_s3 = scalar_lea.vmem %s14866_s2, 16 }
0x159c   : > { %p12388_p13 = scmp.ne.s32.totalorder %s14866_s2, %s12387_s3  ;;  %s12458_s25 = smov [#allocation2]  }
0x159d   : > { %v9724_v10 = vld [vmem:[%s14980_s27] sm:$0x1]  ;;  %s12391_s6 = sshll.u32 %s12458_s25, 4  ;;  %s12392_s6 = int_to_ptr.vmem [resolvable:$false] %s12391_s6 }
0x159e   : > { %p12389_p0 = pnand %p12388_p13, %p12607_p5  ;;  %s12393_s7 = scalar_lea.vmem %s12392_s6, 32 }
0x159f   : > { %p12394_p2 = scmp.lt.s32.totalorder %s14866_s2, %s12392_s6  ;;  %p12395_p3 = scmp.lt.s32.totalorder %s12393_s7, %s12387_s3 }
0x15a0   : > { %s14864_s10 = scalar_lea.hbm %s14981_s9, %s10563_s21  ;;  %p12390_p1 = pneg %p12389_p0 }
0x15a1   : > { %p12396_p4 = por %p12395_p3, %p12394_p2 }
0x15a3   : > { %p12397_p7 = pnand %p12396_p4, %p12390_p1 }
0x164a   : > { %v9774_v23 = vpop.f32.mrf.mxu1 }
0x164b   : > { %v9775_v14 = vadd.f32 %v9774_v23, %v9724_v10 }
0x164c   : > { %v12034_v8 = vpop.f32.mrf.mxu1 }
0x164d   : > { %9781 = vst.msk [vmem:[%s650_s1] sm:$0x1] %vm9780_vm5, %v9775_v14 }
0x164e   : > { %v9777_v2 = vpop.f32.mrf.mxu1 }
0x164f   : > { %12400 = shalt.err (!%p12397_p7)
}
0x1650   : > { %s12401_s8 = scalar_lea.hbm %s14864_s10, 16  ;;  %s12405_s26 = scalar_lea.hbm %s14981_s9, 32 }
0x1651   : > { %p12402_p8 = scmp.ne.s32.totalorder %s14864_s10, %s12401_s8  ;;  %p12406_p11 = scmp.lt.s32.totalorder %s14864_s10, %s14981_s9 }
0x1652   : > { %p12407_p12 = scmp.lt.s32.totalorder %s12405_s26, %s12401_s8 }
0x1653   : > { %p12403_p9 = pnand %p12402_p8, %p12607_p5 }
0x1654   : > { %p12408_p13 = por %p12407_p12, %p12406_p11 }
0x1655   : > { %p12404_p10 = pneg %p12403_p9 }
0x1657   : > { %p12409_p0 = pnand %p12408_p13, %p12404_p10 }
0x1659   : > { %12412 = shalt.err (!%p12409_p0)
}
0x165a   : > { %12038 = dma.vmem_to_hbm [thread:$0]  (%p12607_p5), %s14866_s2, 16, %s14864_s10, %s9783_s23   ;;  %v12035_v45 = vpop.f32.mrf.mxu1 }
0x165b PF: > { %s14982_s27 = sld [smem:[#allocation11_spill]] }
0x165c   : > { %s14983_s21 = sld [smem:[#allocation8_spill]] }
0x1661   : > { %p12049_p1 = scmp.ge.s32.totalorder %s14982_s27, 2 }
0x1662   : > { %s9828_s3 = sand.u32 1, %s14983_s21  }
0x1663   : > { %p12043_p2 = pnand %p12049_p1, %p12611_p6  ;;  %s9829_s25 = scalar_lea.sflag [#allocation3], %s9828_s3 }
0x1665   : > { %p12044_p3 = pneg %p12043_p2 }
0x1667   : > { %12430 = dma.done.wait (%p12044_p3), %s9829_s25, 16  }
0x1668   : > { %12432 = vsyncadd (%p12044_p3), %s9829_s25, 4294967280  ;;  %s9837_s6 = scalar_lea.sflag [#allocation5], %s9828_s3 }
0x1669   : > { %12434 = dma.done.wait (%p12044_p3), %s9837_s6, 3072  }
0x166a   : > { %12436 = vsyncadd (%p12044_p3), %s9837_s6, 4294964224  ;;  %s14985_s27 = sld [smem:[#allocation12_spill]] }
0x166b   : > { %s14986_s2 = sld [smem:[#allocation9_spill]] }
0x166c   : > { %s14987_s25 = sld [smem:[#allocation10_spill]] }
0x166d   : > { %s14988_s26 = sld [smem:[#allocation13_spill]] }
0x1670   : > { %p35_p5 = scmp.ge.s32.totalorder %s14985_s27, 4  }
0x1672   :  { %37 = sbr.rel (!%p35_p5) target bundleno = 20 (0x14), region = 170 }
0x1677   :  { %9842 = vsyncpa [#allocation3], 1 }
0x1678   :  { %9844 = vsyncpa [#allocation3 + $0x1], 1 }
0x1679   :  { %9845 = vsyncpa [#allocation5], 1 }
0x167a   :  { %9847 = vsyncpa [#allocation5 + $0x1], 1 }

</bundles_post_ra>
